<compile_context>
chip_gen: v7x
topology: tpu7x:2x2x1
jax: 0.10.0
libtpu: 0.0.40
codegen_flags: <defaults>
</compile_context>

<pallas_src>
import jax
import jax.numpy as jnp
from jax.experimental import pallas as pl
from jax.experimental.pallas import tpu as pltpu


def _disc_kernel(x_ref, y_ref,
                 wx_ref, bx_ref,
                 wy_ref, by_ref,
                 wjx_ref, wjy_ref, bj_ref,
                 wo_ref, bo_ref,
                 out_ref):
    x = x_ref[...]          # (TB, 784) bf16
    y = y_ref[...]          # (TB, 10)  bf16

    def maxout(inp, w_ref, b_ref):
        # w_ref: (pieces, in, out) bf16, b_ref: (pieces, out) f32
        b = b_ref[...]                                   # hoisted load
        h = None
        for p in range(w_ref.shape[0]):
            z = jnp.dot(inp, w_ref[p],
                        preferred_element_type=jnp.float32) + b[p:p + 1, :]
            h = z if h is None else jnp.maximum(h, z)
        return h                                         # f32

    hx = maxout(x, wx_ref, bx_ref)     # (TB, 256)  Maxout(784, 240->256, 5)
    hy = maxout(y, wy_ref, by_ref)     # (TB, 50)   Maxout(10, 50, 5)

    hx_b = hx.astype(jnp.bfloat16)
    hy_b = hy.astype(jnp.bfloat16)

    # Joint Maxout(290, 240->256, 4): concat([hx, hy], 1) @ Wj == hx@Wjx + hy@Wjy
    bj = bj_ref[...]
    hj = None
    for p in range(wjx_ref.shape[0]):
        z = (jnp.dot(hx_b, wjx_ref[p], preferred_element_type=jnp.float32)
             + jnp.dot(hy_b, wjy_ref[p], preferred_element_type=jnp.float32)
             + bj[p:p + 1, :])
        hj = z if hj is None else jnp.maximum(hj, z)     # (TB, 256) f32

    # Output head Linear(240,1)+Sigmoid: N=1 would waste a full MXU pass, so
    # do it as a VPU multiply + lane reduction (XLU slot is otherwise idle).
    logits = jnp.sum(hj * wo_ref[...], axis=-1, keepdims=True) + bo_ref[...]
    out_ref[...] = jax.nn.sigmoid(logits)                # (TB, 1) f32


def _round_up(n, m):
    return ((n + m - 1) // m) * m


def discriminator_forward(x, y, params, *, block_b=256):
    """x: (B, 784) f32, y: (B, 10) f32, params: dict from init_params()[0]."""
    B = x.shape[0]
    # Batch tile: MXU-row aligned (256) for large B; small B collapses to a
    # single full-array block (grid of 1, no padding waste beyond mult-of-8).
    TB = min(block_b, _round_up(B, 8))
    Bp = _round_up(B, TB)

    xb = jnp.asarray(x, jnp.bfloat16)
    yb = jnp.asarray(y, jnp.bfloat16)
    if Bp != B:
        xb = jnp.pad(xb, ((0, Bp - B), (0, 0)))
        yb = jnp.pad(yb, ((0, Bp - B), (0, 0)))

    p = params
    args = (xb, yb,
            p["wx"], p["bx"],
            p["wy"], p["by"],
            p["wjx"], p["wjy"], p["bj"],
            p["wo"], p["bo"])

    def tiled_spec(arr):
        shp = arr.shape
        return pl.BlockSpec((TB,) + shp[1:],
                            lambda i, _n=len(shp): (i,) + (0,) * (_n - 1))

    def resident_spec(arr):
        # Constant block index => weight stays VMEM-resident across grid steps.
        return pl.BlockSpec(arr.shape, lambda i, _n=arr.ndim: (0,) * _n)

    in_specs = ([tiled_spec(xb), tiled_spec(yb)]
                + [resident_spec(a) for a in args[2:]])
    out_specs = pl.BlockSpec((TB, 1), lambda i: (i, 0))

    out = pl.pallas_call(
        _disc_kernel,
        out_shape=jax.ShapeDtypeStruct((Bp, 1), jnp.float32),
        grid_spec=pltpu.PrefetchScalarGridSpec(
            num_scalar_prefetch=0,
            grid=(Bp // TB,),
            in_specs=in_specs,
            out_specs=out_specs),
        compiler_params=pltpu.CompilerParams(
            dimension_semantics=("parallel",)),
    )(*args)
    return out[:B]


def init_params(key):
    """Synthetic init matching the module's __init__ shapes.

    Returns (kernel_params, ref_params):
      kernel_params: bf16 weights, maxout widths padded 240->256 (lane-dense),
                     joint weight pre-split into hx/hy halves, output head as
                     a (1, 256) f32 row for the VPU reduce.
      ref_params:    unpadded f32 weights for the pure-JAX reference.
    """
    ks = jax.random.split(key, 4)

    def maxout_w(k, in_units, out_units, pieces):
        # PyTorch: nn.Linear(in, out*pieces), weight ~ N(0, 1e-4), bias = 0.
        w = 1e-4 * jax.random.normal(k, (in_units, out_units * pieces),
                                     dtype=jnp.float32)
        # column c = o*pieces + p  (matches .view(-1, out, pieces))
        w = w.reshape(in_units, out_units, pieces).transpose(2, 0, 1)
        b = jnp.zeros((pieces, out_units), jnp.float32)
        return w, b

    wx, bx = maxout_w(ks[0], 784, 240, 5)
    wy, by = maxout_w(ks[1], 10, 50, 5)
    wj, bj = maxout_w(ks[2], 290, 240, 4)
    # layer_out Linear(240, 1): synthetic small-normal init.
    wo = 1e-2 * jax.random.normal(ks[3], (240, 1), dtype=jnp.float32)
    bo = jnp.zeros((1, 1), jnp.float32)

    ref = dict(wx=wx, bx=bx, wy=wy, by=by, wj=wj, bj=bj, wo=wo, bo=bo)

    # --- kernel params: pad 240 -> 256 (zeros => provably inert), bf16 weights ---
    PAD = 256 - 240

    def pad_last(a, pad):
        return jnp.pad(a, [(0, 0)] * (a.ndim - 1) + [(0, pad)])

    wx_p = pad_last(wx, PAD).astype(jnp.bfloat16)              # (5, 784, 256)
    bx_p = pad_last(bx, PAD)                                   # (5, 256) f32
    wy_p = wy.astype(jnp.bfloat16)                             # (5, 10, 50)
    by_p = by                                                  # (5, 50) f32
    wj_p = pad_last(wj, PAD)                                   # (4, 290, 256)
    wjx_p = jnp.pad(wj_p[:, :240, :],
                    ((0, 0), (0, PAD), (0, 0))).astype(jnp.bfloat16)  # (4, 256, 256)
    wjy_p = wj_p[:, 240:, :].astype(jnp.bfloat16)              # (4, 50, 256)
    bj_p = pad_last(bj, PAD)                                   # (4, 256) f32
    wo_p = jnp.pad(wo.T, ((0, 0), (0, PAD)))                   # (1, 256) f32
    bo_p = bo                                                  # (1, 1) f32

    kern = dict(wx=wx_p, bx=bx_p, wy=wy_p, by=by_p,
                wjx=wjx_p, wjy=wjy_p, bj=bj_p, wo=wo_p, bo=bo_p)
    return kern, ref


def reference_forward(x, y, p):
    """Pure-JAX f32 reference reproducing the PyTorch forward (eval mode)."""
    def maxout(inp, w, b):
        z = jnp.einsum('bi,pio->pbo', inp, w) + b[:, None, :]
        return z.max(axis=0)

    hx = maxout(x, p["wx"], p["bx"])
    hy = maxout(y, p["wy"], p["by"])
    hj = maxout(jnp.concatenate([hx, hy], axis=1), p["wj"], p["bj"])
    return jax.nn.sigmoid(hj @ p["wo"] + p["bo"])


if __name__ == "__main__":
    key = jax.random.PRNGKey(0)
    kx, ky, kp = jax.random.split(key, 3)

    B = 8
    x = jax.random.normal(kx, (B, 784), dtype=jnp.float32)   # flattened 28x28 image
    y = jax.nn.one_hot(jax.random.randint(ky, (B,), 0, 10), 10, dtype=jnp.float32)

    kern_params, ref_params = init_params(kp)

    out = jax.block_until_ready(discriminator_forward(x, y, kern_params))
    ref = jax.block_until_ready(reference_forward(x, y, ref_params))

    assert out.shape == (B, 1)
    # Tolerance loosened for bf16 weights/activations (f32 accumulation).
    assert jnp.allclose(out, ref, atol=1e-3, rtol=1e-3), (out, ref)

    print("KERNEL_OK")
</pallas_src>

<mosaic_0001>
module attributes {stable_mosaic.version = 11 : i64} {
  func.func @_disc_kernel(%arg0: i32, %arg1: memref<8x784xbf16, #tpu.memory_space<vmem>>, %arg2: memref<8x10xbf16, #tpu.memory_space<vmem>>, %arg3: memref<5x784x256xbf16, #tpu.memory_space<vmem>>, %arg4: memref<5x256xf32, #tpu.memory_space<vmem>>, %arg5: memref<5x10x50xbf16, #tpu.memory_space<vmem>>, %arg6: memref<5x50xf32, #tpu.memory_space<vmem>>, %arg7: memref<4x256x256xbf16, #tpu.memory_space<vmem>>, %arg8: memref<4x50x256xbf16, #tpu.memory_space<vmem>>, %arg9: memref<4x256xf32, #tpu.memory_space<vmem>>, %arg10: memref<1x256xf32, #tpu.memory_space<vmem>>, %arg11: memref<1x1xf32, #tpu.memory_space<vmem>>, %arg12: memref<8x1xf32, #tpu.memory_space<vmem>>) attributes {dimension_semantics = [#tpu.dimension_semantics<parallel>], iteration_bounds = array<i64: 1>, scalar_prefetch = 0 : i64, scratch_operands = 0 : i64, tpu.core_type = #tpu.core_type<tc>, window_params = [{transform_indices = @transform_0, window_bounds = array<i64: 8, 784>}, {transform_indices = @transform_1, window_bounds = array<i64: 8, 10>}, {pipeline_mode = #tpu.pipeline_mode<synchronous>, transform_indices = @transform_2, window_bounds = array<i64: 5, 784, 256>}, {pipeline_mode = #tpu.pipeline_mode<synchronous>, transform_indices = @transform_3, window_bounds = array<i64: 5, 256>}, {pipeline_mode = #tpu.pipeline_mode<synchronous>, transform_indices = @transform_4, window_bounds = array<i64: 5, 10, 50>}, {pipeline_mode = #tpu.pipeline_mode<synchronous>, transform_indices = @transform_5, window_bounds = array<i64: 5, 50>}, {pipeline_mode = #tpu.pipeline_mode<synchronous>, transform_indices = @transform_6, window_bounds = array<i64: 4, 256, 256>}, {pipeline_mode = #tpu.pipeline_mode<synchronous>, transform_indices = @transform_7, window_bounds = array<i64: 4, 50, 256>}, {pipeline_mode = #tpu.pipeline_mode<synchronous>, transform_indices = @transform_8, window_bounds = array<i64: 4, 256>}, {pipeline_mode = #tpu.pipeline_mode<synchronous>, transform_indices = @transform_9, window_bounds = array<i64: 1, 256>}, {pipeline_mode = #tpu.pipeline_mode<synchronous>, transform_indices = @transform_10, window_bounds = array<i64: 1, 1>}, {transform_indices = @transform_11, window_bounds = array<i64: 8, 1>}]} {
    %c0 = arith.constant 0 : index
    %c0_0 = arith.constant 0 : index
    %0 = vector.load %arg1[%c0, %c0_0] : memref<8x784xbf16, #tpu.memory_space<vmem>>, vector<8x784xbf16>
    %c0_1 = arith.constant 0 : index
    %c0_2 = arith.constant 0 : index
    %1 = vector.load %arg2[%c0_1, %c0_2] : memref<8x10xbf16, #tpu.memory_space<vmem>>, vector<8x10xbf16>
    %c0_3 = arith.constant 0 : index
    %c0_4 = arith.constant 0 : index
    %2 = vector.load %arg4[%c0_3, %c0_4] : memref<5x256xf32, #tpu.memory_space<vmem>>, vector<5x256xf32>
    %c0_5 = arith.constant 0 : index
    %c0_6 = arith.constant 0 : index
    %c0_7 = arith.constant 0 : index
    %3 = vector.load %arg3[%c0_5, %c0_6, %c0_7] : memref<5x784x256xbf16, #tpu.memory_space<vmem>>, vector<1x784x256xbf16>
    %4 = vector.shape_cast %3 : vector<1x784x256xbf16> to vector<784x256xbf16>
    %cst = arith.constant dense<0.000000e+00> : vector<8x256xf32>
    %5 = tpu.matmul %0, %4, %cst {dimension_numbers = #tpu.dot_dimension_numbers<[1], [0], [0], [1], [0, 0, 1, 1], [], []>} : vector<8x784xbf16>, vector<784x256xbf16>, vector<8x256xf32> -> vector<8x256xf32>
    %6 = vector.extract_strided_slice %2 {offsets = [0, 0], sizes = [1, 256], strides = [1, 1]} : vector<5x256xf32> to vector<1x256xf32>
    %7 = vector.broadcast %6 : vector<1x256xf32> to vector<8x256xf32>
    %8 = arith.addf %5, %7 : vector<8x256xf32>
    %c1 = arith.constant 1 : index
    %c0_8 = arith.constant 0 : index
    %c0_9 = arith.constant 0 : index
    %9 = vector.load %arg3[%c1, %c0_8, %c0_9] : memref<5x784x256xbf16, #tpu.memory_space<vmem>>, vector<1x784x256xbf16>
    %10 = vector.shape_cast %9 : vector<1x784x256xbf16> to vector<784x256xbf16>
    %cst_10 = arith.constant dense<0.000000e+00> : vector<8x256xf32>
    %11 = tpu.matmul %0, %10, %cst_10 {dimension_numbers = #tpu.dot_dimension_numbers<[1], [0], [0], [1], [0, 0, 1, 1], [], []>} : vector<8x784xbf16>, vector<784x256xbf16>, vector<8x256xf32> -> vector<8x256xf32>
    %12 = vector.extract_strided_slice %2 {offsets = [1, 0], sizes = [1, 256], strides = [1, 1]} : vector<5x256xf32> to vector<1x256xf32>
    %13 = vector.broadcast %12 : vector<1x256xf32> to vector<8x256xf32>
    %14 = arith.addf %11, %13 : vector<8x256xf32>
    %15 = arith.maximumf %8, %14 : vector<8x256xf32>
    %c2 = arith.constant 2 : index
    %c0_11 = arith.constant 0 : index
    %c0_12 = arith.constant 0 : index
    %16 = vector.load %arg3[%c2, %c0_11, %c0_12] : memref<5x784x256xbf16, #tpu.memory_space<vmem>>, vector<1x784x256xbf16>
    %17 = vector.shape_cast %16 : vector<1x784x256xbf16> to vector<784x256xbf16>
    %cst_13 = arith.constant dense<0.000000e+00> : vector<8x256xf32>
    %18 = tpu.matmul %0, %17, %cst_13 {dimension_numbers = #tpu.dot_dimension_numbers<[1], [0], [0], [1], [0, 0, 1, 1], [], []>} : vector<8x784xbf16>, vector<784x256xbf16>, vector<8x256xf32> -> vector<8x256xf32>
    %19 = vector.extract_strided_slice %2 {offsets = [2, 0], sizes = [1, 256], strides = [1, 1]} : vector<5x256xf32> to vector<1x256xf32>
    %20 = vector.broadcast %19 : vector<1x256xf32> to vector<8x256xf32>
    %21 = arith.addf %18, %20 : vector<8x256xf32>
    %22 = arith.maximumf %15, %21 : vector<8x256xf32>
    %c3 = arith.constant 3 : index
    %c0_14 = arith.constant 0 : index
    %c0_15 = arith.constant 0 : index
    %23 = vector.load %arg3[%c3, %c0_14, %c0_15] : memref<5x784x256xbf16, #tpu.memory_space<vmem>>, vector<1x784x256xbf16>
    %24 = vector.shape_cast %23 : vector<1x784x256xbf16> to vector<784x256xbf16>
    %cst_16 = arith.constant dense<0.000000e+00> : vector<8x256xf32>
    %25 = tpu.matmul %0, %24, %cst_16 {dimension_numbers = #tpu.dot_dimension_numbers<[1], [0], [0], [1], [0, 0, 1, 1], [], []>} : vector<8x784xbf16>, vector<784x256xbf16>, vector<8x256xf32> -> vector<8x256xf32>
    %26 = vector.extract_strided_slice %2 {offsets = [3, 0], sizes = [1, 256], strides = [1, 1]} : vector<5x256xf32> to vector<1x256xf32>
    %27 = vector.broadcast %26 : vector<1x256xf32> to vector<8x256xf32>
    %28 = arith.addf %25, %27 : vector<8x256xf32>
    %29 = arith.maximumf %22, %28 : vector<8x256xf32>
    %c4 = arith.constant 4 : index
    %c0_17 = arith.constant 0 : index
    %c0_18 = arith.constant 0 : index
    %30 = vector.load %arg3[%c4, %c0_17, %c0_18] : memref<5x784x256xbf16, #tpu.memory_space<vmem>>, vector<1x784x256xbf16>
    %31 = vector.shape_cast %30 : vector<1x784x256xbf16> to vector<784x256xbf16>
    %cst_19 = arith.constant dense<0.000000e+00> : vector<8x256xf32>
    %32 = tpu.matmul %0, %31, %cst_19 {dimension_numbers = #tpu.dot_dimension_numbers<[1], [0], [0], [1], [0, 0, 1, 1], [], []>} : vector<8x784xbf16>, vector<784x256xbf16>, vector<8x256xf32> -> vector<8x256xf32>
    %33 = vector.extract_strided_slice %2 {offsets = [4, 0], sizes = [1, 256], strides = [1, 1]} : vector<5x256xf32> to vector<1x256xf32>
    %34 = vector.broadcast %33 : vector<1x256xf32> to vector<8x256xf32>
    %35 = arith.addf %32, %34 : vector<8x256xf32>
    %36 = arith.maximumf %29, %35 : vector<8x256xf32>
    %c0_20 = arith.constant 0 : index
    %c0_21 = arith.constant 0 : index
    %37 = vector.load %arg6[%c0_20, %c0_21] : memref<5x50xf32, #tpu.memory_space<vmem>>, vector<5x50xf32>
    %c0_22 = arith.constant 0 : index
    %c0_23 = arith.constant 0 : index
    %c0_24 = arith.constant 0 : index
    %38 = vector.load %arg5[%c0_22, %c0_23, %c0_24] : memref<5x10x50xbf16, #tpu.memory_space<vmem>>, vector<1x10x50xbf16>
    %39 = vector.shape_cast %38 : vector<1x10x50xbf16> to vector<10x50xbf16>
    %cst_25 = arith.constant dense<0.000000e+00> : vector<8x50xf32>
    %40 = tpu.matmul %1, %39, %cst_25 {dimension_numbers = #tpu.dot_dimension_numbers<[1], [0], [0], [1], [0, 0, 1, 1], [], []>} : vector<8x10xbf16>, vector<10x50xbf16>, vector<8x50xf32> -> vector<8x50xf32>
    %41 = vector.extract_strided_slice %37 {offsets = [0, 0], sizes = [1, 50], strides = [1, 1]} : vector<5x50xf32> to vector<1x50xf32>
    %42 = vector.broadcast %41 : vector<1x50xf32> to vector<8x50xf32>
    %43 = arith.addf %40, %42 : vector<8x50xf32>
    %c1_26 = arith.constant 1 : index
    %c0_27 = arith.constant 0 : index
    %c0_28 = arith.constant 0 : index
    %44 = vector.load %arg5[%c1_26, %c0_27, %c0_28] : memref<5x10x50xbf16, #tpu.memory_space<vmem>>, vector<1x10x50xbf16>
    %45 = vector.shape_cast %44 : vector<1x10x50xbf16> to vector<10x50xbf16>
    %cst_29 = arith.constant dense<0.000000e+00> : vector<8x50xf32>
    %46 = tpu.matmul %1, %45, %cst_29 {dimension_numbers = #tpu.dot_dimension_numbers<[1], [0], [0], [1], [0, 0, 1, 1], [], []>} : vector<8x10xbf16>, vector<10x50xbf16>, vector<8x50xf32> -> vector<8x50xf32>
    %47 = vector.extract_strided_slice %37 {offsets = [1, 0], sizes = [1, 50], strides = [1, 1]} : vector<5x50xf32> to vector<1x50xf32>
    %48 = vector.broadcast %47 : vector<1x50xf32> to vector<8x50xf32>
    %49 = arith.addf %46, %48 : vector<8x50xf32>
    %50 = arith.maximumf %43, %49 : vector<8x50xf32>
    %c2_30 = arith.constant 2 : index
    %c0_31 = arith.constant 0 : index
    %c0_32 = arith.constant 0 : index
    %51 = vector.load %arg5[%c2_30, %c0_31, %c0_32] : memref<5x10x50xbf16, #tpu.memory_space<vmem>>, vector<1x10x50xbf16>
    %52 = vector.shape_cast %51 : vector<1x10x50xbf16> to vector<10x50xbf16>
    %cst_33 = arith.constant dense<0.000000e+00> : vector<8x50xf32>
    %53 = tpu.matmul %1, %52, %cst_33 {dimension_numbers = #tpu.dot_dimension_numbers<[1], [0], [0], [1], [0, 0, 1, 1], [], []>} : vector<8x10xbf16>, vector<10x50xbf16>, vector<8x50xf32> -> vector<8x50xf32>
    %54 = vector.extract_strided_slice %37 {offsets = [2, 0], sizes = [1, 50], strides = [1, 1]} : vector<5x50xf32> to vector<1x50xf32>
    %55 = vector.broadcast %54 : vector<1x50xf32> to vector<8x50xf32>
    %56 = arith.addf %53, %55 : vector<8x50xf32>
    %57 = arith.maximumf %50, %56 : vector<8x50xf32>
    %c3_34 = arith.constant 3 : index
    %c0_35 = arith.constant 0 : index
    %c0_36 = arith.constant 0 : index
    %58 = vector.load %arg5[%c3_34, %c0_35, %c0_36] : memref<5x10x50xbf16, #tpu.memory_space<vmem>>, vector<1x10x50xbf16>
    %59 = vector.shape_cast %58 : vector<1x10x50xbf16> to vector<10x50xbf16>
    %cst_37 = arith.constant dense<0.000000e+00> : vector<8x50xf32>
    %60 = tpu.matmul %1, %59, %cst_37 {dimension_numbers = #tpu.dot_dimension_numbers<[1], [0], [0], [1], [0, 0, 1, 1], [], []>} : vector<8x10xbf16>, vector<10x50xbf16>, vector<8x50xf32> -> vector<8x50xf32>
    %61 = vector.extract_strided_slice %37 {offsets = [3, 0], sizes = [1, 50], strides = [1, 1]} : vector<5x50xf32> to vector<1x50xf32>
    %62 = vector.broadcast %61 : vector<1x50xf32> to vector<8x50xf32>
    %63 = arith.addf %60, %62 : vector<8x50xf32>
    %64 = arith.maximumf %57, %63 : vector<8x50xf32>
    %c4_38 = arith.constant 4 : index
    %c0_39 = arith.constant 0 : index
    %c0_40 = arith.constant 0 : index
    %65 = vector.load %arg5[%c4_38, %c0_39, %c0_40] : memref<5x10x50xbf16, #tpu.memory_space<vmem>>, vector<1x10x50xbf16>
    %66 = vector.shape_cast %65 : vector<1x10x50xbf16> to vector<10x50xbf16>
    %cst_41 = arith.constant dense<0.000000e+00> : vector<8x50xf32>
    %67 = tpu.matmul %1, %66, %cst_41 {dimension_numbers = #tpu.dot_dimension_numbers<[1], [0], [0], [1], [0, 0, 1, 1], [], []>} : vector<8x10xbf16>, vector<10x50xbf16>, vector<8x50xf32> -> vector<8x50xf32>
    %68 = vector.extract_strided_slice %37 {offsets = [4, 0], sizes = [1, 50], strides = [1, 1]} : vector<5x50xf32> to vector<1x50xf32>
    %69 = vector.broadcast %68 : vector<1x50xf32> to vector<8x50xf32>
    %70 = arith.addf %67, %69 : vector<8x50xf32>
    %71 = arith.maximumf %64, %70 : vector<8x50xf32>
    %72 = arith.truncf %36 : vector<8x256xf32> to vector<8x256xbf16>
    %73 = arith.truncf %71 : vector<8x50xf32> to vector<8x50xbf16>
    %c0_42 = arith.constant 0 : index
    %c0_43 = arith.constant 0 : index
    %74 = vector.load %arg9[%c0_42, %c0_43] : memref<4x256xf32, #tpu.memory_space<vmem>>, vector<4x256xf32>
    %c0_44 = arith.constant 0 : index
    %c0_45 = arith.constant 0 : index
    %c0_46 = arith.constant 0 : index
    %75 = vector.load %arg7[%c0_44, %c0_45, %c0_46] : memref<4x256x256xbf16, #tpu.memory_space<vmem>>, vector<1x256x256xbf16>
    %76 = vector.shape_cast %75 : vector<1x256x256xbf16> to vector<256x256xbf16>
    %cst_47 = arith.constant dense<0.000000e+00> : vector<8x256xf32>
    %77 = tpu.matmul %72, %76, %cst_47 {dimension_numbers = #tpu.dot_dimension_numbers<[1], [0], [0], [1], [0, 0, 1, 1], [], []>} : vector<8x256xbf16>, vector<256x256xbf16>, vector<8x256xf32> -> vector<8x256xf32>
    %c0_48 = arith.constant 0 : index
    %c0_49 = arith.constant 0 : index
    %c0_50 = arith.constant 0 : index
    %78 = vector.load %arg8[%c0_48, %c0_49, %c0_50] : memref<4x50x256xbf16, #tpu.memory_space<vmem>>, vector<1x50x256xbf16>
    %79 = vector.shape_cast %78 : vector<1x50x256xbf16> to vector<50x256xbf16>
    %cst_51 = arith.constant dense<0.000000e+00> : vector<8x256xf32>
    %80 = tpu.matmul %73, %79, %cst_51 {dimension_numbers = #tpu.dot_dimension_numbers<[1], [0], [0], [1], [0, 0, 1, 1], [], []>} : vector<8x50xbf16>, vector<50x256xbf16>, vector<8x256xf32> -> vector<8x256xf32>
    %81 = arith.addf %77, %80 : vector<8x256xf32>
    %82 = vector.extract_strided_slice %74 {offsets = [0, 0], sizes = [1, 256], strides = [1, 1]} : vector<4x256xf32> to vector<1x256xf32>
    %83 = vector.broadcast %82 : vector<1x256xf32> to vector<8x256xf32>
    %84 = arith.addf %81, %83 : vector<8x256xf32>
    %c1_52 = arith.constant 1 : index
    %c0_53 = arith.constant 0 : index
    %c0_54 = arith.constant 0 : index
    %85 = vector.load %arg7[%c1_52, %c0_53, %c0_54] : memref<4x256x256xbf16, #tpu.memory_space<vmem>>, vector<1x256x256xbf16>
    %86 = vector.shape_cast %85 : vector<1x256x256xbf16> to vector<256x256xbf16>
    %cst_55 = arith.constant dense<0.000000e+00> : vector<8x256xf32>
    %87 = tpu.matmul %72, %86, %cst_55 {dimension_numbers = #tpu.dot_dimension_numbers<[1], [0], [0], [1], [0, 0, 1, 1], [], []>} : vector<8x256xbf16>, vector<256x256xbf16>, vector<8x256xf32> -> vector<8x256xf32>
    %c1_56 = arith.constant 1 : index
    %c0_57 = arith.constant 0 : index
    %c0_58 = arith.constant 0 : index
    %88 = vector.load %arg8[%c1_56, %c0_57, %c0_58] : memref<4x50x256xbf16, #tpu.memory_space<vmem>>, vector<1x50x256xbf16>
    %89 = vector.shape_cast %88 : vector<1x50x256xbf16> to vector<50x256xbf16>
    %cst_59 = arith.constant dense<0.000000e+00> : vector<8x256xf32>
    %90 = tpu.matmul %73, %89, %cst_59 {dimension_numbers = #tpu.dot_dimension_numbers<[1], [0], [0], [1], [0, 0, 1, 1], [], []>} : vector<8x50xbf16>, vector<50x256xbf16>, vector<8x256xf32> -> vector<8x256xf32>
    %91 = arith.addf %87, %90 : vector<8x256xf32>
    %92 = vector.extract_strided_slice %74 {offsets = [1, 0], sizes = [1, 256], strides = [1, 1]} : vector<4x256xf32> to vector<1x256xf32>
    %93 = vector.broadcast %92 : vector<1x256xf32> to vector<8x256xf32>
    %94 = arith.addf %91, %93 : vector<8x256xf32>
    %95 = arith.maximumf %84, %94 : vector<8x256xf32>
    %c2_60 = arith.constant 2 : index
    %c0_61 = arith.constant 0 : index
    %c0_62 = arith.constant 0 : index
    %96 = vector.load %arg7[%c2_60, %c0_61, %c0_62] : memref<4x256x256xbf16, #tpu.memory_space<vmem>>, vector<1x256x256xbf16>
    %97 = vector.shape_cast %96 : vector<1x256x256xbf16> to vector<256x256xbf16>
    %cst_63 = arith.constant dense<0.000000e+00> : vector<8x256xf32>
    %98 = tpu.matmul %72, %97, %cst_63 {dimension_numbers = #tpu.dot_dimension_numbers<[1], [0], [0], [1], [0, 0, 1, 1], [], []>} : vector<8x256xbf16>, vector<256x256xbf16>, vector<8x256xf32> -> vector<8x256xf32>
    %c2_64 = arith.constant 2 : index
    %c0_65 = arith.constant 0 : index
    %c0_66 = arith.constant 0 : index
    %99 = vector.load %arg8[%c2_64, %c0_65, %c0_66] : memref<4x50x256xbf16, #tpu.memory_space<vmem>>, vector<1x50x256xbf16>
    %100 = vector.shape_cast %99 : vector<1x50x256xbf16> to vector<50x256xbf16>
    %cst_67 = arith.constant dense<0.000000e+00> : vector<8x256xf32>
    %101 = tpu.matmul %73, %100, %cst_67 {dimension_numbers = #tpu.dot_dimension_numbers<[1], [0], [0], [1], [0, 0, 1, 1], [], []>} : vector<8x50xbf16>, vector<50x256xbf16>, vector<8x256xf32> -> vector<8x256xf32>
    %102 = arith.addf %98, %101 : vector<8x256xf32>
    %103 = vector.extract_strided_slice %74 {offsets = [2, 0], sizes = [1, 256], strides = [1, 1]} : vector<4x256xf32> to vector<1x256xf32>
    %104 = vector.broadcast %103 : vector<1x256xf32> to vector<8x256xf32>
    %105 = arith.addf %102, %104 : vector<8x256xf32>
    %106 = arith.maximumf %95, %105 : vector<8x256xf32>
    %c3_68 = arith.constant 3 : index
    %c0_69 = arith.constant 0 : index
    %c0_70 = arith.constant 0 : index
    %107 = vector.load %arg7[%c3_68, %c0_69, %c0_70] : memref<4x256x256xbf16, #tpu.memory_space<vmem>>, vector<1x256x256xbf16>
    %108 = vector.shape_cast %107 : vector<1x256x256xbf16> to vector<256x256xbf16>
    %cst_71 = arith.constant dense<0.000000e+00> : vector<8x256xf32>
    %109 = tpu.matmul %72, %108, %cst_71 {dimension_numbers = #tpu.dot_dimension_numbers<[1], [0], [0], [1], [0, 0, 1, 1], [], []>} : vector<8x256xbf16>, vector<256x256xbf16>, vector<8x256xf32> -> vector<8x256xf32>
    %c3_72 = arith.constant 3 : index
    %c0_73 = arith.constant 0 : index
    %c0_74 = arith.constant 0 : index
    %110 = vector.load %arg8[%c3_72, %c0_73, %c0_74] : memref<4x50x256xbf16, #tpu.memory_space<vmem>>, vector<1x50x256xbf16>
    %111 = vector.shape_cast %110 : vector<1x50x256xbf16> to vector<50x256xbf16>
    %cst_75 = arith.constant dense<0.000000e+00> : vector<8x256xf32>
    %112 = tpu.matmul %73, %111, %cst_75 {dimension_numbers = #tpu.dot_dimension_numbers<[1], [0], [0], [1], [0, 0, 1, 1], [], []>} : vector<8x50xbf16>, vector<50x256xbf16>, vector<8x256xf32> -> vector<8x256xf32>
    %113 = arith.addf %109, %112 : vector<8x256xf32>
    %114 = vector.extract_strided_slice %74 {offsets = [3, 0], sizes = [1, 256], strides = [1, 1]} : vector<4x256xf32> to vector<1x256xf32>
    %115 = vector.broadcast %114 : vector<1x256xf32> to vector<8x256xf32>
    %116 = arith.addf %113, %115 : vector<8x256xf32>
    %117 = arith.maximumf %106, %116 : vector<8x256xf32>
    %c0_76 = arith.constant 0 : index
    %c0_77 = arith.constant 0 : index
    %118 = vector.load %arg10[%c0_76, %c0_77] : memref<1x256xf32, #tpu.memory_space<vmem>>, vector<1x256xf32>
    %119 = vector.broadcast %118 : vector<1x256xf32> to vector<8x256xf32>
    %120 = arith.mulf %117, %119 : vector<8x256xf32>
    %cst_78 = arith.constant dense<0.000000e+00> : vector<8xf32>
    %121 = vector.multi_reduction <add>, %120, %cst_78 [1] : vector<8x256xf32> to vector<8xf32>
    %122 = vector.shape_cast %121 : vector<8xf32> to vector<8x1xf32>
    %c0_79 = arith.constant 0 : index
    %c0_80 = arith.constant 0 : index
    %123 = vector.load %arg11[%c0_79, %c0_80] : memref<1x1xf32, #tpu.memory_space<vmem>>, vector<1x1xf32>
    %124 = vector.broadcast %123 : vector<1x1xf32> to vector<8x1xf32>
    %125 = arith.addf %122, %124 : vector<8x1xf32>
    %126 = arith.negf %125 : vector<8x1xf32>
    %127 = math.exp %126 : vector<8x1xf32>
    %cst_81 = arith.constant 1.000000e+00 : f32
    %128 = vector.broadcast %cst_81 : f32 to vector<8x1xf32>
    %129 = arith.addf %128, %127 : vector<8x1xf32>
    %130 = arith.divf %128, %129 : vector<8x1xf32>
    %c0_82 = arith.constant 0 : index
    %c0_83 = arith.constant 0 : index
    %131 = vector.load %arg12[%c0_82, %c0_83] : memref<8x1xf32, #tpu.memory_space<vmem>>, vector<8x1xf32>
    tpu.vector_store %arg12[%c0_82, %c0_83], %130 {strides = array<i32>} : memref<8x1xf32, #tpu.memory_space<vmem>>, vector<8x1xf32>,
    return
  }
  func.func @transform_0(%arg0: i32) -> (i32, i32) {
    %c0_i32 = arith.constant 0 : i32
    %c0_i32_0 = arith.constant 0 : i32
    return %arg0, %c0_i32 : i32, i32
  }
  func.func @transform_1(%arg0: i32) -> (i32, i32) {
    %c0_i32 = arith.constant 0 : i32
    %c0_i32_0 = arith.constant 0 : i32
    return %arg0, %c0_i32 : i32, i32
  }
  func.func @transform_2(%arg0: i32) -> (i32, i32, i32) {
    %c0_i32 = arith.constant 0 : i32
    %c0_i32_0 = arith.constant 0 : i32
    %c0_i32_1 = arith.constant 0 : i32
    %c0_i32_2 = arith.constant 0 : i32
    return %c0_i32, %c0_i32_0, %c0_i32_1 : i32, i32, i32
  }
  func.func @transform_3(%arg0: i32) -> (i32, i32) {
    %c0_i32 = arith.constant 0 : i32
    %c0_i32_0 = arith.constant 0 : i32
    %c0_i32_1 = arith.constant 0 : i32
    return %c0_i32, %c0_i32_0 : i32, i32
  }
  func.func @transform_4(%arg0: i32) -> (i32, i32, i32) {
    %c0_i32 = arith.constant 0 : i32
    %c0_i32_0 = arith.constant 0 : i32
    %c0_i32_1 = arith.constant 0 : i32
    %c0_i32_2 = arith.constant 0 : i32
    return %c0_i32, %c0_i32_0, %c0_i32_1 : i32, i32, i32
  }
  func.func @transform_5(%arg0: i32) -> (i32, i32) {
    %c0_i32 = arith.constant 0 : i32
    %c0_i32_0 = arith.constant 0 : i32
    %c0_i32_1 = arith.constant 0 : i32
    return %c0_i32, %c0_i32_0 : i32, i32
  }
  func.func @transform_6(%arg0: i32) -> (i32, i32, i32) {
    %c0_i32 = arith.constant 0 : i32
    %c0_i32_0 = arith.constant 0 : i32
    %c0_i32_1 = arith.constant 0 : i32
    %c0_i32_2 = arith.constant 0 : i32
    return %c0_i32, %c0_i32_0, %c0_i32_1 : i32, i32, i32
  }
  func.func @transform_7(%arg0: i32) -> (i32, i32, i32) {
    %c0_i32 = arith.constant 0 : i32
    %c0_i32_0 = arith.constant 0 : i32
    %c0_i32_1 = arith.constant 0 : i32
    %c0_i32_2 = arith.constant 0 : i32
    return %c0_i32, %c0_i32_0, %c0_i32_1 : i32, i32, i32
  }
  func.func @transform_8(%arg0: i32) -> (i32, i32) {
    %c0_i32 = arith.constant 0 : i32
    %c0_i32_0 = arith.constant 0 : i32
    %c0_i32_1 = arith.constant 0 : i32
    return %c0_i32, %c0_i32_0 : i32, i32
  }
  func.func @transform_9(%arg0: i32) -> (i32, i32) {
    %c0_i32 = arith.constant 0 : i32
    %c0_i32_0 = arith.constant 0 : i32
    %c0_i32_1 = arith.constant 0 : i32
    return %c0_i32, %c0_i32_0 : i32, i32
  }
  func.func @transform_10(%arg0: i32) -> (i32, i32) {
    %c0_i32 = arith.constant 0 : i32
    %c0_i32_0 = arith.constant 0 : i32
    %c0_i32_1 = arith.constant 0 : i32
    return %c0_i32, %c0_i32_0 : i32, i32
  }
  func.func @transform_11(%arg0: i32) -> (i32, i32) {
    %c0_i32 = arith.constant 0 : i32
    %c0_i32_0 = arith.constant 0 : i32
    return %arg0, %c0_i32 : i32, i32
  }
}

</mosaic_0001>

<bundles_post_ra>
// kernel: tpu_custom_call.1
= control target key start
LH: loop header
LB: loop body
LE: loop exit
PB: predicated region body
PF: predicated region fallthrough
CT: control target
= control target key end

     0   :  { %s8273_s0 = inlined_call_operand.hbm [shape: bf16[8,784], index: 0, kind: input, shape index: {}]   ;;  %s8274_s1 = inlined_call_operand.hbm [shape: bf16[8,10], index: 1, kind: input, shape index: {}]   ;;  %s8275_s2 = inlined_call_operand.hbm [shape: bf16[5,784,256], index: 2, kind: input, shape index: {}]   ;;  %s8276_s3 = inlined_call_operand.hbm [shape: f32[5,256], index: 3, kind: input, shape index: {}]   ;;  %s8277_s4 = inlined_call_operand.hbm [shape: bf16[5,10,50], index: 4, kind: input, shape index: {}]   ;;  %s8278_s5 = inlined_call_operand.hbm [shape: f32[5,50], index: 5, kind: input, shape index: {}]   ;;  %s8279_s6 = inlined_call_operand.hbm [shape: bf16[4,256,256], index: 6, kind: input, shape index: {}]   ;;  %s8280_s7 = inlined_call_operand.vmem [shape: bf16[4,50,256], index: 7, kind: input, shape index: {}]   ;;  %s8281_s8 = inlined_call_operand.hbm [shape: f32[4,256], index: 8, kind: input, shape index: {}]   ;;  %s8282_s9 = inlined_call_operand.hbm [shape: f32[1,256], index: 9, kind: input, shape index: {}]   ;;  %s8283_s10 = inlined_call_operand.<no memory space> [shape: f32[1,1], index: 10, kind: input, shape index: {}]   ;;  %s8284_s11 = inlined_call_operand.vmem [shape: f32[8,1], index: 11, kind: output, shape index: {}]  }
   0x1   :  { %v16_v0 = vstv %s8283_s10 }
   0x2   :  { %17 = vst [vmem:[#allocation2] sm:$0x1] %v16_v0 }
   0x3   :  { %18 = vsyncpa [#allocation4], 0 }
   0x4   :  { %19 = vsyncpa [#allocation6], 0 }
   0x5   :  { %20 = vsyncpa [#allocation9], 0 }
   0x6   :  { %21 = vsyncpa [#allocation12], 0 }
   0x7   :  { %22 = vsyncpa [#allocation15], 0  ;;  %s7739_s19 = smov [#allocation5]   ;;  %s7740_s21 = smov [#allocation8]  }
   0x8   :  { %s39_s20 = sshll.u32 %s7739_s19, 4  ;;  %s61_s22 = sshll.u32 %s7740_s21, 4  ;;  %s40_s20 = int_to_ptr.vmem [resolvable:$true] %s39_s20  ;;  %s62_s22 = int_to_ptr.vmem [resolvable:$true] %s61_s22 }
   0x9   :  { %s7531_s25 = scalar_lea.hbm %s8274_s1, 64 }
   0xa   :  { %p7532_p0 = scmp.ne.s32.totalorder %s8274_s1, %s7531_s25  ;;  %p7535_p1 = scmp.lt.u32.totalorder %s7531_s25, %s8274_s1 }
   0xc   :  { %p7537_p2 = pnand %p7535_p1, %p7532_p0 }
   0xe   :  { %7540 = shalt.err (!%p7537_p2)
}
   0xf   :  { %s7541_s29 = scalar_lea.vmem %s40_s20, 64  ;;  %p7546_p4 = scmp.lt.s32.totalorder %s40_s20, %s40_s20 }
  0x10   :  { %p7542_p3 = scmp.ne.s32.totalorder %s40_s20, %s7541_s29  ;;  %p7547_p5 = scmp.lt.s32.totalorder %s7541_s29, %s7541_s29 }
  0x12   :  { %p7548_p6 = por %p7547_p5, %p7546_p4 }
  0x14   :  { %p7549_p7 = pnand %p7548_p6, %p7542_p3 }
  0x16   :  { %7552 = shalt.err (!%p7549_p7)
}
  0x17   :  { %42 = dma.hbm_to_vmem [thread:$0]  %s8274_s1, 64, %s40_s20, [#allocation6]  }
  0x18   :  { %s7553_s15 = scalar_lea.hbm %s8276_s3, 256 }
  0x19   :  { %p7554_p8 = scmp.ne.s32.totalorder %s8276_s3, %s7553_s15  ;;  %p7557_p9 = scmp.lt.u32.totalorder %s7553_s15, %s8276_s3 }
  0x1b   :  { %p7559_p10 = pnand %p7557_p9, %p7554_p8 }
  0x1d   :  { %7562 = shalt.err (!%p7559_p10)
}
  0x1e   :  { %s7563_s21 = scalar_lea.vmem %s62_s22, 256  ;;  %p7568_p12 = scmp.lt.s32.totalorder %s62_s22, %s62_s22 }
  0x1f   :  { %p7564_p11 = scmp.ne.s32.totalorder %s62_s22, %s7563_s21  ;;  %p7569_p13 = scmp.lt.s32.totalorder %s7563_s21, %s7563_s21 }
  0x21   :  { %p7570_p0 = por %p7569_p13, %p7568_p12 }
  0x23   :  { %p7571_p1 = pnand %p7570_p0, %p7564_p11 }
  0x25   :  { %7574 = shalt.err (!%p7571_p1)
}
  0x26   :  { %64 = dma.hbm_to_vmem [thread:$0]  %s8276_s3, 256, %s62_s22, [#allocation9]  }
  0x27   :  { %s7741_s23 = smov [#allocation11]   ;;  %s7742_s25 = smov [#allocation14]  }
  0x28   :  { %s83_s24 = sshll.u32 %s7741_s23, 4  ;;  %s107_s26 = sshll.u32 %s7742_s25, 4  ;;  %s84_s24 = int_to_ptr.vmem [resolvable:$true] %s83_s24  ;;  %s108_s26 = int_to_ptr.vmem [resolvable:$true] %s107_s26 }
  0x29   :  { %s7575_s28 = scalar_lea.hbm %s8278_s5, 128 }
  0x2a   :  { %p7576_p2 = scmp.ne.s32.totalorder %s8278_s5, %s7575_s28  ;;  %p7579_p3 = scmp.lt.u32.totalorder %s7575_s28, %s8278_s5 }
  0x2c   :  { %p7581_p4 = pnand %p7579_p3, %p7576_p2 }
  0x2e   :  { %7584 = shalt.err (!%p7581_p4)
}
  0x2f   :  { %s7585_s3 = scalar_lea.vmem %s84_s24, 128  ;;  %p7590_p6 = scmp.lt.s32.totalorder %s84_s24, %s84_s24 }
  0x30   :  { %p7586_p5 = scmp.ne.s32.totalorder %s84_s24, %s7585_s3  ;;  %p7591_p7 = scmp.lt.s32.totalorder %s7585_s3, %s7585_s3 }
  0x32   :  { %p7592_p8 = por %p7591_p7, %p7590_p6 }
  0x34   :  { %p7593_p9 = pnand %p7592_p8, %p7586_p5 }
  0x36   :  { %7596 = shalt.err (!%p7593_p9)
}
  0x37   :  { %86 = dma.hbm_to_vmem [thread:$0]  %s8278_s5, 128, %s84_s24, [#allocation12]  }
  0x38   :  { %s7597_s17 = scalar_lea.hbm %s8281_s8, 128 }
  0x39   :  { %p7598_p10 = scmp.ne.s32.totalorder %s8281_s8, %s7597_s17  ;;  %p7601_p11 = scmp.lt.u32.totalorder %s7597_s17, %s8281_s8 }
  0x3b   :  { %p7603_p12 = pnand %p7601_p11, %p7598_p10 }
  0x3d   :  { %7606 = shalt.err (!%p7603_p12)
}
  0x3e   :  { %s7607_s20 = scalar_lea.vmem %s108_s26, 128  ;;  %p7612_p0 = scmp.lt.s32.totalorder %s108_s26, %s108_s26 }
  0x3f   :  { %p7608_p13 = scmp.ne.s32.totalorder %s108_s26, %s7607_s20  ;;  %p7613_p1 = scmp.lt.s32.totalorder %s7607_s20, %s7607_s20 }
  0x41   :  { %p7614_p2 = por %p7613_p1, %p7612_p0 }
  0x43   :  { %p7615_p3 = pnand %p7614_p2, %p7608_p13 }
  0x45   :  { %7618 = shalt.err (!%p7615_p3)
}
  0x46   :  { %110 = dma.hbm_to_vmem [thread:$0]  %s8281_s8, 128, %s108_s26, [#allocation15]  }
  0x47   :  { %s7743_s24 = smov [#allocation3]   ;;  %s7744_s27 = smov [#allocation7]  }
  0x48   :  { %s29_s25 = sshll.u32 %s7743_s24, 4  ;;  %s48_s10 = sshll.u32 %s7744_s27, 4  ;;  %s30_s25 = int_to_ptr.vmem [resolvable:$true] %s29_s25  ;;  %s7866_s10 = int_to_ptr.vmem [resolvable:$true] %s48_s10 }
  0x49   :  { %s7619_s30 = scalar_lea.hbm %s8273_s0, 448 }
  0x4a   :  { %p7620_p4 = scmp.ne.s32.totalorder %s8273_s0, %s7619_s30  ;;  %p7623_p5 = scmp.lt.u32.totalorder %s7619_s30, %s8273_s0 }
  0x4c   :  { %p7625_p6 = pnand %p7623_p5, %p7620_p4 }
  0x4e   :  { %7628 = shalt.err (!%p7625_p6)
}
  0x4f   :  { %s7629_s8 = scalar_lea.vmem %s30_s25, 448  ;;  %p7634_p8 = scmp.lt.s32.totalorder %s30_s25, %s30_s25 }
  0x50   :  { %p7630_p7 = scmp.ne.s32.totalorder %s30_s25, %s7629_s8  ;;  %p7635_p9 = scmp.lt.s32.totalorder %s7629_s8, %s7629_s8 }
  0x52   :  { %p7636_p10 = por %p7635_p9, %p7634_p8 }
  0x54   :  { %p7637_p11 = pnand %p7636_p10, %p7630_p7 }
  0x56   :  { %7640 = shalt.err (!%p7637_p11)
}
  0x57   :  { %32 = dma.hbm_to_vmem [thread:$0]  %s8273_s0, 448, %s30_s25, [#allocation4]  }
  0x58   :  { %s7641_s17 = scalar_lea.hbm %s8275_s2, 62720 }
  0x59   :  { %p7642_p12 = scmp.ne.s32.totalorder %s8275_s2, %s7641_s17  ;;  %p7645_p13 = scmp.lt.u32.totalorder %s7641_s17, %s8275_s2 }
  0x5b   :  { %p7647_p0 = pnand %p7645_p13, %p7642_p12 }
  0x5d   :  { %7650 = shalt.err (!%p7647_p0)
}
  0x5e   :  { %s7651_s20 = scalar_lea.vmem %s7866_s10, 62720  ;;  %p7656_p2 = scmp.lt.s32.totalorder %s7866_s10, %s7866_s10 }
  0x5f   :  { %p7652_p1 = scmp.ne.s32.totalorder %s7866_s10, %s7651_s20  ;;  %p7657_p3 = scmp.lt.s32.totalorder %s7651_s20, %s7651_s20 }
  0x61   :  { %p7658_p4 = por %p7657_p3, %p7656_p2 }
  0x63   :  { %p7659_p5 = pnand %p7658_p4, %p7652_p1 }
  0x65   :  { %7662 = shalt.err (!%p7659_p5)
}
  0x66   :  { %s7745_s0 = smov 128   ;;  %s7746_s5 = smov 8  }
  0x67   :  { %54 = dma.hbm_to_vmem [thread:$0]  %s8275_s2, 62720, %s7866_s10, [#allocation6], %s7745_s0, %s7745_s0, %s7746_s5  }
  0x68   :  { %s7747_s25 = smov [#allocation10]   ;;  %s7663_s30 = scalar_lea.hbm %s8277_s4, 640 }
  0x69   :  { %s70_s27 = sshll.u32 %s7747_s25, 4  ;;  %p7664_p6 = scmp.ne.s32.totalorder %s8277_s4, %s7663_s30  ;;  %s71_s27 = int_to_ptr.vmem [resolvable:$true] %s70_s27 }
  0x6a   :  { %p7667_p7 = scmp.lt.u32.totalorder %s7663_s30, %s8277_s4 }
  0x6c   :  { %p7669_p8 = pnand %p7667_p7, %p7664_p6 }
  0x6e   :  { %7672 = shalt.err (!%p7669_p8)
}
  0x6f   :  { %s7673_s8 = scalar_lea.vmem %s71_s27, 640  ;;  %p7678_p10 = scmp.lt.s32.totalorder %s71_s27, %s71_s27 }
  0x70   :  { %p7674_p9 = scmp.ne.s32.totalorder %s71_s27, %s7673_s8  ;;  %p7679_p11 = scmp.lt.s32.totalorder %s7673_s8, %s7673_s8 }
  0x72   :  { %p7680_p12 = por %p7679_p11, %p7678_p10 }
  0x74   :  { %p7681_p13 = pnand %p7680_p12, %p7674_p9 }
  0x76   :  { %7684 = shalt.err (!%p7681_p13)
}
  0x77   :  { %s7748_s2 = smov 64   ;;  %s7749_s10 = smov 4  }
  0x78   :  { %76 = dma.hbm_to_vmem [thread:$0]  %s8277_s4, 640, %s71_s27, [#allocation9], %s7748_s2, %s7748_s2, %s7749_s10  }
  0x79   :  { %s7750_s15 = smov [#allocation13]   ;;  %s7751_s17 = smov [#allocation16]  }
  0x7a   :  { %s92_s16 = sshll.u32 %s7750_s15, 4  ;;  %s117_s18 = sshll.u32 %s7751_s17, 4  ;;  %s93_s16 = int_to_ptr.vmem [resolvable:$true] %s92_s16  ;;  %s118_s18 = int_to_ptr.vmem [resolvable:$true] %s117_s18 }
  0x7b   :  { %s7685_s1 = scalar_lea.hbm %s8279_s6, 16384 }
  0x7c   :  { %p7686_p0 = scmp.ne.s32.totalorder %s8279_s6, %s7685_s1  ;;  %p7689_p1 = scmp.lt.u32.totalorder %s7685_s1, %s8279_s6 }
  0x7e   :  { %p7691_p2 = pnand %p7689_p1, %p7686_p0 }
  0x80   :  { %7694 = shalt.err (!%p7691_p2)
}
  0x81   :  { %s7695_s4 = scalar_lea.vmem %s93_s16, 16384  ;;  %p7700_p4 = scmp.lt.s32.totalorder %s93_s16, %s93_s16 }
  0x82   :  { %p7696_p3 = scmp.ne.s32.totalorder %s93_s16, %s7695_s4  ;;  %p7701_p5 = scmp.lt.s32.totalorder %s7695_s4, %s7695_s4 }
  0x84   :  { %p7702_p6 = por %p7701_p5, %p7700_p4 }
  0x86   :  { %p7703_p7 = pnand %p7702_p6, %p7696_p3 }
  0x88   :  { %7706 = shalt.err (!%p7703_p7)
}
  0x89   :  { %98 = dma.hbm_to_vmem [thread:$0]  %s8279_s6, 16384, %s93_s16, [#allocation12], %s7745_s0, %s7745_s0, %s7746_s5  }
  0x8a   :  { %s7707_s12 = scalar_lea.hbm %s8282_s9, 32 }
  0x8b   :  { %p7708_p8 = scmp.ne.s32.totalorder %s8282_s9, %s7707_s12  ;;  %p7711_p9 = scmp.lt.u32.totalorder %s7707_s12, %s8282_s9 }
  0x8d   :  { %p7713_p10 = pnand %p7711_p9, %p7708_p8 }
  0x8f   :  { %7716 = shalt.err (!%p7713_p10)
}
  0x90   :  { %s7717_s2 = scalar_lea.vmem %s118_s18, 32  ;;  %p7722_p12 = scmp.lt.s32.totalorder %s118_s18, %s118_s18 }
  0x91   :  { %p7718_p11 = scmp.ne.s32.totalorder %s118_s18, %s7717_s2  ;;  %p7723_p13 = scmp.lt.s32.totalorder %s7717_s2, %s7717_s2 }
  0x93   :  { %p7724_p0 = por %p7723_p13, %p7722_p12 }
  0x95   :  { %p7725_p1 = pnand %p7724_p0, %p7718_p11 }
  0x97   :  { %7728 = shalt.err (!%p7725_p1)
}
  0x98   :  { %120 = dma.hbm_to_vmem [thread:$0]  %s8282_s9, 32, %s118_s18, [#allocation15]  }
  0x99   :  { %7729 = dma.done.wait [#allocation4], 448  }
  0x9a   :  { %7730 = vsyncadd [#allocation4], 4294966848 }
  0x9b   :  { %7731 = dma.done.wait [#allocation6], 62784  }
  0x9c   :  { %7732 = vsyncadd [#allocation6], 4294904512 }
  0x9d   :  { %7733 = dma.done.wait [#allocation9], 896  }
  0x9e   :  { %7734 = vsyncadd [#allocation9], 4294966400 }
  0x9f   :  { %7735 = dma.done.wait [#allocation12], 16512  }
  0xa0   :  { %7736 = vsyncadd [#allocation12], 4294950784 }
  0xa1   :  { %7737 = dma.done.wait [#allocation15], 160  }
  0xa2   :  { %7738 = vsyncadd [#allocation15], 4294967136  ;;  %v6543_v1 = vld [vmem:[#allocation7 + $0x4] ss:$8 sps:$4 sm:$0xff]   ;;  %v6545_v2 = vld [vmem:[#allocation7 + $0x314] ss:$8 sps:$4 sm:$0xff]  }
  0xa3   :  { %782 = vmatprep.subr.bf16.mxu0 %v6543_v1  ;;  %v6547_v3 = vld [vmem:[#allocation7] ss:$8 sps:$4 sm:$0xff]   ;;  %v6548_v4 = vld [vmem:[#allocation7 + $0x310] ss:$8 sps:$4 sm:$0xff]   ;;  %1543 = vmatprep.subr.bf16.mxu1 %v6545_v2  ;;  %v6549_v5 = vld [vmem:[#allocation7 + $0x14] ss:$8 sps:$4 sm:$0xff]  }
  0xa4   :  { %783 = vmatpush1.bf16.msra.mxu0 %v6547_v3  ;;  %1544 = vmatpush1.bf16.msra.mxu1 %v6548_v4  ;;  %v6551_v6 = vld [vmem:[#allocation7 + $0x324] ss:$8 sps:$4 sm:$0xff]   ;;  %v6553_v7 = vld [vmem:[#allocation7 + $0x10] ss:$8 sps:$4 sm:$0xff]   ;;  %v6554_v8 = vld [vmem:[#allocation7 + $0x320] ss:$8 sps:$4 sm:$0xff]  }
  0xa5   :  { %784 = vmatprep.subr.bf16.mxu0 %v6549_v5  ;;  %1545 = vmatprep.subr.bf16.mxu1 %v6551_v6  ;;  %v6555_v9 = vld [vmem:[#allocation7 + $0x24] ss:$8 sps:$4 sm:$0xff]   ;;  %v6557_v10 = vld [vmem:[#allocation7 + $0x334] ss:$8 sps:$4 sm:$0xff]   ;;  %v6559_v11 = vld [vmem:[#allocation7 + $0x20] ss:$8 sps:$4 sm:$0xff]  }
  0xa6   :  { %v6560_v12 = vld [vmem:[#allocation7 + $0x330] ss:$8 sps:$4 sm:$0xff]   ;;  %v6561_v13 = vld [vmem:[#allocation7 + $0x34] ss:$8 sps:$4 sm:$0xff]   ;;  %v6563_v14 = vld [vmem:[#allocation7 + $0x344] ss:$8 sps:$4 sm:$0xff]  }
  0xa7   :  { %v6565_v15 = vld [vmem:[#allocation7 + $0x30] ss:$8 sps:$4 sm:$0xff]   ;;  %v6566_v16 = vld [vmem:[#allocation7 + $0x340] ss:$8 sps:$4 sm:$0xff]   ;;  %v6567_v17 = vld [vmem:[#allocation7 + $0x44] ss:$8 sps:$4 sm:$0xff]  }
  0xa8   :  { %785 = vmatpush1.bf16.msra.mxu0 %v6553_v7  ;;  %1546 = vmatpush1.bf16.msra.mxu1 %v6554_v8  ;;  %v6569_v18 = vld [vmem:[#allocation7 + $0x354] ss:$8 sps:$4 sm:$0xff]   ;;  %v6571_v19 = vld [vmem:[#allocation7 + $0x40] ss:$8 sps:$4 sm:$0xff]   ;;  %v6572_v20 = vld [vmem:[#allocation7 + $0x350] ss:$8 sps:$4 sm:$0xff]  }
  0xa9   :  { %786 = vmatprep.subr.bf16.mxu0 %v6555_v9  ;;  %1547 = vmatprep.subr.bf16.mxu1 %v6557_v10  ;;  %v6573_v21 = vld [vmem:[#allocation7 + $0x54] ss:$8 sps:$4 sm:$0xff]   ;;  %v6575_v22 = vld [vmem:[#allocation7 + $0x364] ss:$8 sps:$4 sm:$0xff]   ;;  %v6577_v23 = vld [vmem:[#allocation7 + $0x50] ss:$8 sps:$4 sm:$0xff]  }
  0xaa   :  { %v6578_v24 = vld [vmem:[#allocation7 + $0x360] ss:$8 sps:$4 sm:$0xff]   ;;  %v6579_v25 = vld [vmem:[#allocation7 + $0x64] ss:$8 sps:$4 sm:$0xff]   ;;  %v6581_v26 = vld [vmem:[#allocation7 + $0x374] ss:$8 sps:$4 sm:$0xff]  }
  0xab   :  { %v6583_v27 = vld [vmem:[#allocation7 + $0x60] ss:$8 sps:$4 sm:$0xff]   ;;  %v6584_v28 = vld [vmem:[#allocation7 + $0x370] ss:$8 sps:$4 sm:$0xff]   ;;  %v6585_v29 = vld [vmem:[#allocation7 + $0x74] ss:$8 sps:$4 sm:$0xff]  }
  0xac   :  { %787 = vmatpush1.bf16.msra.mxu0 %v6559_v11  ;;  %1548 = vmatpush1.bf16.msra.mxu1 %v6560_v12  ;;  %v6587_v30 = vld [vmem:[#allocation7 + $0x384] ss:$8 sps:$4 sm:$0xff]   ;;  %v6589_v31 = vld [vmem:[#allocation7 + $0x70] ss:$8 sps:$4 sm:$0xff]   ;;  %v6590_v32 = vld [vmem:[#allocation7 + $0x380] ss:$8 sps:$4 sm:$0xff]  }
  0xad   :  { %788 = vmatprep.subr.bf16.mxu0 %v6561_v13  ;;  %1549 = vmatprep.subr.bf16.mxu1 %v6563_v14  ;;  %v6591_v33 = vld [vmem:[#allocation7 + $0x84] ss:$8 sps:$4 sm:$0xff]   ;;  %v6593_v34 = vld [vmem:[#allocation7 + $0x394] ss:$8 sps:$4 sm:$0xff]   ;;  %v6595_v35 = vld [vmem:[#allocation7 + $0x80] ss:$8 sps:$4 sm:$0xff]  }
  0xae   :  { %v6596_v36 = vld [vmem:[#allocation7 + $0x390] ss:$8 sps:$4 sm:$0xff]   ;;  %v6597_v37 = vld [vmem:[#allocation7 + $0x94] ss:$8 sps:$4 sm:$0xff]   ;;  %v6599_v38 = vld [vmem:[#allocation7 + $0x3a4] ss:$8 sps:$4 sm:$0xff]  }
  0xaf   :  { %v6601_v39 = vld [vmem:[#allocation7 + $0x90] ss:$8 sps:$4 sm:$0xff]   ;;  %v6602_v40 = vld [vmem:[#allocation7 + $0x3a0] ss:$8 sps:$4 sm:$0xff]   ;;  %v6603_v41 = vld [vmem:[#allocation7 + $0xa4] ss:$8 sps:$4 sm:$0xff]  }
  0xb0   :  { %789 = vmatpush1.bf16.msra.mxu0 %v6565_v15  ;;  %1550 = vmatpush1.bf16.msra.mxu1 %v6566_v16  ;;  %v6605_v42 = vld [vmem:[#allocation7 + $0x3b4] ss:$8 sps:$4 sm:$0xff]   ;;  %v6607_v43 = vld [vmem:[#allocation7 + $0xa0] ss:$8 sps:$4 sm:$0xff]   ;;  %v6608_v44 = vld [vmem:[#allocation7 + $0x3b0] ss:$8 sps:$4 sm:$0xff]  }
  0xb1   :  { %790 = vmatprep.subr.bf16.mxu0 %v6567_v17  ;;  %1551 = vmatprep.subr.bf16.mxu1 %v6569_v18  ;;  %v6609_v45 = vld [vmem:[#allocation7 + $0xb4] ss:$8 sps:$4 sm:$0xff]   ;;  %v6611_v46 = vld [vmem:[#allocation7 + $0x3c4] ss:$8 sps:$4 sm:$0xff]   ;;  %v6613_v48 = vld [vmem:[#allocation7 + $0xb0] ss:$8 sps:$4 sm:$0xff]  }
  0xb2   :  { %v151_v47 = vld [vmem:[#allocation3] sm:$0xff]  ;;  %v6617_v52 = vld [vmem:[#allocation7 + $0x3d4] ss:$8 sps:$4 sm:$0xff]   ;;  %v6620_v54 = vld [vmem:[#allocation7 + $0x3d0] ss:$8 sps:$4 sm:$0xff]   ;;  %vm778_vm0 = vcmask 130048  }
  0xb3   :  { %v7939_v49 = vcombine.high %v151_v47, %v151_v47  ;;  %v6614_v50 = vld [vmem:[#allocation7 + $0x3c0] ss:$8 sps:$4 sm:$0xff]   ;;  %v6615_v51 = vld [vmem:[#allocation7 + $0xc4] ss:$8 sps:$4 sm:$0xff]   ;;  %v6621_v55 = vld [vmem:[#allocation7 + $0xd4] ss:$8 sps:$4 sm:$0xff]   ;;  %v7943_v6 = vcombine.low %v151_v47, %v151_v47 }
  0xb4   :  { %791 = vmatpush1.bf16.msra.mxu0 %v6571_v19  ;;  %1552 = vmatpush1.bf16.msra.mxu1 %v6572_v20  ;;  %v6619_v53 = vld [vmem:[#allocation7 + $0xc0] ss:$8 sps:$4 sm:$0xff]   ;;  %v6623_v56 = vld [vmem:[#allocation7 + $0x3e4] ss:$8 sps:$4 sm:$0xff]   ;;  %v6625_v57 = vld [vmem:[#allocation7 + $0xd0] ss:$8 sps:$4 sm:$0xff]  }
  0xb5   :  { %792 = vmatprep.subr.bf16.mxu0 %v6573_v21  ;;  %1553 = vmatprep.subr.bf16.mxu1 %v6575_v22  ;;  %v6626_v58 = vld [vmem:[#allocation7 + $0x3e0] ss:$8 sps:$4 sm:$0xff]   ;;  %v6627_v59 = vld [vmem:[#allocation7 + $0xe4] ss:$8 sps:$4 sm:$0xff]   ;;  %v6629_v60 = vld [vmem:[#allocation7 + $0x3f4] ss:$8 sps:$4 sm:$0xff]  }
  0xb6   :  { %814 = vmatprep.mubr.bf16.mxu0 %v7939_v49  ;;  %1575 = vmatprep.mubr.bf16.mxu1 %v7939_v49  ;;  %v6631_v61 = vld [vmem:[#allocation7 + $0xe0] ss:$8 sps:$4 sm:$0xff]   ;;  %v6632_v62 = vld [vmem:[#allocation7 + $0x3f0] ss:$8 sps:$4 sm:$0xff]   ;;  %v6633_v63 = vld [vmem:[#allocation7 + $0xf4] ss:$8 sps:$4 sm:$0xff]  }
  0xb7   :  { %v6635_v0 = vld [vmem:[#allocation7 + $0x404] ss:$8 sps:$4 sm:$0xff]   ;;  %v6637_v1 = vld [vmem:[#allocation7 + $0xf0] ss:$8 sps:$4 sm:$0xff]   ;;  %v6638_v2 = vld [vmem:[#allocation7 + $0x400] ss:$8 sps:$4 sm:$0xff]  }
  0xb8   :  { %793 = vmatpush1.bf16.msra.mxu0 %v6577_v23  ;;  %1554 = vmatpush1.bf16.msra.mxu1 %v6578_v24  ;;  %v6642_v3 = vld [vmem:[#allocation7 + $0x104] ss:$8 sps:$4 sm:$0xff]   ;;  %v6645_v4 = vld [vmem:[#allocation7 + $0x414] ss:$8 sps:$4 sm:$0xff]   ;;  %v6640_v5 = vld [vmem:[#allocation7 + $0x100] ss:$8 sps:$4 sm:$0xff]  }
  0xb9   :  { %794 = vmatprep.subr.bf16.mxu0 %v6579_v25  ;;  %1555 = vmatprep.subr.bf16.mxu1 %v6581_v26  ;;  %v6643_v7 = vld [vmem:[#allocation7 + $0x410] ss:$8 sps:$4 sm:$0xff]   ;;  %v6649_v8 = vld [vmem:[#allocation7 + $0x114] ss:$8 sps:$4 sm:$0xff]   ;;  %v6652_v9 = vld [vmem:[#allocation7 + $0x424] ss:$8 sps:$4 sm:$0xff]  }
  0xba   :  { %v6647_v10 = vld [vmem:[#allocation7 + $0x110] ss:$8 sps:$4 sm:$0xff]   ;;  %v6650_v11 = vld [vmem:[#allocation7 + $0x420] ss:$8 sps:$4 sm:$0xff]   ;;  %v6655_v12 = vld [vmem:[#allocation7 + $0x124] ss:$8 sps:$4 sm:$0xff]  }
  0xbb   :  { %v6658_v13 = vld [vmem:[#allocation7 + $0x434] ss:$8 sps:$4 sm:$0xff]   ;;  %v6653_v14 = vld [vmem:[#allocation7 + $0x120] ss:$8 sps:$4 sm:$0xff]   ;;  %v6656_v15 = vld [vmem:[#allocation7 + $0x430] ss:$8 sps:$4 sm:$0xff]  }
  0xbc   :  { %795 = vmatpush1.bf16.msra.mxu0 %v6583_v27  ;;  %1556 = vmatpush1.bf16.msra.mxu1 %v6584_v28  ;;  %v6661_v16 = vld [vmem:[#allocation7 + $0x134] ss:$8 sps:$4 sm:$0xff]   ;;  %v6664_v17 = vld [vmem:[#allocation7 + $0x444] ss:$8 sps:$4 sm:$0xff]   ;;  %v6659_v18 = vld [vmem:[#allocation7 + $0x130] ss:$8 sps:$4 sm:$0xff]  }
  0xbd   :  { %796 = vmatprep.subr.bf16.mxu0 %v6585_v29  ;;  %1557 = vmatprep.subr.bf16.mxu1 %v6587_v30  ;;  %v6662_v19 = vld [vmem:[#allocation7 + $0x440] ss:$8 sps:$4 sm:$0xff]   ;;  %v6667_v20 = vld [vmem:[#allocation7 + $0x144] ss:$8 sps:$4 sm:$0xff]   ;;  %v6670_v21 = vld [vmem:[#allocation7 + $0x454] ss:$8 sps:$4 sm:$0xff]  }
  0xbe   :  { %v6665_v22 = vld [vmem:[#allocation7 + $0x140] ss:$8 sps:$4 sm:$0xff]   ;;  %v6668_v23 = vld [vmem:[#allocation7 + $0x450] ss:$8 sps:$4 sm:$0xff]   ;;  %v6673_v24 = vld [vmem:[#allocation7 + $0x154] ss:$8 sps:$4 sm:$0xff]  }
  0xbf   :  { %v6676_v25 = vld [vmem:[#allocation7 + $0x464] ss:$8 sps:$4 sm:$0xff]   ;;  %v6671_v26 = vld [vmem:[#allocation7 + $0x150] ss:$8 sps:$4 sm:$0xff]   ;;  %v6674_v27 = vld [vmem:[#allocation7 + $0x460] ss:$8 sps:$4 sm:$0xff]  }
  0xc0   :  { %797 = vmatpush1.bf16.msra.mxu0 %v6589_v31  ;;  %1558 = vmatpush1.bf16.msra.mxu1 %v6590_v32  ;;  %v6679_v28 = vld [vmem:[#allocation7 + $0x164] ss:$8 sps:$4 sm:$0xff]   ;;  %v6682_v29 = vld [vmem:[#allocation7 + $0x474] ss:$8 sps:$4 sm:$0xff]   ;;  %v6677_v32 = vld [vmem:[#allocation7 + $0x160] ss:$8 sps:$4 sm:$0xff]  }
  0xc1   :  { %798 = vmatprep.subr.bf16.mxu0 %v6591_v33  ;;  %1559 = vmatprep.subr.bf16.mxu1 %v6593_v34  ;;  %v7947_v30 = vld [vmem:[#allocation3 + $0x8] sm:$0xff]  ;;  %v6680_v33 = vld [vmem:[#allocation7 + $0x470] ss:$8 sps:$4 sm:$0xff]   ;;  %v6685_v34 = vld [vmem:[#allocation7 + $0x174] ss:$8 sps:$4 sm:$0xff]   ;;  %vm4014_vm1 = vcmask 1044480  }
  0xc2   :  { %v7951_v31 = vcombine.high %v7947_v30, %v7947_v30  ;;  %v6706_v47 = vld [vmem:[#allocation7 + $0x4b4] ss:$8 sps:$4 sm:$0xff]   ;;  %vm7754_vm2 = vmmov 0   ;;  %vm4010_vm3 = vcmask 80896   ;;  %vm4364_vm4 = vcmask 1040384  }
  0xc3   :  { %vm4360_vm5 = vcmask 408576   ;;  %vm5703_vm6 = vcmask 7168  }
  0xc4   :  { %799 = vmatpush1.bf16.msra.mxu0 %v6595_v35  ;;  %1560 = vmatpush1.bf16.msra.mxu1 %v6596_v36  ;;  %v6688_v35 = vld [vmem:[#allocation7 + $0x484] ss:$8 sps:$4 sm:$0xff]   ;;  %v6683_v36 = vld [vmem:[#allocation7 + $0x170] ss:$8 sps:$4 sm:$0xff]  }
  0xc5   :  { %800 = vmatprep.subr.bf16.mxu0 %v6597_v37  ;;  %1561 = vmatprep.subr.bf16.mxu1 %v6599_v38  ;;  %v6686_v37 = vld [vmem:[#allocation7 + $0x480] ss:$8 sps:$4 sm:$0xff]   ;;  %v6691_v38 = vld [vmem:[#allocation7 + $0x184] ss:$8 sps:$4 sm:$0xff]  }
  0xc8   :  { %801 = vmatpush1.bf16.msra.mxu0 %v6601_v39  ;;  %1562 = vmatpush1.bf16.msra.mxu1 %v6602_v40  ;;  %v6694_v39 = vld [vmem:[#allocation7 + $0x494] ss:$8 sps:$4 sm:$0xff]   ;;  %v6689_v40 = vld [vmem:[#allocation7 + $0x180] ss:$8 sps:$4 sm:$0xff]  }
  0xc9   :  { %802 = vmatprep.subr.bf16.mxu0 %v6603_v41  ;;  %1563 = vmatprep.subr.bf16.mxu1 %v6605_v42  ;;  %v6692_v41 = vld [vmem:[#allocation7 + $0x490] ss:$8 sps:$4 sm:$0xff]   ;;  %v6697_v42 = vld [vmem:[#allocation7 + $0x194] ss:$8 sps:$4 sm:$0xff]  }
  0xcc   :  { %803 = vmatpush1.bf16.msra.mxu0 %v6607_v43  ;;  %1564 = vmatpush1.bf16.msra.mxu1 %v6608_v44  ;;  %v6700_v43 = vld [vmem:[#allocation7 + $0x4a4] ss:$8 sps:$4 sm:$0xff]   ;;  %v6695_v44 = vld [vmem:[#allocation7 + $0x190] ss:$8 sps:$4 sm:$0xff]  }
  0xcd   :  { %804 = vmatprep.subr.bf16.mxu0 %v6609_v45  ;;  %1565 = vmatprep.subr.bf16.mxu1 %v6611_v46  ;;  %v6698_v45 = vld [vmem:[#allocation7 + $0x4a0] ss:$8 sps:$4 sm:$0xff]   ;;  %v6703_v46 = vld [vmem:[#allocation7 + $0x1a4] ss:$8 sps:$4 sm:$0xff]  }
  0xd0   :  { %805 = vmatpush1.bf16.msra.mxu0 %v6613_v48  ;;  %1566 = vmatpush1.bf16.msra.mxu1 %v6614_v50  ;;  %v6701_v48 = vld [vmem:[#allocation7 + $0x1a0] ss:$8 sps:$4 sm:$0xff]   ;;  %v6704_v50 = vld [vmem:[#allocation7 + $0x4b0] ss:$8 sps:$4 sm:$0xff]  }
  0xd1   :  { %806 = vmatprep.subr.bf16.mxu0 %v6615_v51  ;;  %1567 = vmatprep.subr.bf16.mxu1 %v6617_v52  ;;  %v6709_v51 = vld [vmem:[#allocation7 + $0x1b4] ss:$8 sps:$4 sm:$0xff]   ;;  %v6712_v52 = vld [vmem:[#allocation7 + $0x4c4] ss:$8 sps:$4 sm:$0xff]  }
  0xd4   :  { %807 = vmatpush1.bf16.msra.mxu0 %v6619_v53  ;;  %1568 = vmatpush1.bf16.msra.mxu1 %v6620_v54  ;;  %v6707_v53 = vld [vmem:[#allocation7 + $0x1b0] ss:$8 sps:$4 sm:$0xff]   ;;  %v6710_v54 = vld [vmem:[#allocation7 + $0x4c0] ss:$8 sps:$4 sm:$0xff]  }
  0xd5   :  { %808 = vmatprep.subr.bf16.mxu0 %v6621_v55  ;;  %1569 = vmatprep.subr.bf16.mxu1 %v6623_v56  ;;  %v6715_v55 = vld [vmem:[#allocation7 + $0x1c4] ss:$8 sps:$4 sm:$0xff]   ;;  %v6718_v56 = vld [vmem:[#allocation7 + $0x4d4] ss:$8 sps:$4 sm:$0xff]  }
  0xd8   :  { %809 = vmatpush1.bf16.msra.mxu0 %v6625_v57  ;;  %1570 = vmatpush1.bf16.msra.mxu1 %v6626_v58  ;;  %v6713_v57 = vld [vmem:[#allocation7 + $0x1c0] ss:$8 sps:$4 sm:$0xff]   ;;  %v6716_v58 = vld [vmem:[#allocation7 + $0x4d0] ss:$8 sps:$4 sm:$0xff]  }
  0xd9   :  { %810 = vmatprep.subr.bf16.mxu0 %v6627_v59  ;;  %1571 = vmatprep.subr.bf16.mxu1 %v6629_v60  ;;  %v6721_v59 = vld [vmem:[#allocation7 + $0x1d4] ss:$8 sps:$4 sm:$0xff]   ;;  %v6724_v60 = vld [vmem:[#allocation7 + $0x4e4] ss:$8 sps:$4 sm:$0xff]  }
  0xdc   :  { %811 = vmatpush1.bf16.msra.mxu0 %v6631_v61  ;;  %1572 = vmatpush1.bf16.msra.mxu1 %v6632_v62  ;;  %v6719_v61 = vld [vmem:[#allocation7 + $0x1d0] ss:$8 sps:$4 sm:$0xff]   ;;  %v6722_v62 = vld [vmem:[#allocation7 + $0x4e0] ss:$8 sps:$4 sm:$0xff]  }
  0xdd   :  { %812 = vmatprep.subr.bf16.mxu0 %v6633_v63  ;;  %1573 = vmatprep.subr.bf16.mxu1 %v6635_v0  ;;  %v6727_v63 = vld [vmem:[#allocation7 + $0x1e4] ss:$8 sps:$4 sm:$0xff]   ;;  %v6730_v0 = vld [vmem:[#allocation7 + $0x4f4] ss:$8 sps:$4 sm:$0xff]  }
  0xe0   :  { %813 = vmatpush1.bf16.msra.mxu0 %v6637_v1  ;;  %1574 = vmatpush1.bf16.msra.mxu1 %v6638_v2  ;;  %v6725_v1 = vld [vmem:[#allocation7 + $0x1e0] ss:$8 sps:$4 sm:$0xff]   ;;  %v6728_v2 = vld [vmem:[#allocation7 + $0x4f0] ss:$8 sps:$4 sm:$0xff]  }
  0xe1   :  { %823 = vmatprep.subr.bf16.mxu0 %v6642_v3  ;;  %1584 = vmatprep.subr.bf16.mxu1 %v6645_v4  ;;  %v6733_v3 = vld [vmem:[#allocation7 + $0x1f4] ss:$8 sps:$4 sm:$0xff]   ;;  %v6736_v4 = vld [vmem:[#allocation7 + $0x504] ss:$8 sps:$4 sm:$0xff]  }
  0xe3   :  { %815 = vmatmul.mubr.bf16.vlgmr.msra.gmra.mrb[0].mxu0 %v7943_v6  ;;  %1576 = vmatmul.mubr.bf16.vlgmr.msra.gmra.mrb[0].mxu1 %v7943_v6 }
  0xe4   :  { %824 = vmatpush1.bf16.msra.mxu0 %v6640_v5  ;;  %1585 = vmatpush1.bf16.msra.mxu1 %v6643_v7  ;;  %v6731_v5 = vld [vmem:[#allocation7 + $0x1f0] ss:$8 sps:$4 sm:$0xff]   ;;  %v6734_v7 = vld [vmem:[#allocation7 + $0x500] ss:$8 sps:$4 sm:$0xff]  }
  0xe5   :  { %825 = vmatprep.subr.bf16.mxu0 %v6649_v8  ;;  %1586 = vmatprep.subr.bf16.mxu1 %v6652_v9  ;;  %v6740_v8 = vld [vmem:[#allocation7 + $0x204] ss:$8 sps:$4 sm:$0xff]   ;;  %v6743_v9 = vld [vmem:[#allocation7 + $0x514] ss:$8 sps:$4 sm:$0xff]  }
  0xe6   :  { %855 = vmatprep.mubr.bf16.mxu0 %v7951_v31  ;;  %1616 = vmatprep.mubr.bf16.mxu1 %v7951_v31 }
  0xe8   :  { %826 = vmatpush1.bf16.msra.mxu0 %v6647_v10  ;;  %1587 = vmatpush1.bf16.msra.mxu1 %v6650_v11  ;;  %v6738_v10 = vld [vmem:[#allocation7 + $0x200] ss:$8 sps:$4 sm:$0xff]   ;;  %v7957_v11 = vcombine.low %v7947_v30, %v7947_v30  ;;  %v6766_v30 = vld [vmem:[#allocation7 + $0x550] ss:$8 sps:$4 sm:$0xff]  }
  0xe9   :  { %827 = vmatprep.subr.bf16.mxu0 %v6655_v12  ;;  %1588 = vmatprep.subr.bf16.mxu1 %v6658_v13  ;;  %v6741_v12 = vld [vmem:[#allocation7 + $0x510] ss:$8 sps:$4 sm:$0xff]   ;;  %v6747_v13 = vld [vmem:[#allocation7 + $0x214] ss:$8 sps:$4 sm:$0xff]  }
  0xec   :  { %828 = vmatpush1.bf16.msra.mxu0 %v6653_v14  ;;  %1589 = vmatpush1.bf16.msra.mxu1 %v6656_v15  ;;  %v7959_v14 = vld [vmem:[#allocation3 + $0x10] sm:$0xff]  ;;  %v6750_v15 = vld [vmem:[#allocation7 + $0x524] ss:$8 sps:$4 sm:$0xff]  }
  0xed   :  { %829 = vmatprep.subr.bf16.mxu0 %v6661_v16  ;;  %1590 = vmatprep.subr.bf16.mxu1 %v6664_v17  ;;  %v7963_v16 = vcombine.high %v7959_v14, %v7959_v14  ;;  %v6745_v17 = vld [vmem:[#allocation7 + $0x210] ss:$8 sps:$4 sm:$0xff]  }
  0xf0   :  { %830 = vmatpush1.bf16.msra.mxu0 %v6659_v18  ;;  %1591 = vmatpush1.bf16.msra.mxu1 %v6662_v19  ;;  %v6748_v18 = vld [vmem:[#allocation7 + $0x520] ss:$8 sps:$4 sm:$0xff]   ;;  %v6753_v19 = vld [vmem:[#allocation7 + $0x224] ss:$8 sps:$4 sm:$0xff]  }
  0xf1   :  { %831 = vmatprep.subr.bf16.mxu0 %v6667_v20  ;;  %1592 = vmatprep.subr.bf16.mxu1 %v6670_v21  ;;  %v6756_v20 = vld [vmem:[#allocation7 + $0x534] ss:$8 sps:$4 sm:$0xff]   ;;  %v6751_v21 = vld [vmem:[#allocation7 + $0x220] ss:$8 sps:$4 sm:$0xff]  }
  0xf4   :  { %832 = vmatpush1.bf16.msra.mxu0 %v6665_v22  ;;  %1593 = vmatpush1.bf16.msra.mxu1 %v6668_v23  ;;  %v6754_v22 = vld [vmem:[#allocation7 + $0x530] ss:$8 sps:$4 sm:$0xff]   ;;  %v6759_v23 = vld [vmem:[#allocation7 + $0x234] ss:$8 sps:$4 sm:$0xff]  }
  0xf5   :  { %833 = vmatprep.subr.bf16.mxu0 %v6673_v24  ;;  %1594 = vmatprep.subr.bf16.mxu1 %v6676_v25  ;;  %v6762_v24 = vld [vmem:[#allocation7 + $0x544] ss:$8 sps:$4 sm:$0xff]   ;;  %v6757_v25 = vld [vmem:[#allocation7 + $0x230] ss:$8 sps:$4 sm:$0xff]  }
  0xf8   :  { %834 = vmatpush1.bf16.msra.mxu0 %v6671_v26  ;;  %1595 = vmatpush1.bf16.msra.mxu1 %v6674_v27  ;;  %v6760_v26 = vld [vmem:[#allocation7 + $0x540] ss:$8 sps:$4 sm:$0xff]   ;;  %v6765_v27 = vld [vmem:[#allocation7 + $0x244] ss:$8 sps:$4 sm:$0xff]  }
  0xf9   :  { %835 = vmatprep.subr.bf16.mxu0 %v6679_v28  ;;  %1596 = vmatprep.subr.bf16.mxu1 %v6682_v29  ;;  %v6768_v28 = vld [vmem:[#allocation7 + $0x554] ss:$8 sps:$4 sm:$0xff]   ;;  %v6763_v29 = vld [vmem:[#allocation7 + $0x240] ss:$8 sps:$4 sm:$0xff]  }
  0xfc   :  { %836 = vmatpush1.bf16.msra.mxu0 %v6677_v32  ;;  %1597 = vmatpush1.bf16.msra.mxu1 %v6680_v33  ;;  %v6771_v32 = vld [vmem:[#allocation7 + $0x254] ss:$8 sps:$4 sm:$0xff]   ;;  %v6774_v33 = vld [vmem:[#allocation7 + $0x564] ss:$8 sps:$4 sm:$0xff]  }
  0xfd   :  { %837 = vmatprep.subr.bf16.mxu0 %v6685_v34  ;;  %1598 = vmatprep.subr.bf16.mxu1 %v6688_v35  ;;  %v6769_v34 = vld [vmem:[#allocation7 + $0x250] ss:$8 sps:$4 sm:$0xff]   ;;  %v6772_v35 = vld [vmem:[#allocation7 + $0x560] ss:$8 sps:$4 sm:$0xff]  }
 0x100   :  { %838 = vmatpush1.bf16.msra.mxu0 %v6683_v36  ;;  %1599 = vmatpush1.bf16.msra.mxu1 %v6686_v37  ;;  %v6777_v36 = vld [vmem:[#allocation7 + $0x264] ss:$8 sps:$4 sm:$0xff]   ;;  %v6780_v37 = vld [vmem:[#allocation7 + $0x574] ss:$8 sps:$4 sm:$0xff]  }
 0x101   :  { %839 = vmatprep.subr.bf16.mxu0 %v6691_v38  ;;  %1600 = vmatprep.subr.bf16.mxu1 %v6694_v39  ;;  %v6775_v38 = vld [vmem:[#allocation7 + $0x260] ss:$8 sps:$4 sm:$0xff]   ;;  %v6778_v39 = vld [vmem:[#allocation7 + $0x570] ss:$8 sps:$4 sm:$0xff]  }
 0x104   :  { %840 = vmatpush1.bf16.msra.mxu0 %v6689_v40  ;;  %1601 = vmatpush1.bf16.msra.mxu1 %v6692_v41  ;;  %v6783_v40 = vld [vmem:[#allocation7 + $0x274] ss:$8 sps:$4 sm:$0xff]   ;;  %v6786_v41 = vld [vmem:[#allocation7 + $0x584] ss:$8 sps:$4 sm:$0xff]  }
 0x105   :  { %841 = vmatprep.subr.bf16.mxu0 %v6697_v42  ;;  %1602 = vmatprep.subr.bf16.mxu1 %v6700_v43  ;;  %v6781_v42 = vld [vmem:[#allocation7 + $0x270] ss:$8 sps:$4 sm:$0xff]   ;;  %v6784_v43 = vld [vmem:[#allocation7 + $0x580] ss:$8 sps:$4 sm:$0xff]  }
 0x108   :  { %842 = vmatpush1.bf16.msra.mxu0 %v6695_v44  ;;  %1603 = vmatpush1.bf16.msra.mxu1 %v6698_v45  ;;  %v6789_v44 = vld [vmem:[#allocation7 + $0x284] ss:$8 sps:$4 sm:$0xff]   ;;  %v6792_v45 = vld [vmem:[#allocation7 + $0x594] ss:$8 sps:$4 sm:$0xff]  }
 0x109   :  { %843 = vmatprep.subr.bf16.mxu0 %v6703_v46  ;;  %1604 = vmatprep.subr.bf16.mxu1 %v6706_v47  ;;  %v6787_v46 = vld [vmem:[#allocation7 + $0x280] ss:$8 sps:$4 sm:$0xff]   ;;  %v6790_v47 = vld [vmem:[#allocation7 + $0x590] ss:$8 sps:$4 sm:$0xff]  }
 0x10c   :  { %844 = vmatpush1.bf16.msra.mxu0 %v6701_v48  ;;  %1605 = vmatpush1.bf16.msra.mxu1 %v6704_v50  ;;  %v6795_v48 = vld [vmem:[#allocation7 + $0x294] ss:$8 sps:$4 sm:$0xff]   ;;  %v6798_v50 = vld [vmem:[#allocation7 + $0x5a4] ss:$8 sps:$4 sm:$0xff]  }
 0x10d   :  { %845 = vmatprep.subr.bf16.mxu0 %v6709_v51  ;;  %1606 = vmatprep.subr.bf16.mxu1 %v6712_v52  ;;  %v6793_v51 = vld [vmem:[#allocation7 + $0x290] ss:$8 sps:$4 sm:$0xff]   ;;  %v6796_v52 = vld [vmem:[#allocation7 + $0x5a0] ss:$8 sps:$4 sm:$0xff]  }
 0x110   :  { %846 = vmatpush1.bf16.msra.mxu0 %v6707_v53  ;;  %1607 = vmatpush1.bf16.msra.mxu1 %v6710_v54  ;;  %v6801_v53 = vld [vmem:[#allocation7 + $0x2a4] ss:$8 sps:$4 sm:$0xff]   ;;  %v6804_v54 = vld [vmem:[#allocation7 + $0x5b4] ss:$8 sps:$4 sm:$0xff]  }
 0x111   :  { %847 = vmatprep.subr.bf16.mxu0 %v6715_v55  ;;  %1608 = vmatprep.subr.bf16.mxu1 %v6718_v56  ;;  %v6799_v55 = vld [vmem:[#allocation7 + $0x2a0] ss:$8 sps:$4 sm:$0xff]   ;;  %v6802_v56 = vld [vmem:[#allocation7 + $0x5b0] ss:$8 sps:$4 sm:$0xff]  }
 0x114   :  { %848 = vmatpush1.bf16.msra.mxu0 %v6713_v57  ;;  %1609 = vmatpush1.bf16.msra.mxu1 %v6716_v58  ;;  %v6807_v57 = vld [vmem:[#allocation7 + $0x2b4] ss:$8 sps:$4 sm:$0xff]   ;;  %v6810_v58 = vld [vmem:[#allocation7 + $0x5c4] ss:$8 sps:$4 sm:$0xff]  }
 0x115   :  { %849 = vmatprep.subr.bf16.mxu0 %v6721_v59  ;;  %1610 = vmatprep.subr.bf16.mxu1 %v6724_v60  ;;  %v6805_v59 = vld [vmem:[#allocation7 + $0x2b0] ss:$8 sps:$4 sm:$0xff]   ;;  %v6808_v60 = vld [vmem:[#allocation7 + $0x5c0] ss:$8 sps:$4 sm:$0xff]  }
 0x118   :  { %850 = vmatpush1.bf16.msra.mxu0 %v6719_v61  ;;  %1611 = vmatpush1.bf16.msra.mxu1 %v6722_v62  ;;  %v6813_v61 = vld [vmem:[#allocation7 + $0x2c4] ss:$8 sps:$4 sm:$0xff]   ;;  %v6816_v62 = vld [vmem:[#allocation7 + $0x5d4] ss:$8 sps:$4 sm:$0xff]  }
 0x119   :  { %851 = vmatprep.subr.bf16.mxu0 %v6727_v63  ;;  %1612 = vmatprep.subr.bf16.mxu1 %v6730_v0  ;;  %v6811_v63 = vld [vmem:[#allocation7 + $0x2c0] ss:$8 sps:$4 sm:$0xff]   ;;  %v6814_v0 = vld [vmem:[#allocation7 + $0x5d0] ss:$8 sps:$4 sm:$0xff]  }
 0x11c   :  { %852 = vmatpush1.bf16.msra.mxu0 %v6725_v1  ;;  %1613 = vmatpush1.bf16.msra.mxu1 %v6728_v2  ;;  %v6819_v1 = vld [vmem:[#allocation7 + $0x2d4] ss:$8 sps:$4 sm:$0xff]   ;;  %v6822_v2 = vld [vmem:[#allocation7 + $0x5e4] ss:$8 sps:$4 sm:$0xff]  }
 0x11d   :  { %853 = vmatprep.subr.bf16.mxu0 %v6733_v3  ;;  %1614 = vmatprep.subr.bf16.mxu1 %v6736_v4  ;;  %v6817_v3 = vld [vmem:[#allocation7 + $0x2d0] ss:$8 sps:$4 sm:$0xff]   ;;  %v6820_v4 = vld [vmem:[#allocation7 + $0x5e0] ss:$8 sps:$4 sm:$0xff]  }
 0x120   :  { %854 = vmatpush1.bf16.msra.mxu0 %v6731_v5  ;;  %1615 = vmatpush1.bf16.msra.mxu1 %v6734_v7  ;;  %v6825_v5 = vld [vmem:[#allocation7 + $0x2e4] ss:$8 sps:$4 sm:$0xff]   ;;  %v6828_v7 = vld [vmem:[#allocation7 + $0x5f4] ss:$8 sps:$4 sm:$0xff]  }
 0x121   :  { %864 = vmatprep.subr.bf16.mxu0 %v6740_v8  ;;  %1625 = vmatprep.subr.bf16.mxu1 %v6743_v9  ;;  %v6823_v8 = vld [vmem:[#allocation7 + $0x2e0] ss:$8 sps:$4 sm:$0xff]   ;;  %v6826_v9 = vld [vmem:[#allocation7 + $0x5f0] ss:$8 sps:$4 sm:$0xff]  }
 0x123   :  { %856 = vmatmul.mubr.bf16.vlgmr.msra.gmra.mrb[0].mxu0 %v7957_v11  ;;  %1617 = vmatmul.mubr.bf16.vlgmr.msra.gmra.mrb[0].mxu1 %v7957_v11 }
 0x124   :  { %865 = vmatpush1.bf16.msra.mxu0 %v6738_v10  ;;  %1626 = vmatpush1.bf16.msra.mxu1 %v6741_v12  ;;  %v6831_v10 = vld [vmem:[#allocation7 + $0x2f4] ss:$8 sps:$4 sm:$0xff]   ;;  %v6834_v12 = vld [vmem:[#allocation7 + $0x604] ss:$8 sps:$4 sm:$0xff]  }
 0x125   :  { %866 = vmatprep.subr.bf16.mxu0 %v6747_v13  ;;  %1627 = vmatprep.subr.bf16.mxu1 %v6750_v15  ;;  %v6829_v13 = vld [vmem:[#allocation7 + $0x2f0] ss:$8 sps:$4 sm:$0xff]   ;;  %v6832_v15 = vld [vmem:[#allocation7 + $0x600] ss:$8 sps:$4 sm:$0xff]  }
 0x126   :  { %896 = vmatprep.mubr.bf16.mxu0 %v7963_v16  ;;  %1657 = vmatprep.mubr.bf16.mxu1 %v7963_v16 }
 0x128   :  { %867 = vmatpush1.bf16.msra.mxu0 %v6745_v17  ;;  %1628 = vmatpush1.bf16.msra.mxu1 %v6748_v18  ;;  %v6839_v17 = vld [vmem:[#allocation7 + $0x304] ss:$8 sps:$4 sm:$0xff]   ;;  %v6842_v18 = vld [vmem:[#allocation7 + $0x614] ss:$8 sps:$4 sm:$0xff]  }
 0x129   :  { %868 = vmatprep.subr.bf16.mxu0 %v6753_v19  ;;  %1629 = vmatprep.subr.bf16.mxu1 %v6756_v20  ;;  %v7971_v19 = vcombine.low %v7959_v14, %v7959_v14  ;;  %v6837_v20 = vld [vmem:[#allocation7 + $0x300] ss:$8 sps:$4 sm:$0xff]  }
 0x12a   :  { %v6843_v14 = vld [vmem:[#allocation7 + $0x620] ss:$8 sps:$4 sm:$0xff]  }
 0x12c   :  { %869 = vmatpush1.bf16.msra.mxu0 %v6751_v21  ;;  %1630 = vmatpush1.bf16.msra.mxu1 %v6754_v22  ;;  %v6840_v21 = vld [vmem:[#allocation7 + $0x610] ss:$8 sps:$4 sm:$0xff]   ;;  %v6845_v22 = vld [vmem:[#allocation7 + $0x624] ss:$8 sps:$4 sm:$0xff]  }
 0x12d   :  { %870 = vmatprep.subr.bf16.mxu0 %v6759_v23  ;;  %1631 = vmatprep.subr.bf16.mxu1 %v6762_v24  ;;  %v6848_v23 = vld [vmem:[#allocation7 + $0x934] ss:$8 sps:$4 sm:$0xff]   ;;  %v7752_v24 = vmov 0  }
 0x130   :  { %871 = vmatpush1.bf16.msra.mxu0 %v6757_v25  ;;  %1632 = vmatpush1.bf16.msra.mxu1 %v6760_v26  ;;  %v6849_v25 = vld [vmem:[#allocation3 + $0x18] ss:$0 sps:$4 sm:$0xff]  }
 0x131   :  { %872 = vmatprep.subr.bf16.mxu0 %v6765_v27  ;;  %1633 = vmatprep.subr.bf16.mxu1 %v6768_v28  ;;  %v6846_v26 = vld [vmem:[#allocation7 + $0x930] ss:$8 sps:$4 sm:$0xff]   ;;  %v6852_v27 = vld [vmem:[#allocation7 + $0x634] ss:$8 sps:$4 sm:$0xff]   ;;  %v6855_v28 = vld [vmem:[#allocation7 + $0x944] ss:$8 sps:$4 sm:$0xff]  }
 0x134   :  { %873 = vmatpush1.bf16.msra.mxu0 %v6763_v29  ;;  %1634 = vmatpush1.bf16.msra.mxu1 %v6766_v30  ;;  %v6850_v29 = vld [vmem:[#allocation7 + $0x630] ss:$8 sps:$4 sm:$0xff]   ;;  %v6853_v30 = vld [vmem:[#allocation7 + $0x940] ss:$8 sps:$4 sm:$0xff]  }
 0x135   :  { %874 = vmatprep.subr.bf16.mxu0 %v6771_v32  ;;  %1635 = vmatprep.subr.bf16.mxu1 %v6774_v33  ;;  %v6858_v32 = vld [vmem:[#allocation7 + $0x644] ss:$8 sps:$4 sm:$0xff]   ;;  %v6861_v33 = vld [vmem:[#allocation7 + $0x954] ss:$8 sps:$4 sm:$0xff]  }
 0x138   :  { %875 = vmatpush1.bf16.msra.mxu0 %v6769_v34  ;;  %1636 = vmatpush1.bf16.msra.mxu1 %v6772_v35  ;;  %v6856_v34 = vld [vmem:[#allocation7 + $0x640] ss:$8 sps:$4 sm:$0xff]   ;;  %v6859_v35 = vld [vmem:[#allocation7 + $0x950] ss:$8 sps:$4 sm:$0xff]  }
 0x139   :  { %876 = vmatprep.subr.bf16.mxu0 %v6777_v36  ;;  %1637 = vmatprep.subr.bf16.mxu1 %v6780_v37  ;;  %v6864_v36 = vld [vmem:[#allocation7 + $0x654] ss:$8 sps:$4 sm:$0xff]   ;;  %v6867_v37 = vld [vmem:[#allocation7 + $0x964] ss:$8 sps:$4 sm:$0xff]  }
 0x13c   :  { %877 = vmatpush1.bf16.msra.mxu0 %v6775_v38  ;;  %1638 = vmatpush1.bf16.msra.mxu1 %v6778_v39  ;;  %v6862_v38 = vld [vmem:[#allocation7 + $0x650] ss:$8 sps:$4 sm:$0xff]   ;;  %v6865_v39 = vld [vmem:[#allocation7 + $0x960] ss:$8 sps:$4 sm:$0xff]  }
 0x13d   :  { %878 = vmatprep.subr.bf16.mxu0 %v6783_v40  ;;  %1639 = vmatprep.subr.bf16.mxu1 %v6786_v41  ;;  %v6870_v40 = vld [vmem:[#allocation7 + $0x664] ss:$8 sps:$4 sm:$0xff]   ;;  %v6873_v41 = vld [vmem:[#allocation7 + $0x974] ss:$8 sps:$4 sm:$0xff]  }
 0x140   :  { %879 = vmatpush1.bf16.msra.mxu0 %v6781_v42  ;;  %1640 = vmatpush1.bf16.msra.mxu1 %v6784_v43  ;;  %v6868_v42 = vld [vmem:[#allocation7 + $0x660] ss:$8 sps:$4 sm:$0xff]   ;;  %v6871_v43 = vld [vmem:[#allocation7 + $0x970] ss:$8 sps:$4 sm:$0xff]  }
 0x141   :  { %880 = vmatprep.subr.bf16.mxu0 %v6789_v44  ;;  %1641 = vmatprep.subr.bf16.mxu1 %v6792_v45  ;;  %v6876_v44 = vld [vmem:[#allocation7 + $0x674] ss:$8 sps:$4 sm:$0xff]   ;;  %v6879_v45 = vld [vmem:[#allocation7 + $0x984] ss:$8 sps:$4 sm:$0xff]  }
 0x144   :  { %881 = vmatpush1.bf16.msra.mxu0 %v6787_v46  ;;  %1642 = vmatpush1.bf16.msra.mxu1 %v6790_v47  ;;  %v6874_v46 = vld [vmem:[#allocation7 + $0x670] ss:$8 sps:$4 sm:$0xff]   ;;  %v6877_v47 = vld [vmem:[#allocation7 + $0x980] ss:$8 sps:$4 sm:$0xff]  }
 0x145   :  { %882 = vmatprep.subr.bf16.mxu0 %v6795_v48  ;;  %1643 = vmatprep.subr.bf16.mxu1 %v6798_v50  ;;  %v6882_v48 = vld [vmem:[#allocation7 + $0x684] ss:$8 sps:$4 sm:$0xff]   ;;  %v6885_v50 = vld [vmem:[#allocation7 + $0x994] ss:$8 sps:$4 sm:$0xff]  }
 0x148   :  { %883 = vmatpush1.bf16.msra.mxu0 %v6793_v51  ;;  %1644 = vmatpush1.bf16.msra.mxu1 %v6796_v52  ;;  %v6880_v51 = vld [vmem:[#allocation7 + $0x680] ss:$8 sps:$4 sm:$0xff]   ;;  %v6883_v52 = vld [vmem:[#allocation7 + $0x990] ss:$8 sps:$4 sm:$0xff]  }
 0x149   :  { %884 = vmatprep.subr.bf16.mxu0 %v6801_v53  ;;  %1645 = vmatprep.subr.bf16.mxu1 %v6804_v54  ;;  %v6888_v53 = vld [vmem:[#allocation7 + $0x694] ss:$8 sps:$4 sm:$0xff]   ;;  %v6891_v54 = vld [vmem:[#allocation7 + $0x9a4] ss:$8 sps:$4 sm:$0xff]  }
 0x14c   :  { %885 = vmatpush1.bf16.msra.mxu0 %v6799_v55  ;;  %1646 = vmatpush1.bf16.msra.mxu1 %v6802_v56  ;;  %v6886_v55 = vld [vmem:[#allocation7 + $0x690] ss:$8 sps:$4 sm:$0xff]   ;;  %v6889_v56 = vld [vmem:[#allocation7 + $0x9a0] ss:$8 sps:$4 sm:$0xff]  }
 0x14d   :  { %886 = vmatprep.subr.bf16.mxu0 %v6807_v57  ;;  %1647 = vmatprep.subr.bf16.mxu1 %v6810_v58  ;;  %v6894_v57 = vld [vmem:[#allocation7 + $0x6a4] ss:$8 sps:$4 sm:$0xff]   ;;  %v6897_v58 = vld [vmem:[#allocation7 + $0x9b4] ss:$8 sps:$4 sm:$0xff]  }
 0x150   :  { %887 = vmatpush1.bf16.msra.mxu0 %v6805_v59  ;;  %1648 = vmatpush1.bf16.msra.mxu1 %v6808_v60  ;;  %v6892_v59 = vld [vmem:[#allocation7 + $0x6a0] ss:$8 sps:$4 sm:$0xff]   ;;  %v6895_v60 = vld [vmem:[#allocation7 + $0x9b0] ss:$8 sps:$4 sm:$0xff]  }
 0x151   :  { %888 = vmatprep.subr.bf16.mxu0 %v6813_v61  ;;  %1649 = vmatprep.subr.bf16.mxu1 %v6816_v62  ;;  %v6900_v61 = vld [vmem:[#allocation7 + $0x6b4] ss:$8 sps:$4 sm:$0xff]   ;;  %v6903_v62 = vld [vmem:[#allocation7 + $0x9c4] ss:$8 sps:$4 sm:$0xff]  }
 0x154   :  { %889 = vmatpush1.bf16.msra.mxu0 %v6811_v63  ;;  %1650 = vmatpush1.bf16.msra.mxu1 %v6814_v0  ;;  %v6898_v63 = vld [vmem:[#allocation7 + $0x6b0] ss:$8 sps:$4 sm:$0xff]   ;;  %v6901_v0 = vld [vmem:[#allocation7 + $0x9c0] ss:$8 sps:$4 sm:$0xff]  }
 0x155   :  { %890 = vmatprep.subr.bf16.mxu0 %v6819_v1  ;;  %1651 = vmatprep.subr.bf16.mxu1 %v6822_v2  ;;  %v6906_v1 = vld [vmem:[#allocation7 + $0x6c4] ss:$8 sps:$4 sm:$0xff]   ;;  %v6909_v2 = vld [vmem:[#allocation7 + $0x9d4] ss:$8 sps:$4 sm:$0xff]  }
 0x158   :  { %891 = vmatpush1.bf16.msra.mxu0 %v6817_v3  ;;  %1652 = vmatpush1.bf16.msra.mxu1 %v6820_v4  ;;  %v6904_v3 = vld [vmem:[#allocation7 + $0x6c0] ss:$8 sps:$4 sm:$0xff]   ;;  %v6907_v4 = vld [vmem:[#allocation7 + $0x9d0] ss:$8 sps:$4 sm:$0xff]  }
 0x159   :  { %892 = vmatprep.subr.bf16.mxu0 %v6825_v5  ;;  %1653 = vmatprep.subr.bf16.mxu1 %v6828_v7  ;;  %v6912_v5 = vld [vmem:[#allocation7 + $0x6d4] ss:$8 sps:$4 sm:$0xff]   ;;  %v6915_v7 = vld [vmem:[#allocation7 + $0x9e4] ss:$8 sps:$4 sm:$0xff]  }
 0x15c   :  { %893 = vmatpush1.bf16.msra.mxu0 %v6823_v8  ;;  %1654 = vmatpush1.bf16.msra.mxu1 %v6826_v9  ;;  %v6910_v8 = vld [vmem:[#allocation7 + $0x6d0] ss:$8 sps:$4 sm:$0xff]   ;;  %v6913_v9 = vld [vmem:[#allocation7 + $0x9e0] ss:$8 sps:$4 sm:$0xff]  }
 0x15d   :  { %894 = vmatprep.subr.bf16.mxu0 %v6831_v10  ;;  %1655 = vmatprep.subr.bf16.mxu1 %v6834_v12  ;;  %v6918_v10 = vld [vmem:[#allocation7 + $0x6e4] ss:$8 sps:$4 sm:$0xff]   ;;  %v6921_v12 = vld [vmem:[#allocation7 + $0x9f4] ss:$8 sps:$4 sm:$0xff]  }
 0x160   :  { %895 = vmatpush1.bf16.msra.mxu0 %v6829_v13  ;;  %1656 = vmatpush1.bf16.msra.mxu1 %v6832_v15  ;;  %v6916_v13 = vld [vmem:[#allocation7 + $0x6e0] ss:$8 sps:$4 sm:$0xff]   ;;  %v6919_v15 = vld [vmem:[#allocation7 + $0x9f0] ss:$8 sps:$4 sm:$0xff]  }
 0x161   :  { %905 = vmatprep.subr.bf16.mxu0 %v6839_v17  ;;  %1666 = vmatprep.subr.bf16.mxu1 %v6842_v18  ;;  %v6924_v17 = vld [vmem:[#allocation7 + $0x6f4] ss:$8 sps:$4 sm:$0xff]   ;;  %v6927_v18 = vld [vmem:[#allocation7 + $0xa04] ss:$8 sps:$4 sm:$0xff]  }
 0x163   :  { %897 = vmatmul.mubr.bf16.vlgmr.msra.gmra.mrb[0].mxu0 %v7971_v19  ;;  %1658 = vmatmul.mubr.bf16.vlgmr.msra.gmra.mrb[0].mxu1 %v7971_v19 }
 0x164   :  { %906 = vmatpush1.bf16.msra.mxu0 %v6837_v20  ;;  %1667 = vmatpush1.bf16.msra.mxu1 %v6840_v21  ;;  %v6922_v20 = vld [vmem:[#allocation7 + $0x6f0] ss:$8 sps:$4 sm:$0xff]   ;;  %v6925_v21 = vld [vmem:[#allocation7 + $0xa00] ss:$8 sps:$4 sm:$0xff]  }
 0x165   :  { %937 = vmatprep.mubr.bf16.mxu0 %v7752_v24  ;;  %1698 = vmatprep.mubr.bf16.mxu1 %v7752_v24 }
 0x166   :  { %2306 = vmatprep.subr.bf16.mxu0 %v6845_v22  ;;  %3069 = vmatprep.subr.bf16.mxu1 %v6848_v23  ;;  %v6930_v22 = vld [vmem:[#allocation7 + $0x704] ss:$8 sps:$4 sm:$0xff]   ;;  %v6933_v23 = vld [vmem:[#allocation7 + $0xa14] ss:$8 sps:$4 sm:$0xff]  }
 0x16f   :  { %5819 = vmatmul.mubr.msk.bf16.vlgmr.msra.gmra.mrb[0].mxu0 %vm778_vm0, %v6849_v25  ;;  %5918 = vmatmul.mubr.msk.bf16.vlgmr.msra.gmra.mrb[0].mxu1 %vm778_vm0, %v6849_v25  ;;  %v6931_v25 = vld [vmem:[#allocation7 + $0xa10] ss:$8 sps:$4 sm:$0xff]  }
 0x170   :  { %2307 = vmatpush1.bf16.msra.mxu0 %v6843_v14  ;;  %3070 = vmatpush1.bf16.msra.mxu1 %v6846_v26  ;;  %v6928_v14 = vld [vmem:[#allocation7 + $0x700] ss:$8 sps:$4 sm:$0xff]   ;;  %v6936_v26 = vld [vmem:[#allocation7 + $0x714] ss:$8 sps:$4 sm:$0xff]  }
 0x171   :  { %2308 = vmatprep.subr.bf16.mxu0 %v6852_v27  ;;  %3071 = vmatprep.subr.bf16.mxu1 %v6855_v28  ;;  %v6939_v27 = vld [vmem:[#allocation7 + $0xa24] ss:$8 sps:$4 sm:$0xff]   ;;  %v6934_v28 = vld [vmem:[#allocation7 + $0x710] ss:$8 sps:$4 sm:$0xff]  }
 0x172   :  { %2338 = vmatprep.mubr.bf16.mxu0 %v7939_v49  ;;  %3101 = vmatprep.mubr.bf16.mxu1 %v7939_v49 }
 0x174   :  { %2309 = vmatpush1.bf16.msra.mxu0 %v6850_v29  ;;  %3072 = vmatpush1.bf16.msra.mxu1 %v6853_v30  ;;  %v6937_v29 = vld [vmem:[#allocation7 + $0xa20] ss:$8 sps:$4 sm:$0xff]   ;;  %v6942_v30 = vld [vmem:[#allocation7 + $0x724] ss:$8 sps:$4 sm:$0xff]  }
 0x175   :  { %2310 = vmatprep.subr.bf16.mxu0 %v6858_v32  ;;  %3073 = vmatprep.subr.bf16.mxu1 %v6861_v33  ;;  %v6945_v32 = vld [vmem:[#allocation7 + $0xa34] ss:$8 sps:$4 sm:$0xff]   ;;  %v6940_v33 = vld [vmem:[#allocation7 + $0x720] ss:$8 sps:$4 sm:$0xff]  }
 0x178   :  { %2311 = vmatpush1.bf16.msra.mxu0 %v6856_v34  ;;  %3074 = vmatpush1.bf16.msra.mxu1 %v6859_v35  ;;  %v6943_v34 = vld [vmem:[#allocation7 + $0xa30] ss:$8 sps:$4 sm:$0xff]   ;;  %v6948_v35 = vld [vmem:[#allocation7 + $0x734] ss:$8 sps:$4 sm:$0xff]  }
 0x179   :  { %2312 = vmatprep.subr.bf16.mxu0 %v6864_v36  ;;  %3075 = vmatprep.subr.bf16.mxu1 %v6867_v37  ;;  %v6951_v36 = vld [vmem:[#allocation7 + $0xa44] ss:$8 sps:$4 sm:$0xff]   ;;  %v6946_v37 = vld [vmem:[#allocation7 + $0x730] ss:$8 sps:$4 sm:$0xff]  }
 0x17c   :  { %2313 = vmatpush1.bf16.msra.mxu0 %v6862_v38  ;;  %3076 = vmatpush1.bf16.msra.mxu1 %v6865_v39  ;;  %v6949_v38 = vld [vmem:[#allocation7 + $0xa40] ss:$8 sps:$4 sm:$0xff]   ;;  %v6954_v39 = vld [vmem:[#allocation7 + $0x744] ss:$8 sps:$4 sm:$0xff]  }
 0x17d   :  { %2314 = vmatprep.subr.bf16.mxu0 %v6870_v40  ;;  %3077 = vmatprep.subr.bf16.mxu1 %v6873_v41  ;;  %v6957_v40 = vld [vmem:[#allocation7 + $0xa54] ss:$8 sps:$4 sm:$0xff]   ;;  %v6952_v41 = vld [vmem:[#allocation7 + $0x740] ss:$8 sps:$4 sm:$0xff]  }
 0x180   :  { %2315 = vmatpush1.bf16.msra.mxu0 %v6868_v42  ;;  %3078 = vmatpush1.bf16.msra.mxu1 %v6871_v43  ;;  %v6955_v42 = vld [vmem:[#allocation7 + $0xa50] ss:$8 sps:$4 sm:$0xff]   ;;  %v6960_v43 = vld [vmem:[#allocation7 + $0x754] ss:$8 sps:$4 sm:$0xff]  }
 0x181   :  { %2316 = vmatprep.subr.bf16.mxu0 %v6876_v44  ;;  %3079 = vmatprep.subr.bf16.mxu1 %v6879_v45  ;;  %v6963_v44 = vld [vmem:[#allocation7 + $0xa64] ss:$8 sps:$4 sm:$0xff]   ;;  %v6958_v45 = vld [vmem:[#allocation7 + $0x750] ss:$8 sps:$4 sm:$0xff]  }
 0x184   :  { %2317 = vmatpush1.bf16.msra.mxu0 %v6874_v46  ;;  %3080 = vmatpush1.bf16.msra.mxu1 %v6877_v47  ;;  %v6961_v46 = vld [vmem:[#allocation7 + $0xa60] ss:$8 sps:$4 sm:$0xff]   ;;  %v6966_v47 = vld [vmem:[#allocation7 + $0x764] ss:$8 sps:$4 sm:$0xff]  }
 0x185   :  { %2318 = vmatprep.subr.bf16.mxu0 %v6882_v48  ;;  %3081 = vmatprep.subr.bf16.mxu1 %v6885_v50  ;;  %v6969_v48 = vld [vmem:[#allocation7 + $0xa74] ss:$8 sps:$4 sm:$0xff]   ;;  %v6964_v50 = vld [vmem:[#allocation7 + $0x760] ss:$8 sps:$4 sm:$0xff]  }
 0x188   :  { %2319 = vmatpush1.bf16.msra.mxu0 %v6880_v51  ;;  %3082 = vmatpush1.bf16.msra.mxu1 %v6883_v52  ;;  %v6967_v51 = vld [vmem:[#allocation7 + $0xa70] ss:$8 sps:$4 sm:$0xff]   ;;  %v6972_v52 = vld [vmem:[#allocation7 + $0x774] ss:$8 sps:$4 sm:$0xff]  }
 0x189   :  { %2320 = vmatprep.subr.bf16.mxu0 %v6888_v53  ;;  %3083 = vmatprep.subr.bf16.mxu1 %v6891_v54  ;;  %v6975_v53 = vld [vmem:[#allocation7 + $0xa84] ss:$8 sps:$4 sm:$0xff]   ;;  %v6970_v54 = vld [vmem:[#allocation7 + $0x770] ss:$8 sps:$4 sm:$0xff]  }
 0x18c   :  { %2321 = vmatpush1.bf16.msra.mxu0 %v6886_v55  ;;  %3084 = vmatpush1.bf16.msra.mxu1 %v6889_v56  ;;  %v6973_v55 = vld [vmem:[#allocation7 + $0xa80] ss:$8 sps:$4 sm:$0xff]   ;;  %v6978_v56 = vld [vmem:[#allocation7 + $0x784] ss:$8 sps:$4 sm:$0xff]  }
 0x18d   :  { %2322 = vmatprep.subr.bf16.mxu0 %v6894_v57  ;;  %3085 = vmatprep.subr.bf16.mxu1 %v6897_v58  ;;  %v6981_v57 = vld [vmem:[#allocation7 + $0xa94] ss:$8 sps:$4 sm:$0xff]   ;;  %v6976_v58 = vld [vmem:[#allocation7 + $0x780] ss:$8 sps:$4 sm:$0xff]  }
 0x190   :  { %2323 = vmatpush1.bf16.msra.mxu0 %v6892_v59  ;;  %3086 = vmatpush1.bf16.msra.mxu1 %v6895_v60  ;;  %v6979_v59 = vld [vmem:[#allocation7 + $0xa90] ss:$8 sps:$4 sm:$0xff]   ;;  %v6984_v60 = vld [vmem:[#allocation7 + $0x794] ss:$8 sps:$4 sm:$0xff]  }
 0x191   :  { %2324 = vmatprep.subr.bf16.mxu0 %v6900_v61  ;;  %3087 = vmatprep.subr.bf16.mxu1 %v6903_v62  ;;  %v6987_v61 = vld [vmem:[#allocation7 + $0xaa4] ss:$8 sps:$4 sm:$0xff]   ;;  %v6982_v62 = vld [vmem:[#allocation7 + $0x790] ss:$8 sps:$4 sm:$0xff]  }
 0x194   :  { %2325 = vmatpush1.bf16.msra.mxu0 %v6898_v63  ;;  %3088 = vmatpush1.bf16.msra.mxu1 %v6901_v0  ;;  %v6985_v63 = vld [vmem:[#allocation7 + $0xaa0] ss:$8 sps:$4 sm:$0xff]   ;;  %v6990_v0 = vld [vmem:[#allocation7 + $0x7a4] ss:$8 sps:$4 sm:$0xff]  }
 0x195   :  { %2326 = vmatprep.subr.bf16.mxu0 %v6906_v1  ;;  %3089 = vmatprep.subr.bf16.mxu1 %v6909_v2  ;;  %v6993_v1 = vld [vmem:[#allocation7 + $0xab4] ss:$8 sps:$4 sm:$0xff]   ;;  %v6988_v2 = vld [vmem:[#allocation7 + $0x7a0] ss:$8 sps:$4 sm:$0xff]  }
 0x198   :  { %2327 = vmatpush1.bf16.msra.mxu0 %v6904_v3  ;;  %3090 = vmatpush1.bf16.msra.mxu1 %v6907_v4  ;;  %v6991_v3 = vld [vmem:[#allocation7 + $0xab0] ss:$8 sps:$4 sm:$0xff]   ;;  %v6996_v4 = vld [vmem:[#allocation7 + $0x7b4] ss:$8 sps:$4 sm:$0xff]  }
 0x199   :  { %2328 = vmatprep.subr.bf16.mxu0 %v6912_v5  ;;  %3091 = vmatprep.subr.bf16.mxu1 %v6915_v7  ;;  %v6999_v5 = vld [vmem:[#allocation7 + $0xac4] ss:$8 sps:$4 sm:$0xff]   ;;  %v6994_v7 = vld [vmem:[#allocation7 + $0x7b0] ss:$8 sps:$4 sm:$0xff]  }
 0x19c   :  { %2329 = vmatpush1.bf16.msra.mxu0 %v6910_v8  ;;  %3092 = vmatpush1.bf16.msra.mxu1 %v6913_v9  ;;  %v6997_v8 = vld [vmem:[#allocation7 + $0xac0] ss:$8 sps:$4 sm:$0xff]   ;;  %v7002_v9 = vld [vmem:[#allocation7 + $0x7c4] ss:$8 sps:$4 sm:$0xff]  }
 0x19d   :  { %2330 = vmatprep.subr.bf16.mxu0 %v6918_v10  ;;  %3093 = vmatprep.subr.bf16.mxu1 %v6921_v12  ;;  %v7005_v10 = vld [vmem:[#allocation7 + $0xad4] ss:$8 sps:$4 sm:$0xff]   ;;  %v7000_v12 = vld [vmem:[#allocation7 + $0x7c0] ss:$8 sps:$4 sm:$0xff]  }
 0x1a0   :  { %2331 = vmatpush1.bf16.msra.mxu0 %v6916_v13  ;;  %3094 = vmatpush1.bf16.msra.mxu1 %v6919_v15  ;;  %v7003_v13 = vld [vmem:[#allocation7 + $0xad0] ss:$8 sps:$4 sm:$0xff]   ;;  %v7008_v15 = vld [vmem:[#allocation7 + $0x7d4] ss:$8 sps:$4 sm:$0xff]  }
 0x1a1   :  { %2332 = vmatprep.subr.bf16.mxu0 %v6924_v17  ;;  %3095 = vmatprep.subr.bf16.mxu1 %v6927_v18  ;;  %v7011_v17 = vld [vmem:[#allocation7 + $0xae4] ss:$8 sps:$4 sm:$0xff]   ;;  %v7006_v18 = vld [vmem:[#allocation7 + $0x7d0] ss:$8 sps:$4 sm:$0xff]  }
 0x1a4   :  { %2333 = vmatpush1.bf16.msra.mxu0 %v6922_v20  ;;  %3096 = vmatpush1.bf16.msra.mxu1 %v6925_v21  ;;  %v7009_v20 = vld [vmem:[#allocation7 + $0xae0] ss:$8 sps:$4 sm:$0xff]   ;;  %v7014_v21 = vld [vmem:[#allocation7 + $0x7e4] ss:$8 sps:$4 sm:$0xff]  }
 0x1a5   :  { %2334 = vmatprep.subr.bf16.mxu0 %v6930_v22  ;;  %3097 = vmatprep.subr.bf16.mxu1 %v6933_v23  ;;  %v7017_v22 = vld [vmem:[#allocation7 + $0xaf4] ss:$8 sps:$4 sm:$0xff]   ;;  %v7012_v23 = vld [vmem:[#allocation7 + $0x7e0] ss:$8 sps:$4 sm:$0xff]  }
 0x1a8   :  { %2335 = vmatpush1.bf16.msra.mxu0 %v6928_v14  ;;  %3098 = vmatpush1.bf16.msra.mxu1 %v6931_v25  ;;  %v7015_v14 = vld [vmem:[#allocation7 + $0xaf0] ss:$8 sps:$4 sm:$0xff]   ;;  %v7020_v25 = vld [vmem:[#allocation7 + $0x7f4] ss:$8 sps:$4 sm:$0xff]  }
 0x1a9   :  { %2336 = vmatprep.subr.bf16.mxu0 %v6936_v26  ;;  %3099 = vmatprep.subr.bf16.mxu1 %v6939_v27  ;;  %v7023_v26 = vld [vmem:[#allocation7 + $0xb04] ss:$8 sps:$4 sm:$0xff]   ;;  %v7018_v27 = vld [vmem:[#allocation7 + $0x7f0] ss:$8 sps:$4 sm:$0xff]  }
 0x1ac   :  { %2337 = vmatpush1.bf16.msra.mxu0 %v6934_v28  ;;  %3100 = vmatpush1.bf16.msra.mxu1 %v6937_v29  ;;  %v7021_v28 = vld [vmem:[#allocation7 + $0xb00] ss:$8 sps:$4 sm:$0xff]   ;;  %v7026_v29 = vld [vmem:[#allocation7 + $0x804] ss:$8 sps:$4 sm:$0xff]  }
 0x1ad   :  { %2347 = vmatprep.subr.bf16.mxu0 %v6942_v30  ;;  %3110 = vmatprep.subr.bf16.mxu1 %v6945_v32  ;;  %v7029_v30 = vld [vmem:[#allocation7 + $0xb14] ss:$8 sps:$4 sm:$0xff]   ;;  %v7024_v32 = vld [vmem:[#allocation7 + $0x800] ss:$8 sps:$4 sm:$0xff]  }
 0x1af   :  { %2339 = vmatmul.mubr.bf16.vlgmr.msra.gmra.mrb[4].mxu0 %v7943_v6  ;;  %3102 = vmatmul.mubr.bf16.vlgmr.msra.gmra.mrb[4].mxu1 %v7943_v6 }
 0x1b0   :  { %2348 = vmatpush1.bf16.msra.mxu0 %v6940_v33  ;;  %3111 = vmatpush1.bf16.msra.mxu1 %v6943_v34  ;;  %v7027_v33 = vld [vmem:[#allocation7 + $0xb10] ss:$8 sps:$4 sm:$0xff]   ;;  %v7032_v34 = vld [vmem:[#allocation7 + $0x814] ss:$8 sps:$4 sm:$0xff]  }
 0x1b1   :  { %2349 = vmatprep.subr.bf16.mxu0 %v6948_v35  ;;  %3112 = vmatprep.subr.bf16.mxu1 %v6951_v36  ;;  %v7035_v35 = vld [vmem:[#allocation7 + $0xb24] ss:$8 sps:$4 sm:$0xff]   ;;  %v7030_v36 = vld [vmem:[#allocation7 + $0x810] ss:$8 sps:$4 sm:$0xff]  }
 0x1b2   :  { %2379 = vmatprep.mubr.bf16.mxu0 %v7951_v31  ;;  %3142 = vmatprep.mubr.bf16.mxu1 %v7951_v31 }
 0x1b4   :  { %2350 = vmatpush1.bf16.msra.mxu0 %v6946_v37  ;;  %3113 = vmatpush1.bf16.msra.mxu1 %v6949_v38  ;;  %v7033_v37 = vld [vmem:[#allocation7 + $0xb20] ss:$8 sps:$4 sm:$0xff]   ;;  %v7038_v38 = vld [vmem:[#allocation7 + $0x824] ss:$8 sps:$4 sm:$0xff]  }
 0x1b5   :  { %2351 = vmatprep.subr.bf16.mxu0 %v6954_v39  ;;  %3114 = vmatprep.subr.bf16.mxu1 %v6957_v40  ;;  %v7041_v39 = vld [vmem:[#allocation7 + $0xb34] ss:$8 sps:$4 sm:$0xff]   ;;  %v7036_v40 = vld [vmem:[#allocation7 + $0x820] ss:$8 sps:$4 sm:$0xff]  }
 0x1b8   :  { %2352 = vmatpush1.bf16.msra.mxu0 %v6952_v41  ;;  %3115 = vmatpush1.bf16.msra.mxu1 %v6955_v42  ;;  %v7039_v41 = vld [vmem:[#allocation7 + $0xb30] ss:$8 sps:$4 sm:$0xff]   ;;  %v7044_v42 = vld [vmem:[#allocation7 + $0x834] ss:$8 sps:$4 sm:$0xff]  }
 0x1b9   :  { %2353 = vmatprep.subr.bf16.mxu0 %v6960_v43  ;;  %3116 = vmatprep.subr.bf16.mxu1 %v6963_v44  ;;  %v7047_v43 = vld [vmem:[#allocation7 + $0xb44] ss:$8 sps:$4 sm:$0xff]   ;;  %v7042_v44 = vld [vmem:[#allocation7 + $0x830] ss:$8 sps:$4 sm:$0xff]  }
 0x1bc   :  { %2354 = vmatpush1.bf16.msra.mxu0 %v6958_v45  ;;  %3117 = vmatpush1.bf16.msra.mxu1 %v6961_v46  ;;  %v7045_v45 = vld [vmem:[#allocation7 + $0xb40] ss:$8 sps:$4 sm:$0xff]   ;;  %v7050_v46 = vld [vmem:[#allocation7 + $0x844] ss:$8 sps:$4 sm:$0xff]  }
 0x1bd   :  { %2355 = vmatprep.subr.bf16.mxu0 %v6966_v47  ;;  %3118 = vmatprep.subr.bf16.mxu1 %v6969_v48  ;;  %v7053_v47 = vld [vmem:[#allocation7 + $0xb54] ss:$8 sps:$4 sm:$0xff]   ;;  %v7048_v48 = vld [vmem:[#allocation7 + $0x840] ss:$8 sps:$4 sm:$0xff]  }
 0x1c0   :  { %2356 = vmatpush1.bf16.msra.mxu0 %v6964_v50  ;;  %3119 = vmatpush1.bf16.msra.mxu1 %v6967_v51  ;;  %v7051_v50 = vld [vmem:[#allocation7 + $0xb50] ss:$8 sps:$4 sm:$0xff]   ;;  %v7056_v51 = vld [vmem:[#allocation7 + $0x854] ss:$8 sps:$4 sm:$0xff]  }
 0x1c1   :  { %2357 = vmatprep.subr.bf16.mxu0 %v6972_v52  ;;  %3120 = vmatprep.subr.bf16.mxu1 %v6975_v53  ;;  %v7059_v52 = vld [vmem:[#allocation7 + $0xb64] ss:$8 sps:$4 sm:$0xff]   ;;  %v7054_v53 = vld [vmem:[#allocation7 + $0x850] ss:$8 sps:$4 sm:$0xff]  }
 0x1c4   :  { %2358 = vmatpush1.bf16.msra.mxu0 %v6970_v54  ;;  %3121 = vmatpush1.bf16.msra.mxu1 %v6973_v55  ;;  %v7057_v54 = vld [vmem:[#allocation7 + $0xb60] ss:$8 sps:$4 sm:$0xff]   ;;  %v7062_v55 = vld [vmem:[#allocation7 + $0x864] ss:$8 sps:$4 sm:$0xff]  }
 0x1c5   :  { %2359 = vmatprep.subr.bf16.mxu0 %v6978_v56  ;;  %3122 = vmatprep.subr.bf16.mxu1 %v6981_v57  ;;  %v7065_v56 = vld [vmem:[#allocation7 + $0xb74] ss:$8 sps:$4 sm:$0xff]   ;;  %v7060_v57 = vld [vmem:[#allocation7 + $0x860] ss:$8 sps:$4 sm:$0xff]  }
 0x1c8   :  { %2360 = vmatpush1.bf16.msra.mxu0 %v6976_v58  ;;  %3123 = vmatpush1.bf16.msra.mxu1 %v6979_v59  ;;  %v7063_v58 = vld [vmem:[#allocation7 + $0xb70] ss:$8 sps:$4 sm:$0xff]   ;;  %v7068_v59 = vld [vmem:[#allocation7 + $0x874] ss:$8 sps:$4 sm:$0xff]  }
 0x1c9   :  { %2361 = vmatprep.subr.bf16.mxu0 %v6984_v60  ;;  %3124 = vmatprep.subr.bf16.mxu1 %v6987_v61  ;;  %v7071_v60 = vld [vmem:[#allocation7 + $0xb84] ss:$8 sps:$4 sm:$0xff]   ;;  %v7066_v61 = vld [vmem:[#allocation7 + $0x870] ss:$8 sps:$4 sm:$0xff]  }
 0x1cc   :  { %2362 = vmatpush1.bf16.msra.mxu0 %v6982_v62  ;;  %3125 = vmatpush1.bf16.msra.mxu1 %v6985_v63  ;;  %v7069_v62 = vld [vmem:[#allocation7 + $0xb80] ss:$8 sps:$4 sm:$0xff]   ;;  %v7074_v63 = vld [vmem:[#allocation7 + $0x884] ss:$8 sps:$4 sm:$0xff]  }
 0x1cd   :  { %2363 = vmatprep.subr.bf16.mxu0 %v6990_v0  ;;  %3126 = vmatprep.subr.bf16.mxu1 %v6993_v1  ;;  %v7077_v0 = vld [vmem:[#allocation7 + $0xb94] ss:$8 sps:$4 sm:$0xff]   ;;  %v7072_v1 = vld [vmem:[#allocation7 + $0x880] ss:$8 sps:$4 sm:$0xff]  }
 0x1d0   :  { %2364 = vmatpush1.bf16.msra.mxu0 %v6988_v2  ;;  %3127 = vmatpush1.bf16.msra.mxu1 %v6991_v3  ;;  %v7075_v2 = vld [vmem:[#allocation7 + $0xb90] ss:$8 sps:$4 sm:$0xff]   ;;  %v7080_v3 = vld [vmem:[#allocation7 + $0x894] ss:$8 sps:$4 sm:$0xff]  }
 0x1d1   :  { %2365 = vmatprep.subr.bf16.mxu0 %v6996_v4  ;;  %3128 = vmatprep.subr.bf16.mxu1 %v6999_v5  ;;  %v7083_v4 = vld [vmem:[#allocation7 + $0xba4] ss:$8 sps:$4 sm:$0xff]   ;;  %v7078_v5 = vld [vmem:[#allocation7 + $0x890] ss:$8 sps:$4 sm:$0xff]  }
 0x1d4   :  { %2366 = vmatpush1.bf16.msra.mxu0 %v6994_v7  ;;  %3129 = vmatpush1.bf16.msra.mxu1 %v6997_v8  ;;  %v7081_v7 = vld [vmem:[#allocation7 + $0xba0] ss:$8 sps:$4 sm:$0xff]   ;;  %v7086_v8 = vld [vmem:[#allocation7 + $0x8a4] ss:$8 sps:$4 sm:$0xff]  }
 0x1d5   :  { %2367 = vmatprep.subr.bf16.mxu0 %v7002_v9  ;;  %3130 = vmatprep.subr.bf16.mxu1 %v7005_v10  ;;  %v7089_v9 = vld [vmem:[#allocation7 + $0xbb4] ss:$8 sps:$4 sm:$0xff]   ;;  %v7084_v10 = vld [vmem:[#allocation7 + $0x8a0] ss:$8 sps:$4 sm:$0xff]  }
 0x1d8   :  { %2368 = vmatpush1.bf16.msra.mxu0 %v7000_v12  ;;  %3131 = vmatpush1.bf16.msra.mxu1 %v7003_v13  ;;  %v7087_v12 = vld [vmem:[#allocation7 + $0xbb0] ss:$8 sps:$4 sm:$0xff]   ;;  %v7092_v13 = vld [vmem:[#allocation7 + $0x8b4] ss:$8 sps:$4 sm:$0xff]  }
 0x1d9   :  { %2369 = vmatprep.subr.bf16.mxu0 %v7008_v15  ;;  %3132 = vmatprep.subr.bf16.mxu1 %v7011_v17  ;;  %v7095_v15 = vld [vmem:[#allocation7 + $0xbc4] ss:$8 sps:$4 sm:$0xff]   ;;  %v7090_v17 = vld [vmem:[#allocation7 + $0x8b0] ss:$8 sps:$4 sm:$0xff]  }
 0x1dc   :  { %2370 = vmatpush1.bf16.msra.mxu0 %v7006_v18  ;;  %3133 = vmatpush1.bf16.msra.mxu1 %v7009_v20  ;;  %v7093_v18 = vld [vmem:[#allocation7 + $0xbc0] ss:$8 sps:$4 sm:$0xff]   ;;  %v7098_v20 = vld [vmem:[#allocation7 + $0x8c4] ss:$8 sps:$4 sm:$0xff]  }
 0x1dd   :  { %2371 = vmatprep.subr.bf16.mxu0 %v7014_v21  ;;  %3134 = vmatprep.subr.bf16.mxu1 %v7017_v22  ;;  %v7101_v21 = vld [vmem:[#allocation7 + $0xbd4] ss:$8 sps:$4 sm:$0xff]   ;;  %v7096_v22 = vld [vmem:[#allocation7 + $0x8c0] ss:$8 sps:$4 sm:$0xff]  }
 0x1e0   :  { %2372 = vmatpush1.bf16.msra.mxu0 %v7012_v23  ;;  %3135 = vmatpush1.bf16.msra.mxu1 %v7015_v14  ;;  %v7099_v23 = vld [vmem:[#allocation7 + $0xbd0] ss:$8 sps:$4 sm:$0xff]   ;;  %v7104_v14 = vld [vmem:[#allocation7 + $0x8d4] ss:$8 sps:$4 sm:$0xff]  }
 0x1e1   :  { %2373 = vmatprep.subr.bf16.mxu0 %v7020_v25  ;;  %3136 = vmatprep.subr.bf16.mxu1 %v7023_v26  ;;  %v7107_v25 = vld [vmem:[#allocation7 + $0xbe4] ss:$8 sps:$4 sm:$0xff]   ;;  %v7102_v26 = vld [vmem:[#allocation7 + $0x8d0] ss:$8 sps:$4 sm:$0xff]  }
 0x1e4   :  { %2374 = vmatpush1.bf16.msra.mxu0 %v7018_v27  ;;  %3137 = vmatpush1.bf16.msra.mxu1 %v7021_v28  ;;  %v7105_v27 = vld [vmem:[#allocation7 + $0xbe0] ss:$8 sps:$4 sm:$0xff]   ;;  %v7110_v28 = vld [vmem:[#allocation7 + $0x8e4] ss:$8 sps:$4 sm:$0xff]  }
 0x1e5   :  { %2375 = vmatprep.subr.bf16.mxu0 %v7026_v29  ;;  %3138 = vmatprep.subr.bf16.mxu1 %v7029_v30  ;;  %v7113_v29 = vld [vmem:[#allocation7 + $0xbf4] ss:$8 sps:$4 sm:$0xff]   ;;  %v7108_v30 = vld [vmem:[#allocation7 + $0x8e0] ss:$8 sps:$4 sm:$0xff]  }
 0x1e8   :  { %2376 = vmatpush1.bf16.msra.mxu0 %v7024_v32  ;;  %3139 = vmatpush1.bf16.msra.mxu1 %v7027_v33  ;;  %v7111_v32 = vld [vmem:[#allocation7 + $0xbf0] ss:$8 sps:$4 sm:$0xff]   ;;  %v7116_v33 = vld [vmem:[#allocation7 + $0x8f4] ss:$8 sps:$4 sm:$0xff]  }
 0x1e9   :  { %2377 = vmatprep.subr.bf16.mxu0 %v7032_v34  ;;  %3140 = vmatprep.subr.bf16.mxu1 %v7035_v35  ;;  %v7119_v34 = vld [vmem:[#allocation7 + $0xc04] ss:$8 sps:$4 sm:$0xff]   ;;  %v7114_v35 = vld [vmem:[#allocation7 + $0x8f0] ss:$8 sps:$4 sm:$0xff]  }
 0x1ec   :  { %2378 = vmatpush1.bf16.msra.mxu0 %v7030_v36  ;;  %3141 = vmatpush1.bf16.msra.mxu1 %v7033_v37  ;;  %v7117_v36 = vld [vmem:[#allocation7 + $0xc00] ss:$8 sps:$4 sm:$0xff]   ;;  %v7122_v37 = vld [vmem:[#allocation7 + $0x904] ss:$8 sps:$4 sm:$0xff]  }
 0x1ed   :  { %2388 = vmatprep.subr.bf16.mxu0 %v7038_v38  ;;  %3151 = vmatprep.subr.bf16.mxu1 %v7041_v39  ;;  %v7125_v38 = vld [vmem:[#allocation7 + $0xc14] ss:$8 sps:$4 sm:$0xff]   ;;  %v7120_v39 = vld [vmem:[#allocation7 + $0x900] ss:$8 sps:$4 sm:$0xff]  }
 0x1ef   :  { %2380 = vmatmul.mubr.bf16.vlgmr.msra.gmra.mrb[4].mxu0 %v7957_v11  ;;  %3143 = vmatmul.mubr.bf16.vlgmr.msra.gmra.mrb[4].mxu1 %v7957_v11 }
 0x1f0   :  { %2389 = vmatpush1.bf16.msra.mxu0 %v7036_v40  ;;  %3152 = vmatpush1.bf16.msra.mxu1 %v7039_v41  ;;  %v7123_v40 = vld [vmem:[#allocation7 + $0xc10] ss:$8 sps:$4 sm:$0xff]   ;;  %v7128_v41 = vld [vmem:[#allocation7 + $0x914] ss:$8 sps:$4 sm:$0xff]  }
 0x1f1   :  { %2390 = vmatprep.subr.bf16.mxu0 %v7044_v42  ;;  %3153 = vmatprep.subr.bf16.mxu1 %v7047_v43  ;;  %v7131_v42 = vld [vmem:[#allocation7 + $0xc24] ss:$8 sps:$4 sm:$0xff]   ;;  %v7126_v43 = vld [vmem:[#allocation7 + $0x910] ss:$8 sps:$4 sm:$0xff]  }
 0x1f2   :  { %2420 = vmatprep.mubr.bf16.mxu0 %v7963_v16  ;;  %3183 = vmatprep.mubr.bf16.mxu1 %v7963_v16 }
 0x1f4   :  { %2391 = vmatpush1.bf16.msra.mxu0 %v7042_v44  ;;  %3154 = vmatpush1.bf16.msra.mxu1 %v7045_v45  ;;  %v7129_v44 = vld [vmem:[#allocation7 + $0xc20] ss:$8 sps:$4 sm:$0xff]   ;;  %v7134_v45 = vld [vmem:[#allocation7 + $0x924] ss:$8 sps:$4 sm:$0xff]  }
 0x1f5   :  { %2392 = vmatprep.subr.bf16.mxu0 %v7050_v46  ;;  %3155 = vmatprep.subr.bf16.mxu1 %v7053_v47  ;;  %v7137_v46 = vld [vmem:[#allocation7 + $0xc34] ss:$8 sps:$4 sm:$0xff]   ;;  %v7132_v47 = vld [vmem:[#allocation7 + $0x920] ss:$8 sps:$4 sm:$0xff]  }
 0x1f8   :  { %2393 = vmatpush1.bf16.msra.mxu0 %v7048_v48  ;;  %3156 = vmatpush1.bf16.msra.mxu1 %v7051_v50  ;;  %v7135_v48 = vld [vmem:[#allocation7 + $0xc30] ss:$8 sps:$4 sm:$0xff]   ;;  %v7140_v50 = vld [vmem:[#allocation7 + $0xc44] ss:$8 sps:$4 sm:$0xff]  }
 0x1f9   :  { %2394 = vmatprep.subr.bf16.mxu0 %v7056_v51  ;;  %3157 = vmatprep.subr.bf16.mxu1 %v7059_v52  ;;  %v7753_v51 = vmov 0.0   ;;  %v256_v52 = vlaneseq }
 0x1fc   :  { %2395 = vmatpush1.bf16.msra.mxu0 %v7054_v53  ;;  %3158 = vmatpush1.bf16.msra.mxu1 %v7057_v54  ;;  %v7198_v53 = vld [vmem:[#allocation10] sm:$0x1f]   ;;  %v7994_v54 = vshrl.u32 %v256_v52, 7  ;;  %v7173_v52 = vld [vmem:[#allocation7 + $0xcf4] ss:$8 sps:$4 sm:$0xff]  }
 0x1fd   :  { %2396 = vmatprep.subr.bf16.mxu0 %v7062_v55  ;;  %3159 = vmatprep.subr.bf16.mxu1 %v7065_v56  ;;  %v7138_v55 = vld [vmem:[#allocation7 + $0xc40] ss:$8 sps:$4 sm:$0xff]   ;;  %v7143_v56 = vld [vmem:[#allocation7 + $0xc54] ss:$8 sps:$4 sm:$0xff]  }
 0x200   :  { %2397 = vmatpush1.bf16.msra.mxu0 %v7060_v57  ;;  %3160 = vmatpush1.bf16.msra.mxu1 %v7063_v58  ;;  %v4016_v57 = vsel %vm4014_vm1, %v7198_v53, 0  ;;  %v7997_v58 = vld [vmem:[#allocation3 + $0x18] ss:$0 sps:$4 sm:$0xff]  }
 0x201   :  { %2398 = vmatprep.subr.bf16.mxu0 %v7068_v59  ;;  %3161 = vmatprep.subr.bf16.mxu1 %v7071_v60  ;;  %v8004_v59 = vsub.s32 0, %v7994_v54  ;;  %v8007_v60 = vsub.s32 1, %v7994_v54  ;;  %v7171_v53 = vld [vmem:[#allocation7 + $0xcf0] ss:$8 sps:$4 sm:$0xff]  }
 0x204   :  { %2399 = vmatpush1.bf16.msra.mxu0 %v7066_v61  ;;  %3162 = vmatpush1.bf16.msra.mxu1 %v7069_v62  ;;  %v7141_v61 = vld [vmem:[#allocation7 + $0xc50] ss:$8 sps:$4 sm:$0xff]  }
 0x205   :  { %2400 = vmatprep.subr.bf16.mxu0 %v7074_v63  ;;  %3163 = vmatprep.subr.bf16.mxu1 %v7077_v0  ;;  %v8009_v62 = vld [vmem:[#allocation8] sm:$0x1f]  ;;  %v7146_v63 = vld [vmem:[#allocation7 + $0xc64] ss:$8 sps:$4 sm:$0xff]   ;;  %v8012_v0 = vld [vmem:[#allocation8 + $0x8] sm:$0x1f] }
 0x208   :  { %2401 = vmatpush1.bf16.msra.mxu0 %v7072_v1  ;;  %3164 = vmatpush1.bf16.msra.mxu1 %v7075_v2  ;;  %v7205_v1 = vld [vmem:[#allocation10 + $0x8] sm:$0x1f]   ;;  %v259_v2 = vrot.slane %v8009_v62, %v8004_v59 }
 0x209   :  { %2402 = vmatprep.subr.bf16.mxu0 %v7080_v3  ;;  %3165 = vmatprep.subr.bf16.mxu1 %v7083_v4  ;;  %v1048_v3 = vrot.slane %v8009_v62, %v8007_v60  ;;  %v263_v4 = vrot.slane %v8012_v0, %v8004_v59 }
 0x20c   :  { %2403 = vmatpush1.bf16.msra.mxu0 %v7078_v5  ;;  %3166 = vmatpush1.bf16.msra.mxu1 %v7081_v7  ;;  %v1052_v5 = vrot.slane %v8012_v0, %v8007_v60  ;;  %v8025_v7 = vld [vmem:[#allocation5] sm:$0xf] }
 0x20d   :  { %2404 = vmatprep.subr.bf16.mxu0 %v7086_v8  ;;  %3167 = vmatprep.subr.bf16.mxu1 %v7089_v9  ;;  %v7149_v8 = vld [vmem:[#allocation7 + $0xc74] ss:$8 sps:$4 sm:$0xff]   ;;  %v4071_v9 = vsel %vm4014_vm1, %v7205_v1, 0 }
 0x20e   :  { %v7185_v1 = vld [vmem:[#allocation7 + $0xd34] ss:$8 sps:$4 sm:$0xff]  }
 0x210   :  { %2405 = vmatpush1.bf16.msra.mxu0 %v7084_v10  ;;  %3168 = vmatpush1.bf16.msra.mxu1 %v7087_v12 }
 0x211   :  { %2406 = vmatprep.subr.bf16.mxu0 %v7092_v13  ;;  %3169 = vmatprep.subr.bf16.mxu1 %v7095_v15 }
 0x214   :  { %2407 = vmatpush1.bf16.msra.mxu0 %v7090_v17  ;;  %3170 = vmatpush1.bf16.msra.mxu1 %v7093_v18 }
 0x215   :  { %2408 = vmatprep.subr.bf16.mxu0 %v7098_v20  ;;  %3171 = vmatprep.subr.bf16.mxu1 %v7101_v21 }
 0x218   :  { %2409 = vmatpush1.bf16.msra.mxu0 %v7096_v22  ;;  %3172 = vmatpush1.bf16.msra.mxu1 %v7099_v23 }
 0x219   :  { %2410 = vmatprep.subr.bf16.mxu0 %v7104_v14  ;;  %3173 = vmatprep.subr.bf16.mxu1 %v7107_v25  ;;  %v7147_v14 = vld [vmem:[#allocation7 + $0xc70] ss:$8 sps:$4 sm:$0xff]  }
 0x21c   :  { %2411 = vmatpush1.bf16.msra.mxu0 %v7102_v26  ;;  %3174 = vmatpush1.bf16.msra.mxu1 %v7105_v27 }
 0x21d   :  { %2412 = vmatprep.subr.bf16.mxu0 %v7110_v28  ;;  %3175 = vmatprep.subr.bf16.mxu1 %v7113_v29  ;;  %v7152_v28 = vld [vmem:[#allocation7 + $0xc84] ss:$8 sps:$4 sm:$0xff]   ;;  %v7212_v29 = vld [vmem:[#allocation10 + $0x10] sm:$0x1f]  }
 0x220   :  { %2413 = vmatpush1.bf16.msra.mxu0 %v7108_v30  ;;  %3176 = vmatpush1.bf16.msra.mxu1 %v7111_v32  ;;  %v7150_v32 = vld [vmem:[#allocation7 + $0xc80] ss:$8 sps:$4 sm:$0xff]  }
 0x221   :  { %2414 = vmatprep.subr.bf16.mxu0 %v7116_v33  ;;  %3177 = vmatprep.subr.bf16.mxu1 %v7119_v34  ;;  %v7155_v33 = vld [vmem:[#allocation7 + $0xc94] ss:$8 sps:$4 sm:$0xff]   ;;  %v4127_v34 = vsel %vm4014_vm1, %v7212_v29, 0  ;;  %v7216_v29 = vld [vmem:[#allocation7 + $0xdd0] ss:$8 sps:$4 sm:$0xff]  }
 0x224   :  { %2415 = vmatpush1.bf16.msra.mxu0 %v7114_v35  ;;  %3178 = vmatpush1.bf16.msra.mxu1 %v7117_v36  ;;  %v7153_v35 = vld [vmem:[#allocation7 + $0xc90] ss:$8 sps:$4 sm:$0xff]   ;;  %v7158_v36 = vld [vmem:[#allocation7 + $0xca4] ss:$8 sps:$4 sm:$0xff]  }
 0x225   :  { %2416 = vmatprep.subr.bf16.mxu0 %v7122_v37  ;;  %3179 = vmatprep.subr.bf16.mxu1 %v7125_v38  ;;  %v7219_v37 = vld [vmem:[#allocation10 + $0x18] sm:$0x1f]   ;;  %v7156_v38 = vld [vmem:[#allocation7 + $0xca0] ss:$8 sps:$4 sm:$0xff]  }
 0x228   :  { %2417 = vmatpush1.bf16.msra.mxu0 %v7120_v39  ;;  %3180 = vmatpush1.bf16.msra.mxu1 %v7123_v40  ;;  %v7161_v39 = vld [vmem:[#allocation7 + $0xcb4] ss:$8 sps:$4 sm:$0xff]   ;;  %v4183_v40 = vsel %vm4014_vm1, %v7219_v37, 0  ;;  %v7223_v37 = vld [vmem:[#allocation7 + $0xdf0] ss:$8 sps:$4 sm:$0xff]  }
 0x229   :  { %2418 = vmatprep.subr.bf16.mxu0 %v7128_v41  ;;  %3181 = vmatprep.subr.bf16.mxu1 %v7131_v42  ;;  %v7159_v41 = vld [vmem:[#allocation7 + $0xcb0] ss:$8 sps:$4 sm:$0xff]   ;;  %v7164_v42 = vld [vmem:[#allocation7 + $0xcc4] ss:$8 sps:$4 sm:$0xff]  }
 0x22c   :  { %2419 = vmatpush1.bf16.msra.mxu0 %v7126_v43  ;;  %3182 = vmatpush1.bf16.msra.mxu1 %v7129_v44  ;;  %v7226_v43 = vld [vmem:[#allocation10 + $0x20] sm:$0x1f]  }
 0x22d   :  { %2429 = vmatprep.subr.bf16.mxu0 %v7134_v45  ;;  %3192 = vmatprep.subr.bf16.mxu1 %v7137_v46  ;;  %v7162_v44 = vld [vmem:[#allocation7 + $0xcc0] ss:$8 sps:$4 sm:$0xff]   ;;  %v7167_v45 = vld [vmem:[#allocation7 + $0xcd4] ss:$8 sps:$4 sm:$0xff]   ;;  %v4239_v46 = vsel %vm4014_vm1, %v7226_v43, 0 }
 0x22e   :  { %v7230_v43 = vld [vmem:[#allocation7 + $0xe10] ss:$8 sps:$4 sm:$0xff]  }
 0x22f   :  { %2421 = vmatmul.mubr.bf16.vlgmr.msra.gmra.mrb[4].mxu0 %v7971_v19  ;;  %3184 = vmatmul.mubr.bf16.vlgmr.msra.gmra.mrb[4].mxu1 %v7971_v19 }
 0x230   :  { %2430 = vmatpush1.bf16.msra.mxu0 %v7132_v47  ;;  %3193 = vmatpush1.bf16.msra.mxu1 %v7135_v48  ;;  %v7165_v47 = vld [vmem:[#allocation7 + $0xcd0] ss:$8 sps:$4 sm:$0xff]   ;;  %v7170_v48 = vld [vmem:[#allocation7 + $0xce4] ss:$8 sps:$4 sm:$0xff]  }
 0x231   :  { %2461 = vmatprep.mubr.bf16.mxu0 %v7752_v24  ;;  %3224 = vmatprep.mubr.bf16.mxu1 %v7752_v24 }
 0x232   :  { %3832 = vmatprep.subr.bf16.mxu0 %v7140_v50  ;;  %6427 = vmatprep.subr.bf16.mxu1 %v7753_v51  ;;  %v7168_v50 = vld [vmem:[#allocation7 + $0xce0] ss:$8 sps:$4 sm:$0xff]  }
 0x23b   :  { %6017 = vmatmul.mubr.msk.bf16.vlgmr.msra.gmra.mrb[4].mxu0 %vm778_vm0, %v7997_v58  ;;  %6116 = vmatmul.mubr.msk.bf16.vlgmr.msra.gmra.mrb[4].mxu1 %vm778_vm0, %v7997_v58 }
 0x23c   :  { %3833 = vmatpush1.bf16.msra.mxu0 %v7138_v55  ;;  %3864 = vmatprep.mubr.bf16.mxu0 %v7939_v49  ;;  %v7144_v49 = vld [vmem:[#allocation7 + $0xc60] ss:$8 sps:$4 sm:$0xff]   ;;  %v7176_v55 = vld [vmem:[#allocation7 + $0xd04] ss:$8 sps:$4 sm:$0xff]  }
 0x23d   :  { %3834 = vmatprep.subr.bf16.mxu0 %v7143_v56  ;;  %6428 = vmatpush3.bf16.msra.mxu1 %v4016_v57  ;;  %v7174_v56 = vld [vmem:[#allocation7 + $0xd00] ss:$8 sps:$4 sm:$0xff]   ;;  %v7179_v57 = vld [vmem:[#allocation7 + $0xd14] ss:$8 sps:$4 sm:$0xff]  }
 0x23e   :  { %6429 = vmatprep.mubr.msk.bf16.mxu1 %vm7754_vm2, %v7753_v51  ;;  %6433 = vmatprep.subr.bf16.mxu1 %v7753_v51 }
 0x240   :  { %3835 = vmatpush1.bf16.msra.mxu0 %v7141_v61  ;;  %v7177_v61 = vld [vmem:[#allocation7 + $0xd10] ss:$8 sps:$4 sm:$0xff]  }
 0x241   :  { %3836 = vmatprep.subr.bf16.mxu0 %v7146_v63  ;;  %v7180_v63 = vld [vmem:[#allocation7 + $0xd20] ss:$8 sps:$4 sm:$0xff]  }
 0x242   :  { %v939_v10 = vpop.f32.mrb[0].mxu0  ;;  %v1700_v12 = vpop.f32.mrb[0].mxu1 }
 0x243   :  { %v8028_v13 = vadd.f32 %v939_v10, %v259_v2  ;;  %v8030_v15 = vadd.f32 %v1700_v12, %v1048_v3  ;;  %v941_v17 = vpop.f32.mrb[1].mxu0  ;;  %v1702_v18 = vpop.f32.mrb[1].mxu1  ;;  %6430 = vmatmul.mubr.msk.bf16.vlgmr.msra.gmra.mrb[8].mxu1 %vm4010_vm3, %v8025_v7  ;;  %v7183_v2 = vld [vmem:[#allocation7 + $0xd30] ss:$8 sps:$4 sm:$0xff]   ;;  %v7188_v3 = vld [vmem:[#allocation7 + $0xd44] ss:$8 sps:$4 sm:$0xff]  }
 0x244   :  { %3837 = vmatpush1.bf16.msra.mxu0 %v7144_v49  ;;  %v8034_v20 = vadd.f32 %v941_v17, %v263_v4  ;;  %v8036_v21 = vadd.f32 %v1702_v18, %v1052_v5  ;;  %v943_v22 = vpop.f32.mrb[2].mxu0  ;;  %v1704_v23 = vpop.f32.mrb[2].mxu1  ;;  %6434 = vmatpush3.bf16.msra.mxu1 %v4071_v9  ;;  %v7186_v49 = vld [vmem:[#allocation7 + $0xd40] ss:$8 sps:$4 sm:$0xff]   ;;  %v7191_v4 = vld [vmem:[#allocation7 + $0xd54] ss:$8 sps:$4 sm:$0xff]  }
 0x245   :  { %v1707_v25 = vmax.f32 %v8028_v13, %v8030_v15  ;;  %v944_v26 = vpop.f32.mrb[3].mxu0  ;;  %v1705_v27 = vpop.f32.mrb[3].mxu1  ;;  %3838 = vmatprep.subr.bf16.mxu0 %v7149_v8  ;;  %6435 = vmatprep.mubr.msk.bf16.mxu1 %vm7754_vm2, %v7753_v51  ;;  %v7189_v5 = vld [vmem:[#allocation7 + $0xd50] ss:$8 sps:$4 sm:$0xff]   ;;  %v7192_v8 = vld [vmem:[#allocation7 + $0xd60] ss:$8 sps:$4 sm:$0xff]  }
 0x246   :  { %v1708_v30 = vmax.f32 %v8034_v20, %v8036_v21  ;;  %6439 = vmatprep.subr.bf16.mxu1 %v7753_v51  ;;  %v7197_v9 = vld [vmem:[#allocation7 + $0xd74] ss:$8 sps:$4 sm:$0xff]   ;;  %v7195_v10 = vld [vmem:[#allocation7 + $0xd70] ss:$8 sps:$4 sm:$0xff]   ;;  %v7201_v12 = vld [vmem:[#allocation7 + $0xd84] ss:$8 sps:$4 sm:$0xff]  }
 0x247   :  { %v7199_v17 = vld [vmem:[#allocation7 + $0xd80] ss:$8 sps:$4 sm:$0xff]   ;;  %v7204_v18 = vld [vmem:[#allocation7 + $0xd94] ss:$8 sps:$4 sm:$0xff]   ;;  %v7208_v22 = vld [vmem:[#allocation7 + $0xda4] ss:$8 sps:$4 sm:$0xff]  }
 0x248   :  { %3839 = vmatpush1.bf16.msra.mxu0 %v7147_v14  ;;  %v7211_v23 = vld [vmem:[#allocation7 + $0xdb4] ss:$8 sps:$4 sm:$0xff]   ;;  %v7209_v14 = vld [vmem:[#allocation7 + $0xdb0] ss:$8 sps:$4 sm:$0xff]   ;;  %v7215_v26 = vld [vmem:[#allocation7 + $0xdc4] ss:$8 sps:$4 sm:$0xff]  }
 0x249   :  { %3840 = vmatprep.subr.bf16.mxu0 %v7152_v28  ;;  %v7213_v27 = vld [vmem:[#allocation7 + $0xdc0] ss:$8 sps:$4 sm:$0xff]   ;;  %v7218_v28 = vld [vmem:[#allocation7 + $0xdd4] ss:$8 sps:$4 sm:$0xff]  }
 0x24b   :  { %6436 = vmatmul.mubr.msk.bf16.vlgmr.msra.gmra.mrb[12].mxu1 %vm4010_vm3, %v8025_v7 }
 0x24c   :  { %3841 = vmatpush1.bf16.msra.mxu0 %v7150_v32  ;;  %6440 = vmatpush3.bf16.msra.mxu1 %v4127_v34  ;;  %v7222_v32 = vld [vmem:[#allocation7 + $0xde4] ss:$8 sps:$4 sm:$0xff]   ;;  %v7225_v34 = vld [vmem:[#allocation7 + $0xdf4] ss:$8 sps:$4 sm:$0xff]  }
 0x24d   :  { %3842 = vmatprep.subr.bf16.mxu0 %v7155_v33  ;;  %6441 = vmatprep.mubr.msk.bf16.mxu1 %vm7754_vm2, %v7753_v51  ;;  %v7220_v33 = vld [vmem:[#allocation7 + $0xde0] ss:$8 sps:$4 sm:$0xff]  }
 0x24e   :  { %6445 = vmatprep.subr.bf16.mxu1 %v7753_v51 }
 0x250   :  { %3843 = vmatpush1.bf16.msra.mxu0 %v7153_v35  ;;  %v7290_v35 = vld [vmem:[%s8280_s7] ss:$8 sps:$4 sm:$0xff]  }
 0x251   :  { %3844 = vmatprep.subr.bf16.mxu0 %v7158_v36  ;;  %v7292_v36 = vld [vmem:[%s8280_s7 + $0x4] ss:$8 sps:$4 sm:$0xff]  }
 0x253   :  { %6442 = vmatmul.mubr.msk.bf16.vlgmr.msra.gmra.mrb[16].mxu1 %vm4010_vm3, %v8025_v7 }
 0x254   :  { %3845 = vmatpush1.bf16.msra.mxu0 %v7156_v38  ;;  %6446 = vmatpush3.bf16.msra.mxu1 %v4183_v40  ;;  %v7229_v38 = vld [vmem:[#allocation7 + $0xe04] ss:$8 sps:$4 sm:$0xff]   ;;  %v7232_v40 = vld [vmem:[#allocation7 + $0xe14] ss:$8 sps:$4 sm:$0xff]  }
 0x255   :  { %3846 = vmatprep.subr.bf16.mxu0 %v7161_v39  ;;  %6447 = vmatprep.mubr.msk.bf16.mxu1 %vm7754_vm2, %v7753_v51  ;;  %v7227_v39 = vld [vmem:[#allocation7 + $0xe00] ss:$8 sps:$4 sm:$0xff]  }
 0x256   :  { %6451 = vmatprep.subr.bf16.mxu1 %v7753_v51 }
 0x258   :  { %3847 = vmatpush1.bf16.msra.mxu0 %v7159_v41  ;;  %v7296_v41 = vld [vmem:[%s8280_s7 + $0x10] ss:$8 sps:$4 sm:$0xff]  }
 0x259   :  { %3848 = vmatprep.subr.bf16.mxu0 %v7164_v42  ;;  %v7298_v42 = vld [vmem:[%s8280_s7 + $0x14] ss:$8 sps:$4 sm:$0xff]  }
 0x25b   :  { %6448 = vmatmul.mubr.msk.bf16.vlgmr.msra.gmra.mrb[20].mxu1 %vm4010_vm3, %v8025_v7 }
 0x25c   :  { %3849 = vmatpush1.bf16.msra.mxu0 %v7162_v44  ;;  %6452 = vmatpush3.bf16.msra.mxu1 %v4239_v46  ;;  %v7235_v44 = vld [vmem:[#allocation7 + $0xe24] ss:$8 sps:$4 sm:$0xff]   ;;  %v7238_v46 = vld [vmem:[#allocation7 + $0xe34] ss:$8 sps:$4 sm:$0xff]  }
 0x25d   :  { %3850 = vmatprep.subr.bf16.mxu0 %v7167_v45  ;;  %6453 = vmatprep.mubr.msk.bf16.mxu1 %vm7754_vm2, %v7753_v51  ;;  %v7182_v51 = vld [vmem:[#allocation7 + $0xd24] ss:$8 sps:$4 sm:$0xff]   ;;  %v7233_v45 = vld [vmem:[#allocation7 + $0xe20] ss:$8 sps:$4 sm:$0xff]  }
 0x25e   :  { %4371 = vmatprep.subr.bf16.mxu1 %v7292_v36  ;;  %v7284_v36 = vld [vmem:[#allocation7 + $0xf30] ss:$8 sps:$4 sm:$0xff]  }
 0x260   :  { %3851 = vmatpush1.bf16.msra.mxu0 %v7165_v47  ;;  %v7302_v47 = vld [vmem:[%s8280_s7 + $0x20] ss:$8 sps:$4 sm:$0xff]  }
 0x261   :  { %3852 = vmatprep.subr.bf16.mxu0 %v7170_v48  ;;  %v7304_v48 = vld [vmem:[%s8280_s7 + $0x24] ss:$8 sps:$4 sm:$0xff]  }
 0x263   :  { %6454 = vmatmul.mubr.msk.bf16.vlgmr.msra.gmra.mrb[24].mxu1 %vm4010_vm3, %v8025_v7  ;;  %v7194_v7 = vld [vmem:[#allocation7 + $0xd64] ss:$8 sps:$4 sm:$0xff]  }
 0x264   :  { %3853 = vmatpush1.bf16.msra.mxu0 %v7168_v50  ;;  %4403 = vmatprep.mubr.bf16.mxu1 %v7752_v24  ;;  %v7236_v50 = vld [vmem:[#allocation7 + $0xe30] ss:$8 sps:$4 sm:$0xff]  }
 0x265   :  { %3854 = vmatprep.subr.bf16.mxu0 %v7173_v52  ;;  %4372 = vmatpush1.bf16.msra.mxu1 %v7290_v35  ;;  %v7241_v52 = vld [vmem:[#allocation7 + $0xe44] ss:$8 sps:$4 sm:$0xff]   ;;  %v7286_v35 = vld [vmem:[#allocation7 + $0xf34] ss:$8 sps:$4 sm:$0xff]  }
 0x266   :  { %4373 = vmatprep.subr.bf16.mxu1 %v7298_v42  ;;  %v8106_v42 = vsub.s32 2, %v7994_v54 }
 0x268   :  { %3855 = vmatpush1.bf16.msra.mxu0 %v7171_v53  ;;  %v7239_v53 = vld [vmem:[#allocation7 + $0xe40] ss:$8 sps:$4 sm:$0xff]  }
 0x269   :  { %3856 = vmatprep.subr.bf16.mxu0 %v7176_v55  ;;  %4374 = vmatpush1.bf16.msra.mxu1 %v7296_v41  ;;  %v7244_v55 = vld [vmem:[#allocation7 + $0xe54] ss:$8 sps:$4 sm:$0xff]  }
 0x26a   :  { %4375 = vmatprep.subr.bf16.mxu1 %v7304_v48  ;;  %v7301_v41 = vld [vmem:[%s8280_s7 + $0xbc] ss:$8 sps:$4 sm:$0xff]  }
 0x26c   :  { %3857 = vmatpush1.bf16.msra.mxu0 %v7174_v56  ;;  %v4324_v56 = vld [vmem:[%s8280_s7 + $0x30] sm:$0x11] }
 0x26d   :  { %3858 = vmatprep.subr.bf16.mxu0 %v7179_v57  ;;  %4376 = vmatpush1.bf16.msra.mxu1 %v7302_v47  ;;  %v7242_v57 = vld [vmem:[#allocation7 + $0xe50] ss:$8 sps:$4 sm:$0xff]  }
 0x26e   :  { %v7305_v47 = vld [vmem:[%s8280_s7 + $0xc8] ss:$8 sps:$4 sm:$0xff]  }
 0x270   :  { %3859 = vmatpush1.bf16.msra.mxu0 %v7177_v61  ;;  %v6233_v61 = vcombine.high %v4324_v56, %v4324_v56 }
 0x271   :  { %3860 = vmatprep.subr.bf16.mxu0 %v7182_v51  ;;  %v6232_v51 = vcombine.low %v4324_v56, %v4324_v56 }
 0x272   :  { %6234 = vmatprep.subr.msk.bf16.mxu1 %vm4364_vm4, %v6233_v61 }
 0x274   :  { %3861 = vmatpush1.bf16.msra.mxu0 %v7180_v63  ;;  %v7247_v63 = vld [vmem:[#allocation7 + $0xe64] ss:$8 sps:$4 sm:$0xff]  }
 0x275   :  { %3862 = vmatprep.subr.bf16.mxu0 %v7185_v1  ;;  %v7314_v1 = vld [vmem:[#allocation13 + $0x4] ss:$8 sps:$4 sm:$0xff]  }
 0x278   :  { %3863 = vmatpush1.bf16.msra.mxu0 %v7183_v2  ;;  %v4366_v2 = vsel %vm4364_vm4, %v6232_v51, 0 }
 0x279   :  { %3873 = vmatprep.subr.bf16.mxu0 %v7188_v3  ;;  %4378 = vmatpush1.bf16.msra.mxu1 %v4366_v2  ;;  %v7250_v3 = vld [vmem:[#allocation7 + $0xe74] ss:$8 sps:$4 sm:$0xff]  }
 0x27a   :  { %4572 = vmatprep.subr.bf16.mxu1 %v7314_v1 }
 0x27b   :  { %3865 = vmatmul.mubr.bf16.vlgmr.msra.gmra.mrb[8].mxu0 %v7943_v6  ;;  %v7202_v6 = vld [vmem:[#allocation7 + $0xd90] ss:$8 sps:$4 sm:$0xff]  }
 0x27c   :  { %3874 = vmatpush1.bf16.msra.mxu0 %v7186_v49  ;;  %3905 = vmatprep.mubr.bf16.mxu0 %v7951_v31  ;;  %v7206_v31 = vld [vmem:[#allocation7 + $0xda0] ss:$8 sps:$4 sm:$0xff]   ;;  %v7248_v49 = vld [vmem:[#allocation7 + $0xe70] ss:$8 sps:$4 sm:$0xff]  }
 0x27d   :  { %3875 = vmatprep.subr.bf16.mxu0 %v7191_v4  ;;  %v7253_v4 = vld [vmem:[#allocation7 + $0xe84] ss:$8 sps:$4 sm:$0xff]  }
 0x280   :  { %3876 = vmatpush1.bf16.msra.mxu0 %v7189_v5  ;;  %v7256_v5 = vld [vmem:[#allocation7 + $0xe94] ss:$8 sps:$4 sm:$0xff]  }
 0x281   :  { %3877 = vmatprep.subr.bf16.mxu0 %v7194_v7  ;;  %v7254_v7 = vld [vmem:[#allocation7 + $0xe90] ss:$8 sps:$4 sm:$0xff]  }
 0x284   :  { %3878 = vmatpush1.bf16.msra.mxu0 %v7192_v8  ;;  %v7259_v8 = vld [vmem:[#allocation7 + $0xea4] ss:$8 sps:$4 sm:$0xff]  }
 0x285   :  { %3879 = vmatprep.subr.bf16.mxu0 %v7197_v9  ;;  %v7257_v9 = vld [vmem:[#allocation7 + $0xea0] ss:$8 sps:$4 sm:$0xff]  }
 0x288   :  { %3880 = vmatpush1.bf16.msra.mxu0 %v7195_v10  ;;  %v7262_v10 = vld [vmem:[#allocation7 + $0xeb4] ss:$8 sps:$4 sm:$0xff]  }
 0x289   :  { %3881 = vmatprep.subr.bf16.mxu0 %v7201_v12  ;;  %v7260_v12 = vld [vmem:[#allocation7 + $0xeb0] ss:$8 sps:$4 sm:$0xff]  }
 0x28c   :  { %3882 = vmatpush1.bf16.msra.mxu0 %v7199_v17  ;;  %v7265_v17 = vld [vmem:[#allocation7 + $0xec4] ss:$8 sps:$4 sm:$0xff]  }
 0x28d   :  { %3883 = vmatprep.subr.bf16.mxu0 %v7204_v18  ;;  %v7263_v18 = vld [vmem:[#allocation7 + $0xec0] ss:$8 sps:$4 sm:$0xff]  }
 0x290   :  { %3884 = vmatpush1.bf16.msra.mxu0 %v7202_v6  ;;  %v7268_v6 = vld [vmem:[#allocation7 + $0xed4] ss:$8 sps:$4 sm:$0xff]  }
 0x291   :  { %3885 = vmatprep.subr.bf16.mxu0 %v7208_v22  ;;  %v7266_v22 = vld [vmem:[#allocation7 + $0xed0] ss:$8 sps:$4 sm:$0xff]  }
 0x294   :  { %3886 = vmatpush1.bf16.msra.mxu0 %v7206_v31  ;;  %v7271_v31 = vld [vmem:[#allocation7 + $0xee4] ss:$8 sps:$4 sm:$0xff]  }
 0x295   :  { %3887 = vmatprep.subr.bf16.mxu0 %v7211_v23  ;;  %v7269_v23 = vld [vmem:[#allocation7 + $0xee0] ss:$8 sps:$4 sm:$0xff]  }
 0x298   :  { %3888 = vmatpush1.bf16.msra.mxu0 %v7209_v14  ;;  %v7274_v14 = vld [vmem:[#allocation7 + $0xef4] ss:$8 sps:$4 sm:$0xff]  }
 0x299   :  { %3889 = vmatprep.subr.bf16.mxu0 %v7215_v26  ;;  %v7272_v26 = vld [vmem:[#allocation7 + $0xef0] ss:$8 sps:$4 sm:$0xff]  }
 0x29c   :  { %3890 = vmatpush1.bf16.msra.mxu0 %v7213_v27  ;;  %v7277_v27 = vld [vmem:[#allocation7 + $0xf04] ss:$8 sps:$4 sm:$0xff]  }
 0x29d   :  { %3891 = vmatprep.subr.bf16.mxu0 %v7218_v28  ;;  %v7275_v28 = vld [vmem:[#allocation7 + $0xf00] ss:$8 sps:$4 sm:$0xff]  }
 0x2a0   :  { %3892 = vmatpush1.bf16.msra.mxu0 %v7216_v29  ;;  %v7280_v29 = vld [vmem:[#allocation7 + $0xf14] ss:$8 sps:$4 sm:$0xff]  }
 0x2a1   :  { %3893 = vmatprep.subr.bf16.mxu0 %v7222_v32  ;;  %v7278_v32 = vld [vmem:[#allocation7 + $0xf10] ss:$8 sps:$4 sm:$0xff]  }
 0x2a4   :  { %3894 = vmatpush1.bf16.msra.mxu0 %v7220_v33  ;;  %v7283_v33 = vld [vmem:[#allocation7 + $0xf24] ss:$8 sps:$4 sm:$0xff]  }
 0x2a5   :  { %3895 = vmatprep.subr.bf16.mxu0 %v7225_v34  ;;  %v7281_v34 = vld [vmem:[#allocation7 + $0xf20] ss:$8 sps:$4 sm:$0xff]  }
 0x2a8   :  { %3896 = vmatpush1.bf16.msra.mxu0 %v7223_v37  ;;  %v7289_v37 = vld [vmem:[#allocation7 + $0xf44] ss:$8 sps:$4 sm:$0xff]  }
 0x2a9   :  { %3897 = vmatprep.subr.bf16.mxu0 %v7229_v38  ;;  %v7287_v38 = vld [vmem:[#allocation7 + $0xf40] ss:$8 sps:$4 sm:$0xff]  }
 0x2ac   :  { %3898 = vmatpush1.bf16.msra.mxu0 %v7227_v39  ;;  %v7295_v39 = vld [vmem:[%s8280_s7 + $0xac] ss:$8 sps:$4 sm:$0xff]  }
 0x2ad   :  { %3899 = vmatprep.subr.bf16.mxu0 %v7232_v40  ;;  %v7293_v40 = vld [vmem:[%s8280_s7 + $0xa8] ss:$8 sps:$4 sm:$0xff]  }
 0x2b0   :  { %3900 = vmatpush1.bf16.msra.mxu0 %v7230_v43  ;;  %v8113_v43 = vsub.s32 3, %v7994_v54 }
 0x2b1   :  { %3901 = vmatprep.subr.bf16.mxu0 %v7235_v44  ;;  %v7307_v44 = vld [vmem:[%s8280_s7 + $0xcc] ss:$8 sps:$4 sm:$0xff]  }
 0x2b2   :  { %v2574_v48 = vrot.slane %v8009_v62, %v8113_v43  ;;  %v2578_v56 = vrot.slane %v8012_v0, %v8113_v43 }
 0x2b4   :  { %3902 = vmatpush1.bf16.msra.mxu0 %v7233_v45  ;;  %v1811_v45 = vrot.slane %v8009_v62, %v8106_v42 }
 0x2b5   :  { %3903 = vmatprep.subr.bf16.mxu0 %v7238_v46  ;;  %v1815_v46 = vrot.slane %v8012_v0, %v8106_v42 }
 0x2b8   :  { %3904 = vmatpush1.bf16.msra.mxu0 %v7236_v50 }
 0x2b9   :  { %3914 = vmatprep.subr.bf16.mxu0 %v7241_v52 }
 0x2bb   :  { %3906 = vmatmul.mubr.bf16.vlgmr.msra.gmra.mrb[8].mxu0 %v7957_v11  ;;  %v7245_v11 = vld [vmem:[#allocation7 + $0xe60] ss:$8 sps:$4 sm:$0xff]  }
 0x2bc   :  { %3915 = vmatpush1.bf16.msra.mxu0 %v7239_v53  ;;  %3946 = vmatprep.mubr.bf16.mxu0 %v7963_v16  ;;  %v7251_v16 = vld [vmem:[#allocation7 + $0xe80] ss:$8 sps:$4 sm:$0xff]  }
 0x2bd   :  { %3916 = vmatprep.subr.bf16.mxu0 %v7244_v55 }
 0x2c0   :  { %3917 = vmatpush1.bf16.msra.mxu0 %v7242_v57 }
 0x2c1   :  { %3918 = vmatprep.subr.bf16.mxu0 %v7247_v63 }
 0x2c4   :  { %3919 = vmatpush1.bf16.msra.mxu0 %v7245_v11 }
 0x2c5   :  { %3920 = vmatprep.subr.bf16.mxu0 %v7250_v3 }
 0x2c8   :  { %3921 = vmatpush1.bf16.msra.mxu0 %v7248_v49 }
 0x2c9   :  { %3922 = vmatprep.subr.bf16.mxu0 %v7253_v4 }
 0x2cc   :  { %3923 = vmatpush1.bf16.msra.mxu0 %v7251_v16 }
 0x2cd   :  { %3924 = vmatprep.subr.bf16.mxu0 %v7256_v5  ;;  %v7317_v5 = vld [vmem:[#allocation13 + $0x304] ss:$8 sps:$4 sm:$0xff]  }
 0x2d0   :  { %3925 = vmatpush1.bf16.msra.mxu0 %v7254_v7 }
 0x2d1   :  { %3926 = vmatprep.subr.bf16.mxu0 %v7259_v8 }
 0x2d4   :  { %3927 = vmatpush1.bf16.msra.mxu0 %v7257_v9 }
 0x2d5   :  { %3928 = vmatprep.subr.bf16.mxu0 %v7262_v10 }
 0x2d8   :  { %3929 = vmatpush1.bf16.msra.mxu0 %v7260_v12 }
 0x2d9   :  { %3930 = vmatprep.subr.bf16.mxu0 %v7265_v17 }
 0x2dc   :  { %3931 = vmatpush1.bf16.msra.mxu0 %v7263_v18 }
 0x2dd   :  { %3932 = vmatprep.subr.bf16.mxu0 %v7268_v6 }
 0x2e0   :  { %3933 = vmatpush1.bf16.msra.mxu0 %v7266_v22 }
 0x2e1   :  { %3934 = vmatprep.subr.bf16.mxu0 %v7271_v31 }
 0x2e4   :  { %3935 = vmatpush1.bf16.msra.mxu0 %v7269_v23 }
 0x2e5   :  { %3936 = vmatprep.subr.bf16.mxu0 %v7274_v14 }
 0x2e8   :  { %3937 = vmatpush1.bf16.msra.mxu0 %v7272_v26 }
 0x2e9   :  { %3938 = vmatprep.subr.bf16.mxu0 %v7277_v27 }
 0x2ec   :  { %3939 = vmatpush1.bf16.msra.mxu0 %v7275_v28 }
 0x2ed   :  { %3940 = vmatprep.subr.bf16.mxu0 %v7280_v29 }
 0x2f0   :  { %3941 = vmatpush1.bf16.msra.mxu0 %v7278_v32 }
 0x2f1   :  { %3942 = vmatprep.subr.bf16.mxu0 %v7283_v33 }
 0x2f4   :  { %3943 = vmatpush1.bf16.msra.mxu0 %v7281_v34 }
 0x2f5   :  { %3944 = vmatprep.subr.bf16.mxu0 %v7286_v35 }
 0x2f8   :  { %3945 = vmatpush1.bf16.msra.mxu0 %v7284_v36 }
 0x2f9   :  { %3955 = vmatprep.subr.bf16.mxu0 %v7289_v37 }
 0x2fb   :  { %3947 = vmatmul.mubr.bf16.vlgmr.msra.gmra.mrb[8].mxu0 %v7971_v19  ;;  %v7299_v19 = vld [vmem:[%s8280_s7 + $0xb8] ss:$8 sps:$4 sm:$0xff]  }
 0x2fc   :  { %3956 = vmatpush1.bf16.msra.mxu0 %v7287_v38  ;;  %3987 = vmatprep.mubr.bf16.mxu0 %v7752_v24 }
 0x2fd   :  { %5408 = vmatprep.subr.bf16.mxu0 %v7295_v39  ;;  %v8157_v39 = vsub.s32 4, %v7994_v54 }
 0x307   :  { %6215 = vmatmul.mubr.msk.bf16.vlgmr.msra.gmra.mrb[8].mxu0 %vm778_vm0, %v7997_v58  ;;  %v6372_v58 = vld [vmem:[%s8280_s7 + $0xd8] sm:$0x11] }
 0x308   :  { %5409 = vmatpush1.bf16.msra.mxu0 %v7293_v40  ;;  %5440 = vmatprep.mubr.bf16.mxu0 %v7752_v24  ;;  %v6380_v50 = vcombine.high %v6372_v58, %v6372_v58  ;;  %v6379_v52 = vcombine.low %v6372_v58, %v6372_v58 }
 0x309   :  { %5410 = vmatprep.subr.bf16.mxu0 %v7301_v41 }
 0x30a   :  { %v5403_v16 = vsel %vm4364_vm4, %v6379_v52, 0  ;;  %v7312_v52 = vld [vmem:[#allocation13] ss:$8 sps:$4 sm:$0xff]  }
 0x30c   :  { %5411 = vmatpush1.bf16.msra.mxu0 %v7299_v19 }
 0x30d   :  { %5412 = vmatprep.subr.bf16.mxu0 %v7307_v44 }
 0x30e   :  { %v2463_v53 = vpop.f32.mrb[4].mxu0  ;;  %v3226_v55 = vpop.f32.mrb[4].mxu1 }
 0x30f   :  { %v6461_v57 = vadd.f32 %v2463_v53, %v1811_v45  ;;  %v2465_v61 = vpop.f32.mrb[5].mxu0  ;;  %v3228_v51 = vpop.f32.mrb[5].mxu1  ;;  %v8137_v3 = vadd.f32 %v3226_v55, %v2574_v48  ;;  %v7315_v53 = vld [vmem:[#allocation13 + $0x300] ss:$8 sps:$4 sm:$0xff]  }
 0x310   :  { %v6462_v63 = vadd.f32 %v2465_v61, %v1815_v46  ;;  %v2467_v1 = vpop.f32.mrb[6].mxu0  ;;  %v3230_v2 = vpop.f32.mrb[6].mxu1  ;;  %5413 = vmatpush1.bf16.msra.mxu0 %v7305_v47  ;;  %v8146_v8 = vadd.f32 %v3228_v51, %v2578_v56  ;;  %v7320_v56 = vld [vmem:[#allocation13 + $0x14] ss:$8 sps:$4 sm:$0xff]   ;;  %v7318_v61 = vld [vmem:[#allocation13 + $0x10] ss:$8 sps:$4 sm:$0xff]  }
 0x311   :  { %v8135_v11 = vmax.f32 %v1707_v25, %v6461_v57  ;;  %v2468_v49 = vpop.f32.mrb[7].mxu0  ;;  %v3231_v4 = vpop.f32.mrb[7].mxu1  ;;  %6381 = vmatprep.subr.msk.bf16.mxu0 %vm4364_vm4, %v6380_v50  ;;  %v3998_v25 = vld [vmem:[#allocation11] sm:$0x1f]  ;;  %v7329_v1 = vld [vmem:[#allocation13 + $0x324] ss:$8 sps:$4 sm:$0xff]  }
 0x312   :  { %v8144_v7 = vmax.f32 %v1708_v30, %v6462_v63  ;;  %v4004_v17 = vrot.slane %v3998_v25, %v8004_v59  ;;  %v4064_v20 = vrot.slane %v3998_v25, %v8007_v60  ;;  %v4120_v26 = vrot.slane %v3998_v25, %v8106_v42  ;;  %v7323_v57 = vld [vmem:[#allocation13 + $0x314] ss:$8 sps:$4 sm:$0xff]   ;;  %v7321_v51 = vld [vmem:[#allocation13 + $0x310] ss:$8 sps:$4 sm:$0xff]   ;;  %v7326_v63 = vld [vmem:[#allocation13 + $0x24] ss:$8 sps:$4 sm:$0xff]  }
 0x313   :  { %v3233_v13 = vmax.f32 %v8135_v11, %v8137_v3  ;;  %v4176_v35 = vrot.slane %v3998_v25, %v8113_v43  ;;  %v4232_v44 = vrot.slane %v3998_v25, %v8157_v39  ;;  %v7324_v2 = vld [vmem:[#allocation13 + $0x20] ss:$8 sps:$4 sm:$0xff]   ;;  %v7332_v4 = vld [vmem:[#allocation13 + $0x34] ss:$8 sps:$4 sm:$0xff]   ;;  %v7333_v25 = vld [vmem:[#allocation13 + $0x330] ss:$8 sps:$4 sm:$0xff]  }
 0x314   :  { %v3234_v15 = vmax.f32 %v8144_v7, %v8146_v8  ;;  %5415 = vmatpush1.bf16.msra.mxu0 %v5403_v16  ;;  %v7327_v49 = vld [vmem:[#allocation13 + $0x320] ss:$8 sps:$4 sm:$0xff]   ;;  %v7335_v16 = vld [vmem:[#allocation13 + $0x334] ss:$8 sps:$4 sm:$0xff]  }
 0x315   :  { %5609 = vmatprep.subr.bf16.mxu0 %v7317_v5  ;;  %v7330_v5 = vld [vmem:[#allocation13 + $0x30] ss:$8 sps:$4 sm:$0xff]  }
 0x316   :  { %v4052_v9 = vpop.f32.mrb[8].mxu1  ;;  %v7411_v11 = vld [vmem:[%s8280_s7 + $0x48] ss:$8 sps:$4 sm:$0xff]   ;;  %v7416_v3 = vld [vmem:[%s8280_s7 + $0x5c] ss:$8 sps:$4 sm:$0xff]  }
 0x317   :  { %v6431_v10 = vpop.f32.mrb[9].mxu1  ;;  %v4053_v21 = vadd.f32 %v4052_v9, %v4004_v17  ;;  %v7338_v9 = vld [vmem:[#allocation13 + $0x44] ss:$8 sps:$4 sm:$0xff]   ;;  %v7339_v17 = vld [vmem:[#allocation13 + $0x340] ss:$8 sps:$4 sm:$0xff]  }
 0x318   :  { %v4055_v12 = vpop.f32.mrb[10].mxu1  ;;  %v7341_v10 = vld [vmem:[#allocation13 + $0x344] ss:$8 sps:$4 sm:$0xff]   ;;  %v6274_v7 = vld [vmem:[%s8280_s7 + $0x68] sm:$0x11] }
 0x319   :  { %v6432_v18 = vpop.f32.mrb[11].mxu1  ;;  %v7336_v12 = vld [vmem:[#allocation13 + $0x40] ss:$8 sps:$4 sm:$0xff]  }
 0x31a   :  { %v7344_v18 = vld [vmem:[#allocation13 + $0x54] ss:$8 sps:$4 sm:$0xff]   ;;  %v7414_v8 = vld [vmem:[%s8280_s7 + $0x58] ss:$8 sps:$4 sm:$0xff]  }
 0x31e   :  { %v4107_v30 = vpop.f32.mrb[12].mxu1 }
 0x31f   :  { %v4108_v6 = vadd.f32 %v4107_v30, %v4064_v20  ;;  %v6437_v22 = vpop.f32.mrb[13].mxu1  ;;  %v7347_v20 = vld [vmem:[#allocation13 + $0x354] ss:$8 sps:$4 sm:$0xff]   ;;  %v7345_v30 = vld [vmem:[#allocation13 + $0x350] ss:$8 sps:$4 sm:$0xff]  }
 0x320   :  { %v4110_v31 = vpop.f32.mrb[14].mxu1  ;;  %v7353_v22 = vld [vmem:[#allocation13 + $0x364] ss:$8 sps:$4 sm:$0xff]  }
 0x321   :  { %v4113_v23 = vmax.f32 %v4053_v21, %v4108_v6  ;;  %v6438_v14 = vpop.f32.mrb[15].mxu1  ;;  %v7342_v21 = vld [vmem:[#allocation13 + $0x50] ss:$8 sps:$4 sm:$0xff]   ;;  %v7350_v6 = vld [vmem:[#allocation13 + $0x64] ss:$8 sps:$4 sm:$0xff]  }
 0x322   :  { %v7348_v31 = vld [vmem:[#allocation13 + $0x60] ss:$8 sps:$4 sm:$0xff]   ;;  %v7356_v14 = vld [vmem:[#allocation13 + $0x74] ss:$8 sps:$4 sm:$0xff]  }
 0x326   :  { %v4163_v27 = vpop.f32.mrb[16].mxu1 }
 0x327   :  { %v4164_v28 = vadd.f32 %v4163_v27, %v4120_v26  ;;  %v6443_v29 = vpop.f32.mrb[17].mxu1  ;;  %v7359_v26 = vld [vmem:[#allocation13 + $0x374] ss:$8 sps:$4 sm:$0xff]   ;;  %v7354_v27 = vld [vmem:[#allocation13 + $0x70] ss:$8 sps:$4 sm:$0xff]  }
 0x328   :  { %v4166_v32 = vpop.f32.mrb[18].mxu1  ;;  %v7362_v29 = vld [vmem:[#allocation13 + $0x84] ss:$8 sps:$4 sm:$0xff]  }
 0x329   :  { %v4169_v33 = vmax.f32 %v4113_v23, %v4164_v28  ;;  %v6444_v34 = vpop.f32.mrb[19].mxu1  ;;  %v7351_v23 = vld [vmem:[#allocation13 + $0x360] ss:$8 sps:$4 sm:$0xff]   ;;  %v7357_v28 = vld [vmem:[#allocation13 + $0x370] ss:$8 sps:$4 sm:$0xff]  }
 0x32a   :  { %v7365_v32 = vld [vmem:[#allocation13 + $0x384] ss:$8 sps:$4 sm:$0xff]   ;;  %v7363_v34 = vld [vmem:[#allocation13 + $0x380] ss:$8 sps:$4 sm:$0xff]  }
 0x32e   :  { %v4219_v36 = vpop.f32.mrb[20].mxu1 }
 0x32f   :  { %v4220_v37 = vadd.f32 %v4219_v36, %v4176_v35  ;;  %v6449_v38 = vpop.f32.mrb[21].mxu1  ;;  %v7368_v35 = vld [vmem:[#allocation13 + $0x94] ss:$8 sps:$4 sm:$0xff]  }
 0x330   :  { %v4222_v40 = vpop.f32.mrb[22].mxu1  ;;  %v7371_v36 = vld [vmem:[#allocation13 + $0x394] ss:$8 sps:$4 sm:$0xff]   ;;  %v7369_v38 = vld [vmem:[#allocation13 + $0x390] ss:$8 sps:$4 sm:$0xff]  }
 0x331   :  { %v4225_v41 = vmax.f32 %v4169_v33, %v4220_v37  ;;  %v6450_v19 = vpop.f32.mrb[23].mxu1  ;;  %v7360_v33 = vld [vmem:[#allocation13 + $0x80] ss:$8 sps:$4 sm:$0xff]   ;;  %v7366_v37 = vld [vmem:[#allocation13 + $0x90] ss:$8 sps:$4 sm:$0xff]  }
 0x332   :  { %v7374_v40 = vld [vmem:[#allocation13 + $0xa4] ss:$8 sps:$4 sm:$0xff]   ;;  %v7372_v19 = vld [vmem:[#allocation13 + $0xa0] ss:$8 sps:$4 sm:$0xff]  }
 0x336   :  { %v4275_v58 = vpop.f32.mrb[24].mxu1 }
 0x337   :  { %v4276_v45 = vadd.f32 %v4275_v58, %v4232_v44  ;;  %v6455_v46 = vpop.f32.mrb[25].mxu1  ;;  %v7375_v44 = vld [vmem:[#allocation13 + $0x3a0] ss:$8 sps:$4 sm:$0xff]   ;;  %v7380_v58 = vld [vmem:[#allocation13 + $0xb4] ss:$8 sps:$4 sm:$0xff]  }
 0x338   :  { %v4278_v47 = vpop.f32.mrb[26].mxu1  ;;  %v7378_v46 = vld [vmem:[#allocation13 + $0xb0] ss:$8 sps:$4 sm:$0xff]  }
 0x339   :  { %v4281_v48 = vmax.f32 %v4225_v41, %v4276_v45  ;;  %v6456_v50 = vpop.f32.mrb[27].mxu1  ;;  %v7377_v41 = vld [vmem:[#allocation13 + $0x3a4] ss:$8 sps:$4 sm:$0xff]   ;;  %v7383_v45 = vld [vmem:[#allocation13 + $0x3b4] ss:$8 sps:$4 sm:$0xff]  }
 0x33a   :  { %v7381_v47 = vld [vmem:[#allocation13 + $0x3b0] ss:$8 sps:$4 sm:$0xff]   ;;  %v7389_v50 = vld [vmem:[#allocation13 + $0x3c4] ss:$8 sps:$4 sm:$0xff]  }
 0x33b   :  { %v8160_v55 = vpack.c.bf16 %v4281_v48, %v4281_v48  ;;  %v7386_v48 = vld [vmem:[#allocation13 + $0xc4] ss:$8 sps:$4 sm:$0xff]  }
 0x33d   :  { %6235 = vmatmul.mubr.msk.bf16.vlgmr.msra.gmra.mrb[28].mxu1 %vm4360_vm5, %v8160_v55  ;;  %6382 = vmatmul.mubr.msk.bf16.vlgmr.msra.gmra.mrb[12].mxu0 %vm4360_vm5, %v8160_v55 }
 0x33e   :  { %4573 = vmatpush1.bf16.msra.mxu1 %v7312_v52  ;;  %5610 = vmatpush1.bf16.msra.mxu0 %v7315_v53  ;;  %v7384_v52 = vld [vmem:[#allocation13 + $0xc0] ss:$8 sps:$4 sm:$0xff]  }
 0x33f   :  { %4574 = vmatprep.subr.bf16.mxu1 %v7320_v56  ;;  %5611 = vmatprep.subr.bf16.mxu0 %v7323_v57  ;;  %v7387_v53 = vld [vmem:[#allocation13 + $0x3c0] ss:$8 sps:$4 sm:$0xff]   ;;  %v7392_v56 = vld [vmem:[#allocation13 + $0xd4] ss:$8 sps:$4 sm:$0xff]  }
 0x340   :  { %v7395_v57 = vld [vmem:[#allocation13 + $0x3d4] ss:$8 sps:$4 sm:$0xff]  }
 0x342   :  { %4575 = vmatpush1.bf16.msra.mxu1 %v7318_v61  ;;  %5612 = vmatpush1.bf16.msra.mxu0 %v7321_v51  ;;  %v7390_v61 = vld [vmem:[#allocation13 + $0xd0] ss:$8 sps:$4 sm:$0xff]  }
 0x343   :  { %4576 = vmatprep.subr.bf16.mxu1 %v7326_v63  ;;  %5613 = vmatprep.subr.bf16.mxu0 %v7329_v1  ;;  %v7393_v51 = vld [vmem:[#allocation13 + $0x3d0] ss:$8 sps:$4 sm:$0xff]   ;;  %v7398_v63 = vld [vmem:[#allocation13 + $0xe4] ss:$8 sps:$4 sm:$0xff]  }
 0x344   :  { %v7401_v1 = vld [vmem:[#allocation13 + $0x3e4] ss:$8 sps:$4 sm:$0xff]  }
 0x346   :  { %4577 = vmatpush1.bf16.msra.mxu1 %v7324_v2  ;;  %5614 = vmatpush1.bf16.msra.mxu0 %v7327_v49  ;;  %v7396_v2 = vld [vmem:[#allocation13 + $0xe0] ss:$8 sps:$4 sm:$0xff]  }
 0x347   :  { %4578 = vmatprep.subr.bf16.mxu1 %v7332_v4  ;;  %5615 = vmatprep.subr.bf16.mxu0 %v7335_v16  ;;  %v7399_v49 = vld [vmem:[#allocation13 + $0x3e0] ss:$8 sps:$4 sm:$0xff]   ;;  %v7404_v4 = vld [vmem:[#allocation13 + $0xf4] ss:$8 sps:$4 sm:$0xff]  }
 0x348   :  { %v7407_v16 = vld [vmem:[#allocation13 + $0x3f4] ss:$8 sps:$4 sm:$0xff]  }
 0x34a   :  { %4579 = vmatpush1.bf16.msra.mxu1 %v7330_v5  ;;  %5616 = vmatpush1.bf16.msra.mxu0 %v7333_v25  ;;  %v7402_v5 = vld [vmem:[#allocation13 + $0xf0] ss:$8 sps:$4 sm:$0xff]  }
 0x34b   :  { %4580 = vmatprep.subr.bf16.mxu1 %v7338_v9  ;;  %5617 = vmatprep.subr.bf16.mxu0 %v7341_v10  ;;  %v7405_v25 = vld [vmem:[#allocation13 + $0x3f0] ss:$8 sps:$4 sm:$0xff]   ;;  %v3337_v10 = vrot.slane %v8009_v62, %v8157_v39 }
 0x34c   :  { %v7410_v9 = vld [vmem:[%s8280_s7 + $0x3c] ss:$8 sps:$4 sm:$0xff]   ;;  %v7408_v62 = vld [vmem:[%s8280_s7 + $0x38] ss:$8 sps:$4 sm:$0xff]  }
 0x34e   :  { %4581 = vmatpush1.bf16.msra.mxu1 %v7336_v12  ;;  %5618 = vmatpush1.bf16.msra.mxu0 %v7339_v17  ;;  %v3341_v12 = vrot.slane %v8012_v0, %v8157_v39 }
 0x34f   :  { %4582 = vmatprep.subr.bf16.mxu1 %v7344_v18  ;;  %5619 = vmatprep.subr.bf16.mxu0 %v7347_v20 }
 0x352   :  { %4583 = vmatpush1.bf16.msra.mxu1 %v7342_v21  ;;  %5620 = vmatpush1.bf16.msra.mxu0 %v7345_v30 }
 0x353   :  { %4584 = vmatprep.subr.bf16.mxu1 %v7350_v6  ;;  %5621 = vmatprep.subr.bf16.mxu0 %v7353_v22 }
 0x356   :  { %4585 = vmatpush1.bf16.msra.mxu1 %v7348_v31  ;;  %5622 = vmatpush1.bf16.msra.mxu0 %v7351_v23 }
 0x357   :  { %4586 = vmatprep.subr.bf16.mxu1 %v7356_v14  ;;  %5623 = vmatprep.subr.bf16.mxu0 %v7359_v26  ;;  %v7413_v14 = vld [vmem:[%s8280_s7 + $0x4c] ss:$8 sps:$4 sm:$0xff]  }
 0x35a   :  { %4587 = vmatpush1.bf16.msra.mxu1 %v7354_v27  ;;  %5624 = vmatpush1.bf16.msra.mxu0 %v7357_v28  ;;  %v7421_v27 = vld [vmem:[#allocation13 + $0x104] ss:$8 sps:$4 sm:$0xff]   ;;  %v7419_v28 = vld [vmem:[#allocation13 + $0x100] ss:$8 sps:$4 sm:$0xff]  }
 0x35b   :  { %4588 = vmatprep.subr.bf16.mxu1 %v7362_v29  ;;  %5625 = vmatprep.subr.bf16.mxu0 %v7365_v32  ;;  %v7424_v29 = vld [vmem:[#allocation13 + $0x114] ss:$8 sps:$4 sm:$0xff]   ;;  %v7422_v32 = vld [vmem:[#allocation13 + $0x110] ss:$8 sps:$4 sm:$0xff]  }
 0x35e   :  { %4589 = vmatpush1.bf16.msra.mxu1 %v7360_v33  ;;  %5626 = vmatpush1.bf16.msra.mxu0 %v7363_v34  ;;  %v7427_v33 = vld [vmem:[#allocation13 + $0x124] ss:$8 sps:$4 sm:$0xff]   ;;  %v7425_v34 = vld [vmem:[#allocation13 + $0x120] ss:$8 sps:$4 sm:$0xff]  }
 0x35f   :  { %4590 = vmatprep.subr.bf16.mxu1 %v7368_v35  ;;  %5627 = vmatprep.subr.bf16.mxu0 %v7371_v36  ;;  %v7430_v35 = vld [vmem:[#allocation13 + $0x134] ss:$8 sps:$4 sm:$0xff]   ;;  %v7428_v36 = vld [vmem:[#allocation13 + $0x130] ss:$8 sps:$4 sm:$0xff]  }
 0x362   :  { %4591 = vmatpush1.bf16.msra.mxu1 %v7366_v37  ;;  %5628 = vmatpush1.bf16.msra.mxu0 %v7369_v38  ;;  %v7433_v37 = vld [vmem:[#allocation13 + $0x144] ss:$8 sps:$4 sm:$0xff]   ;;  %v7431_v38 = vld [vmem:[#allocation13 + $0x140] ss:$8 sps:$4 sm:$0xff]  }
 0x363   :  { %4592 = vmatprep.subr.bf16.mxu1 %v7374_v40  ;;  %5629 = vmatprep.subr.bf16.mxu0 %v7377_v41  ;;  %v7436_v40 = vld [vmem:[#allocation13 + $0x154] ss:$8 sps:$4 sm:$0xff]   ;;  %v7434_v41 = vld [vmem:[#allocation13 + $0x150] ss:$8 sps:$4 sm:$0xff]  }
 0x366   :  { %4593 = vmatpush1.bf16.msra.mxu1 %v7372_v19  ;;  %5630 = vmatpush1.bf16.msra.mxu0 %v7375_v44  ;;  %v7439_v19 = vld [vmem:[#allocation13 + $0x164] ss:$8 sps:$4 sm:$0xff]   ;;  %v7437_v44 = vld [vmem:[#allocation13 + $0x160] ss:$8 sps:$4 sm:$0xff]  }
 0x367   :  { %4594 = vmatprep.subr.bf16.mxu1 %v7380_v58  ;;  %5631 = vmatprep.subr.bf16.mxu0 %v7383_v45  ;;  %v7442_v58 = vld [vmem:[#allocation13 + $0x174] ss:$8 sps:$4 sm:$0xff]   ;;  %v7440_v45 = vld [vmem:[#allocation13 + $0x170] ss:$8 sps:$4 sm:$0xff]  }
 0x36a   :  { %4595 = vmatpush1.bf16.msra.mxu1 %v7378_v46  ;;  %5632 = vmatpush1.bf16.msra.mxu0 %v7381_v47  ;;  %v7445_v46 = vld [vmem:[#allocation13 + $0x184] ss:$8 sps:$4 sm:$0xff]   ;;  %v7443_v47 = vld [vmem:[#allocation13 + $0x180] ss:$8 sps:$4 sm:$0xff]  }
 0x36b   :  { %4596 = vmatprep.subr.bf16.mxu1 %v7386_v48  ;;  %5633 = vmatprep.subr.bf16.mxu0 %v7389_v50 }
 0x36e   :  { %4597 = vmatpush1.bf16.msra.mxu1 %v7384_v52  ;;  %5634 = vmatpush1.bf16.msra.mxu0 %v7387_v53  ;;  %v7448_v52 = vld [vmem:[#allocation13 + $0x194] ss:$8 sps:$4 sm:$0xff]  }
 0x36f   :  { %4598 = vmatprep.subr.bf16.mxu1 %v7392_v56  ;;  %5635 = vmatprep.subr.bf16.mxu0 %v7395_v57 }
 0x372   :  { %4599 = vmatpush1.bf16.msra.mxu1 %v7390_v61  ;;  %5636 = vmatpush1.bf16.msra.mxu0 %v7393_v51 }
 0x373   :  { %4600 = vmatprep.subr.bf16.mxu1 %v7398_v63  ;;  %5637 = vmatprep.subr.bf16.mxu0 %v7401_v1  ;;  %v7446_v1 = vld [vmem:[#allocation13 + $0x190] ss:$8 sps:$4 sm:$0xff]  }
 0x376   :  { %4601 = vmatpush1.bf16.msra.mxu1 %v7396_v2  ;;  %5638 = vmatpush1.bf16.msra.mxu0 %v7399_v49  ;;  %v7451_v2 = vld [vmem:[#allocation13 + $0x1a4] ss:$8 sps:$4 sm:$0xff]   ;;  %v7449_v49 = vld [vmem:[#allocation13 + $0x1a0] ss:$8 sps:$4 sm:$0xff]  }
 0x377   :  { %4602 = vmatprep.subr.bf16.mxu1 %v7404_v4  ;;  %5639 = vmatprep.subr.bf16.mxu0 %v7407_v16  ;;  %v7454_v4 = vld [vmem:[#allocation13 + $0x1b4] ss:$8 sps:$4 sm:$0xff]   ;;  %v7452_v16 = vld [vmem:[#allocation13 + $0x1b0] ss:$8 sps:$4 sm:$0xff]  }
 0x37a   :  { %4603 = vmatpush1.bf16.msra.mxu1 %v7402_v5  ;;  %5640 = vmatpush1.bf16.msra.mxu0 %v7405_v25  ;;  %v7457_v5 = vld [vmem:[#allocation13 + $0x1c4] ss:$8 sps:$4 sm:$0xff]   ;;  %v7455_v25 = vld [vmem:[#allocation13 + $0x1c0] ss:$8 sps:$4 sm:$0xff]  }
 0x37b   :  { %4716 = vmatprep.subr.bf16.mxu1 %v7410_v9  ;;  %v7460_v9 = vld [vmem:[#allocation13 + $0x1d4] ss:$8 sps:$4 sm:$0xff]  }
 0x3da   :  { %v3989_v17 = vpop.f32.mrb[8].mxu0 }
 0x3db   :  { %v6465_v18 = vadd.f32 %v3989_v17, %v3337_v10  ;;  %v3991_v20 = vpop.f32.mrb[9].mxu0  ;;  %v7458_v10 = vld [vmem:[#allocation13 + $0x1d0] ss:$8 sps:$4 sm:$0xff]   ;;  %v7461_v17 = vld [vmem:[#allocation13 + $0x1e0] ss:$8 sps:$4 sm:$0xff]  }
 0x3dc   :  { %v6466_v21 = vadd.f32 %v3991_v20, %v3341_v12  ;;  %v3993_v30 = vpop.f32.mrb[10].mxu0  ;;  %v7463_v12 = vld [vmem:[#allocation13 + $0x1e4] ss:$8 sps:$4 sm:$0xff]   ;;  %v7464_v20 = vld [vmem:[#allocation13 + $0x1f0] ss:$8 sps:$4 sm:$0xff]  }
 0x3dd   :  { %v3996_v6 = vmax.f32 %v3233_v13, %v6465_v18  ;;  %v3994_v22 = vpop.f32.mrb[11].mxu0  ;;  %v6282_v13 = vcombine.high %v6274_v7, %v6274_v7  ;;  %v7466_v18 = vld [vmem:[#allocation13 + $0x1f4] ss:$8 sps:$4 sm:$0xff]  }
 0x3de   :  { %v3997_v31 = vmax.f32 %v3234_v15, %v6466_v21  ;;  %v6281_v15 = vcombine.low %v6274_v7, %v6274_v7  ;;  %v7469_v21 = vld [vmem:[%s8280_s7 + $0x74] ss:$8 sps:$4 sm:$0xff]   ;;  %v7467_v30 = vld [vmem:[%s8280_s7 + $0x70] ss:$8 sps:$4 sm:$0xff]   ;;  %v7470_v22 = vld [vmem:[%s8280_s7 + $0x80] ss:$8 sps:$4 sm:$0xff]  }
 0x3df   :  { %v8184_v0 = vpack.c.bf16 %v3996_v6, %v3996_v6  ;;  %v7472_v6 = vld [vmem:[%s8280_s7 + $0x84] ss:$8 sps:$4 sm:$0xff]   ;;  %v7480_v7 = vld [vmem:[#allocation13 + $0x204] ss:$8 sps:$4 sm:$0xff]  }
 0x3e0   :  { %v8179_v23 = vpack.c.bf16 %v3997_v31, %v3997_v31  ;;  %v4711_v26 = vsel %vm4364_vm4, %v6281_v15, 0  ;;  %v7475_v31 = vld [vmem:[%s8280_s7 + $0x94] ss:$8 sps:$4 sm:$0xff]   ;;  %v7481_v15 = vld [vmem:[#allocation13 + $0x210] ss:$8 sps:$4 sm:$0xff]  }
 0x3e2   :  { %4604 = vmatprep.mubr.bf16.mxu1 %v8179_v23  ;;  %5641 = vmatprep.mubr.bf16.mxu0 %v8179_v23 }
 0x3e3   :  { %4605 = vmatmul.mubr.bf16.vlgmr.msra.gmra.mrb[32].mxu1 %v8184_v0  ;;  %5642 = vmatmul.mubr.bf16.vlgmr.msra.gmra.mrb[16].mxu0 %v8184_v0 }
 0x3e4   :  { %4717 = vmatpush1.bf16.msra.mxu1 %v7408_v62  ;;  %4748 = vmatprep.mubr.bf16.mxu1 %v7752_v24  ;;  %v6323_v62 = vld [vmem:[%s8280_s7 + $0xa0] sm:$0x11] }
 0x3e5   :  { %4718 = vmatprep.subr.bf16.mxu1 %v7413_v14  ;;  %v7473_v14 = vld [vmem:[%s8280_s7 + $0x90] ss:$8 sps:$4 sm:$0xff]  }
 0x3e8   :  { %4719 = vmatpush1.bf16.msra.mxu1 %v7411_v11  ;;  %v6331_v11 = vcombine.high %v6323_v62, %v6323_v62 }
 0x3e9   :  { %4720 = vmatprep.subr.bf16.mxu1 %v7416_v3  ;;  %v6330_v3 = vcombine.low %v6323_v62, %v6323_v62  ;;  %v4964_v62 = vsub.s32 5, %v7994_v54 }
 0x3ec   :  { %4721 = vmatpush1.bf16.msra.mxu1 %v7414_v8  ;;  %v7478_v8 = vld [vmem:[#allocation13 + $0x200] ss:$8 sps:$4 sm:$0xff]  }
 0x3ed   :  { %6283 = vmatprep.subr.msk.bf16.mxu1 %vm4364_vm4, %v6282_v13  ;;  %v7483_v13 = vld [vmem:[#allocation13 + $0x214] ss:$8 sps:$4 sm:$0xff]  }
 0x3f0   :  { %4723 = vmatpush1.bf16.msra.mxu1 %v4711_v26  ;;  %v7486_v26 = vld [vmem:[#allocation13 + $0x224] ss:$8 sps:$4 sm:$0xff]  }
 0x3f1   :  { %4917 = vmatprep.subr.bf16.mxu1 %v7421_v27  ;;  %v7484_v27 = vld [vmem:[#allocation13 + $0x220] ss:$8 sps:$4 sm:$0xff]  }
 0x3f3   :  { %6284 = vmatmul.mubr.msk.bf16.vlgmr.msra.gmra.mrb[36].mxu1 %vm4360_vm5, %v8160_v55 }
 0x3f4   :  { %4918 = vmatpush1.bf16.msra.mxu1 %v7419_v28  ;;  %4949 = vmatprep.mubr.bf16.mxu1 %v8179_v23  ;;  %v7489_v28 = vld [vmem:[#allocation13 + $0x234] ss:$8 sps:$4 sm:$0xff]  }
 0x3f5   :  { %4919 = vmatprep.subr.bf16.mxu1 %v7424_v29  ;;  %v7487_v29 = vld [vmem:[#allocation13 + $0x230] ss:$8 sps:$4 sm:$0xff]  }
 0x3f8   :  { %4920 = vmatpush1.bf16.msra.mxu1 %v7422_v32  ;;  %v7492_v32 = vld [vmem:[#allocation13 + $0x244] ss:$8 sps:$4 sm:$0xff]  }
 0x3f9   :  { %4921 = vmatprep.subr.bf16.mxu1 %v7427_v33  ;;  %v7490_v33 = vld [vmem:[#allocation13 + $0x240] ss:$8 sps:$4 sm:$0xff]  }
 0x3fc   :  { %4922 = vmatpush1.bf16.msra.mxu1 %v7425_v34  ;;  %v7495_v34 = vld [vmem:[#allocation13 + $0x254] ss:$8 sps:$4 sm:$0xff]  }
 0x3fd   :  { %4923 = vmatprep.subr.bf16.mxu1 %v7430_v35  ;;  %v7498_v35 = vld [vmem:[#allocation13 + $0x264] ss:$8 sps:$4 sm:$0xff]  }
 0x400   :  { %4924 = vmatpush1.bf16.msra.mxu1 %v7428_v36  ;;  %v7501_v36 = vld [vmem:[#allocation13 + $0x274] ss:$8 sps:$4 sm:$0xff]  }
 0x401   :  { %4925 = vmatprep.subr.bf16.mxu1 %v7433_v37  ;;  %v7499_v37 = vld [vmem:[#allocation13 + $0x270] ss:$8 sps:$4 sm:$0xff]  }
 0x404   :  { %4926 = vmatpush1.bf16.msra.mxu1 %v7431_v38  ;;  %v7504_v38 = vld [vmem:[#allocation13 + $0x284] ss:$8 sps:$4 sm:$0xff]  }
 0x405   :  { %4927 = vmatprep.subr.bf16.mxu1 %v7436_v40  ;;  %v7502_v40 = vld [vmem:[#allocation13 + $0x280] ss:$8 sps:$4 sm:$0xff]  }
 0x408   :  { %4928 = vmatpush1.bf16.msra.mxu1 %v7434_v41  ;;  %v7507_v41 = vld [vmem:[#allocation13 + $0x294] ss:$8 sps:$4 sm:$0xff]  }
 0x409   :  { %4929 = vmatprep.subr.bf16.mxu1 %v7439_v19  ;;  %v7505_v19 = vld [vmem:[#allocation13 + $0x290] ss:$8 sps:$4 sm:$0xff]  }
 0x40c   :  { %4930 = vmatpush1.bf16.msra.mxu1 %v7437_v44  ;;  %v7510_v44 = vld [vmem:[#allocation13 + $0x2a4] ss:$8 sps:$4 sm:$0xff]  }
 0x40d   :  { %4931 = vmatprep.subr.bf16.mxu1 %v7442_v58  ;;  %v7508_v58 = vld [vmem:[#allocation13 + $0x2a0] ss:$8 sps:$4 sm:$0xff]  }
 0x410   :  { %4932 = vmatpush1.bf16.msra.mxu1 %v7440_v45  ;;  %v8211_v48 = vpop.f32.mrb[28].mxu1  ;;  %v8213_v50 = vpop.f32.mrb[12].mxu0  ;;  %v7513_v45 = vld [vmem:[#allocation13 + $0x2b4] ss:$8 sps:$4 sm:$0xff]  }
 0x411   :  { %4933 = vmatprep.subr.bf16.mxu1 %v7445_v46  ;;  %v8215_v53 = vpop.f32.mrb[29].mxu1  ;;  %v8217_v56 = vpop.f32.mrb[13].mxu0  ;;  %v7511_v46 = vld [vmem:[#allocation13 + $0x2b0] ss:$8 sps:$4 sm:$0xff]  }
 0x412   :  { %v4409_v57 = vpop.f32.mrb[30].mxu1  ;;  %v5446_v61 = vpop.f32.mrb[14].mxu0 }
 0x413   :  { %v4410_v51 = vpop.f32.mrb[31].mxu1  ;;  %v5447_v63 = vpop.f32.mrb[15].mxu0  ;;  %v7519_v57 = vld [vmem:[#allocation13 + $0x2d4] ss:$8 sps:$4 sm:$0xff]   ;;  %v7517_v61 = vld [vmem:[#allocation13 + $0x2d0] ss:$8 sps:$4 sm:$0xff]  }
 0x414   :  { %4934 = vmatpush1.bf16.msra.mxu1 %v7443_v47  ;;  %v7516_v47 = vld [vmem:[#allocation13 + $0x2c4] ss:$8 sps:$4 sm:$0xff]   ;;  %v7520_v63 = vld [vmem:[#allocation13 + $0x2e0] ss:$8 sps:$4 sm:$0xff]  }
 0x415   :  { %4935 = vmatprep.subr.bf16.mxu1 %v7448_v52  ;;  %v7514_v52 = vld [vmem:[#allocation13 + $0x2c0] ss:$8 sps:$4 sm:$0xff]   ;;  %v7522_v51 = vld [vmem:[#allocation13 + $0x2e4] ss:$8 sps:$4 sm:$0xff]  }
 0x418   :  { %4936 = vmatpush1.bf16.msra.mxu1 %v7446_v1  ;;  %v7525_v1 = vld [vmem:[#allocation13 + $0x2f4] ss:$8 sps:$4 sm:$0xff]  }
 0x419   :  { %4937 = vmatprep.subr.bf16.mxu1 %v7451_v2  ;;  %v7523_v2 = vld [vmem:[#allocation13 + $0x2f0] ss:$8 sps:$4 sm:$0xff]  }
 0x41c   :  { %4938 = vmatpush1.bf16.msra.mxu1 %v7449_v49 }
 0x41d   :  { %4939 = vmatprep.subr.bf16.mxu1 %v7454_v4 }
 0x420   :  { %4940 = vmatpush1.bf16.msra.mxu1 %v7452_v16 }
 0x421   :  { %4941 = vmatprep.subr.bf16.mxu1 %v7457_v5 }
 0x424   :  { %4942 = vmatpush1.bf16.msra.mxu1 %v7455_v25 }
 0x425   :  { %4943 = vmatprep.subr.bf16.mxu1 %v7460_v9 }
 0x428   :  { %4944 = vmatpush1.bf16.msra.mxu1 %v7458_v10 }
 0x429   :  { %4945 = vmatprep.subr.bf16.mxu1 %v7463_v12 }
 0x42c   :  { %4946 = vmatpush1.bf16.msra.mxu1 %v7461_v17 }
 0x42d   :  { %4947 = vmatprep.subr.bf16.mxu1 %v7466_v18 }
 0x430   :  { %4948 = vmatpush1.bf16.msra.mxu1 %v7464_v20 }
 0x431   :  { %5062 = vmatprep.subr.bf16.mxu1 %v7469_v21 }
 0x433   :  { %4950 = vmatmul.mubr.bf16.vlgmr.msra.gmra.mrb[40].mxu1 %v8184_v0 }
 0x434   :  { %5063 = vmatpush1.bf16.msra.mxu1 %v7467_v30  ;;  %5094 = vmatprep.mubr.bf16.mxu1 %v7752_v24  ;;  %v5057_v24 = vsel %vm4364_vm4, %v6330_v3, 0 }
 0x435   :  { %5064 = vmatprep.subr.bf16.mxu1 %v7472_v6 }
 0x438   :  { %5065 = vmatpush1.bf16.msra.mxu1 %v7470_v22 }
 0x439   :  { %5066 = vmatprep.subr.bf16.mxu1 %v7475_v31  ;;  %v4285_v31 = vld [vmem:[#allocation14] sm:$0xff] }
 0x43c   :  { %5067 = vmatpush1.bf16.msra.mxu1 %v7473_v14  ;;  %v4621_v14 = vrot.slane %v4285_v31, %v8157_v39 }
 0x43d   :  { %6332 = vmatprep.subr.msk.bf16.mxu1 %vm4364_vm4, %v6331_v11 }
 0x43e   :  { %v4631_v3 = vrot.slane %v4621_v14, %v8004_v59 }
 0x440   :  { %5069 = vmatpush1.bf16.msra.mxu1 %v5057_v24 }
 0x441   :  { %5263 = vmatprep.subr.bf16.mxu1 %v7480_v7 }
 0x443   :  { %6333 = vmatmul.mubr.msk.bf16.vlgmr.msra.gmra.mrb[44].mxu1 %vm4360_vm5, %v8160_v55  ;;  %v7493_v55 = vld [vmem:[#allocation13 + $0x250] ss:$8 sps:$4 sm:$0xff]  }
 0x444   :  { %5264 = vmatpush1.bf16.msra.mxu1 %v7478_v8  ;;  %5295 = vmatprep.mubr.bf16.mxu1 %v8179_v23  ;;  %v7496_v23 = vld [vmem:[#allocation13 + $0x260] ss:$8 sps:$4 sm:$0xff]  }
 0x445   :  { %5265 = vmatprep.subr.bf16.mxu1 %v7483_v13 }
 0x448   :  { %5266 = vmatpush1.bf16.msra.mxu1 %v7481_v15 }
 0x449   :  { %5267 = vmatprep.subr.bf16.mxu1 %v7486_v26 }
 0x44c   :  { %5268 = vmatpush1.bf16.msra.mxu1 %v7484_v27 }
 0x44d   :  { %5269 = vmatprep.subr.bf16.mxu1 %v7489_v28 }
 0x450   :  { %5270 = vmatpush1.bf16.msra.mxu1 %v7487_v29 }
 0x451   :  { %5271 = vmatprep.subr.bf16.mxu1 %v7492_v32 }
 0x454   :  { %5272 = vmatpush1.bf16.msra.mxu1 %v7490_v33 }
 0x455   :  { %5273 = vmatprep.subr.bf16.mxu1 %v7495_v34 }
 0x458   :  { %5274 = vmatpush1.bf16.msra.mxu1 %v7493_v55 }
 0x459   :  { %5275 = vmatprep.subr.bf16.mxu1 %v7498_v35 }
 0x45c   :  { %5276 = vmatpush1.bf16.msra.mxu1 %v7496_v23 }
 0x45d   :  { %5277 = vmatprep.subr.bf16.mxu1 %v7501_v36 }
 0x460   :  { %5278 = vmatpush1.bf16.msra.mxu1 %v7499_v37  ;;  %v5310_v37 = vsub.s32 6, %v7994_v54 }
 0x461   :  { %5279 = vmatprep.subr.bf16.mxu1 %v7504_v38  ;;  %v5656_v38 = vsub.s32 7, %v7994_v54  ;;  %v5672_v54 = vld [vmem:[#allocation16] sm:$0x3] }
 0x464   :  { %5280 = vmatpush1.bf16.msra.mxu1 %v7502_v40  ;;  %v5307_v40 = vrot.slane %v4285_v31, %v8106_v42 }
 0x465   :  { %5281 = vmatprep.subr.bf16.mxu1 %v7507_v41  ;;  %v5311_v41 = vrot.slane %v4285_v31, %v5310_v37 }
 0x468   :  { %5282 = vmatpush1.bf16.msra.mxu1 %v7505_v19  ;;  %v5653_v19 = vrot.slane %v4285_v31, %v8113_v43 }
 0x469   :  { %5283 = vmatprep.subr.bf16.mxu1 %v7510_v44  ;;  %v5657_v44 = vrot.slane %v4285_v31, %v5656_v38 }
 0x46c   :  { %5284 = vmatpush1.bf16.msra.mxu1 %v7508_v58  ;;  %v5317_v58 = vrot.slane %v5307_v40, %v8106_v42 }
 0x46d   :  { %5285 = vmatprep.subr.bf16.mxu1 %v7513_v45 }
 0x470   :  { %5286 = vmatpush1.bf16.msra.mxu1 %v7511_v46  ;;  %v5321_v46 = vrot.slane %v5311_v41, %v8106_v42  ;;  %v5681_v42 = vrot.slane %v5672_v54, %v8007_v60 }
 0x471   :  { %5287 = vmatprep.subr.bf16.mxu1 %v7516_v47  ;;  %v5663_v47 = vrot.slane %v5653_v19, %v8113_v43 }
 0x474   :  { %5288 = vmatpush1.bf16.msra.mxu1 %v7514_v52 }
 0x475   :  { %5289 = vmatprep.subr.bf16.mxu1 %v7519_v57 }
 0x478   :  { %5290 = vmatpush1.bf16.msra.mxu1 %v7517_v61  ;;  %v5667_v61 = vrot.slane %v5657_v44, %v8113_v43  ;;  %v6415_v43 = vld [vmem:[#allocation2] ss:$0 sm:$0xff] }
 0x479   :  { %5291 = vmatprep.subr.bf16.mxu1 %v7522_v51 }
 0x47c   :  { %5292 = vmatpush1.bf16.msra.mxu1 %v7520_v63 }
 0x47d   :  { %5293 = vmatprep.subr.bf16.mxu1 %v7525_v1 }
 0x480   :  { %5294 = vmatpush1.bf16.msra.mxu1 %v7523_v2 }
 0x483   :  { %5296 = vmatmul.mubr.bf16.vlgmr.msra.gmra.mrb[48].mxu1 %v8184_v0 }
 0x4b6   :  { %v4606_v49 = vpop.f32.mrb[32].mxu1  ;;  %v5643_v4 = vpop.f32.mrb[16].mxu0 }
 0x4b7   :  { %v4607_v16 = vadd.f32 %v4606_v49, %v8211_v48  ;;  %v5644_v5 = vadd.f32 %v5643_v4, %v8213_v50  ;;  %v4608_v25 = vpop.f32.mrb[33].mxu1  ;;  %v5645_v9 = vpop.f32.mrb[17].mxu0  ;;  %v4617_v48 = vrot.slane %v4285_v31, %v8004_v59  ;;  %v4961_v50 = vrot.slane %v4285_v31, %v8007_v60 }
 0x4b8   :  { %v4609_v10 = vadd.f32 %v4608_v25, %v8215_v53  ;;  %v5646_v12 = vadd.f32 %v5645_v9, %v8217_v56  ;;  %v4610_v17 = vpop.f32.mrb[34].mxu1  ;;  %v5647_v18 = vpop.f32.mrb[18].mxu0  ;;  %v4965_v53 = vrot.slane %v4285_v31, %v4964_v62  ;;  %v5677_v25 = vrot.slane %v5672_v54, %v8004_v59 }
 0x4b9   :  { %v4611_v20 = vpop.f32.mrb[35].mxu1  ;;  %v5648_v21 = vpop.f32.mrb[19].mxu0  ;;  %v4627_v56 = vrot.slane %v4617_v48, %v8004_v59  ;;  %v4971_v11 = vrot.slane %v4961_v50, %v8007_v60  ;;  %v5668_v4 = vadd.f32 %v5663_v47, %v5644_v5 }
 0x4ba   :  { %v4975_v7 = vrot.slane %v4965_v53, %v8007_v60  ;;  %v4633_v32 = vadd.f32 %v4631_v3, %v4609_v10  ;;  %v5669_v9 = vadd.f32 %v5667_v61, %v5646_v12 }
 0x4bb   :  { %v4632_v27 = vadd.f32 %v4627_v56, %v4607_v16 }
 0x4c6   :  { %v4750_v30 = vpop.f32.mrb[36].mxu1 }
 0x4c7   :  { %v4752_v6 = vpop.f32.mrb[37].mxu1 }
 0x4c8   :  { %v4754_v22 = vpop.f32.mrb[38].mxu1 }
 0x4c9   :  { %v4755_v0 = vpop.f32.mrb[39].mxu1 }
 0x506   :  { %v4951_v24 = vpop.f32.mrb[40].mxu1 }
 0x507   :  { %v4952_v8 = vadd.f32 %v4951_v24, %v4750_v30  ;;  %v4953_v13 = vpop.f32.mrb[41].mxu1 }
 0x508   :  { %v4954_v15 = vadd.f32 %v4953_v13, %v4752_v6  ;;  %v4955_v26 = vpop.f32.mrb[42].mxu1 }
 0x509   :  { %v4976_v28 = vadd.f32 %v4971_v11, %v4952_v8  ;;  %v4956_v29 = vpop.f32.mrb[43].mxu1 }
 0x50a   :  { %v4977_v33 = vadd.f32 %v4975_v7, %v4954_v15 }
 0x50b   :  { %v4978_v39 = vmax.f32 %v4632_v27, %v4976_v28 }
 0x50c   :  { %v4979_v34 = vmax.f32 %v4633_v32, %v4977_v33 }
 0x516   :  { %v5096_v55 = vpop.f32.mrb[44].mxu1 }
 0x517   :  { %v5098_v35 = vpop.f32.mrb[45].mxu1 }
 0x518   :  { %v5100_v23 = vpop.f32.mrb[46].mxu1 }
 0x519   :  { %v5101_v36 = vpop.f32.mrb[47].mxu1 }
 0x556   :  { %v5297_v45 = vpop.f32.mrb[48].mxu1 }
 0x557   :  { %v5298_v52 = vadd.f32 %v5297_v45, %v5096_v55  ;;  %v5299_v57 = vpop.f32.mrb[49].mxu1 }
 0x558   :  { %v5300_v51 = vadd.f32 %v5299_v57, %v5098_v35  ;;  %v5301_v63 = vpop.f32.mrb[50].mxu1 }
 0x559   :  { %v5322_v1 = vadd.f32 %v5317_v58, %v5298_v52  ;;  %v5302_v2 = vpop.f32.mrb[51].mxu1 }
 0x55a   :  { %v5323_v49 = vadd.f32 %v5321_v46, %v5300_v51 }
 0x55b   :  { %v5324_v16 = vmax.f32 %v4978_v39, %v5322_v1 }
 0x55c   :  { %v5325_v10 = vmax.f32 %v4979_v34, %v5323_v49 }
 0x55d   :  { %v5670_v17 = vmax.f32 %v5324_v16, %v5668_v4 }
 0x55e   :  { %v5671_v18 = vmax.f32 %v5325_v10, %v5669_v9 }
 0x55f   :  { %v5684_v20 = vmul.f32 %v5677_v25, %v5670_v17 }
 0x560   :  { %v5685_v21 = vmul.f32 %v5681_v42, %v5671_v18 }
 0x562   :  { %v5686_v30 = vadd.f32 %v5685_v21, %v5684_v20 }
 0x564   :  { %5687 = vadd.xlane.f32.xlu0 %v5686_v30 }
 0x5f1   :  { %v5688_v6 = vpop.xlane.xlu0 %5687 }
 0x5f2   :  { %v5696_v22 = vadd.f32 %v6415_v43, %v5688_v6 }
 0x5f4   :  { %v6416_v0 = vmul.f32 -1.442695, %v5696_v22 }
 0x5f6   :  { %7526 = vpow2.f32 %v6416_v0 }
 0x600   :  { %v7527_v31 = vpop.eup %7526 }
 0x601   :  { %v5700_v5 = vadd.f32 1.0, %v7527_v31 }
 0x603   :  { %7528 = vrcp.f32 %v5700_v5 }
 0x60d   :  { %v7529_v59 = vpop.eup %7528 }
 0x60e   :  { %5704 = vst.msk [vmem:[%s8284_s11] sm:$0xff] %vm5703_vm6, %v7529_v59 }
 0x60f   :  { %5709 = vsyncpa [#allocation4], 1 }
 0x610   :  { %5710 = vsyncpa [#allocation6], 1 }
 0x611   :  { %5711 = vsyncpa [#allocation9], 1 }
 0x612   :  { %5712 = vsyncpa [#allocation12], 1 }
 0x613   :  { %5713 = vsyncpa [#allocation15], 1 }

</bundles_post_ra>
